<compile_context>
chip_gen: v5e
topology: v5e:2x2
jax: 0.10.0
libtpu: 0.0.40
codegen_flags: <defaults>
</compile_context>

<pallas_src>
import functools

import jax
import jax.numpy as jnp
from jax.experimental import pallas as pl
from jax.experimental.pallas import tpu as pltpu


def _leaky_relu(x, slope=0.2):
    return jnp.where(x >= 0, x, slope * x)


def _round_up(v, m):
    return ((v + m - 1) // m) * m


def _features(x_ref, w1_ref, b1_ref, w2_ref):
    """conv1 (+bias) + LeakyReLU + conv2. Returns f32 (2*ndf, TILE_P)."""
    x = x_ref[0].astype(jnp.float32)                     # (Cin, TILE_P) f32
    cin = x.shape[0]
    # conv1: K = Cin is tiny (e.g. 3/4) -> Cin VPU broadcast FMAs, not a K=4 MXU matmul.
    h1 = b1_ref[...]                                     # (ndf, 1) f32, broadcasts over lanes
    for k in range(cin):
        h1 = h1 + w1_ref[:, k:k + 1] * x[k:k + 1, :]
    h1 = _leaky_relu(h1)                                 # (ndf, TILE_P)
    # conv2 on the MXU: bf16 operands, f32 accumulation.
    w2 = w2_ref[...]
    h2 = jnp.dot(w2, h1.astype(w2.dtype), preferred_element_type=jnp.float32)
    return h2                                            # (2*ndf, TILE_P) f32


def _bn_stats_kernel(x_ref, w1_ref, b1_ref, w2_ref, sum_ref, sq_ref, *, hw, tile_p):
    """Pass 1: per-batch partial per-channel sum / sum-of-squares of h2."""
    t = pl.program_id(1)

    # Per-batch partial accumulator (output block indexed by n only): init at t == 0.
    @pl.when(t == 0)
    def _():
        sum_ref[...] = jnp.zeros_like(sum_ref)
        sq_ref[...] = jnp.zeros_like(sq_ref)

    h2 = _features(x_ref, w1_ref, b1_ref, w2_ref)        # (2*ndf, TILE_P)

    if hw % tile_p != 0:
        # Mask out padded pixels so BN stats use exactly N*H*W samples.
        pix = t * tile_p + jax.lax.broadcasted_iota(jnp.int32, (1, tile_p), 1)
        valid = (pix < hw).astype(jnp.float32)           # (1, TILE_P)
        h2m = h2 * valid
    else:
        h2m = h2

    sum_ref[...] += jnp.sum(h2m, axis=1, keepdims=True)[None]       # (1, 2*ndf, 1)
    sq_ref[...] += jnp.sum(h2m * h2, axis=1, keepdims=True)[None]


def _forward_kernel(x_ref, w1_ref, b1_ref, w2_ref, sum_ref, sq_ref,
                    gamma_ref, beta_ref, w3_ref, o_ref, *, count):
    """Pass 2: fused conv1 + lrelu + conv2 + (folded BN) + lrelu + conv3, per tile."""
    h2 = _features(x_ref, w1_ref, b1_ref, w2_ref)        # (2*ndf, TILE_P)

    # Fold BatchNorm to per-channel scale/shift in-kernel (tiny: 2*ndf elements;
    # rsqrt goes to the EUP slot, effectively free).  Sum the per-batch partials.
    inv = 1.0 / count                                    # static Python constant
    ch_sum = jnp.sum(sum_ref[...], axis=0)               # (2*ndf, 1)
    ch_sq = jnp.sum(sq_ref[...], axis=0)                 # (2*ndf, 1)
    mean = ch_sum * inv
    var = jnp.maximum(ch_sq * inv - mean * mean, 0.0)    # biased var, clamped >= 0
    scale = gamma_ref[...] * jax.lax.rsqrt(var + 1e-5)
    shift = beta_ref[...] - mean * scale

    h3 = _leaky_relu(h2 * scale + shift)
    # conv3 -> 1 channel: VPU broadcast-multiply + XLU sublane reduce.  Keeps the
    # output lane-dense (pixels on lanes) instead of an M=1 MXU matmul + (P,1) store.
    out = jnp.sum(h3 * w3_ref[...], axis=0, keepdims=True)          # (1, TILE_P)
    o_ref[...] = out.reshape(1, 1, -1).astype(o_ref.dtype)


def pixel_discriminator(x_nchw, params, *, tile_p_max=8192, compute_dtype=jnp.bfloat16):
    """x_nchw: (N, Cin, H, W).  Returns (N, 1, H, W) float32."""
    N, Cin, H, W = x_nchw.shape
    HW = H * W
    ndf2 = params["w2"].shape[0]

    # Pixel tile (lane axis): multiple of 128; big to amortize per-step overhead and
    # the per-step w2 MXU weight push.  hw_pad is always a multiple of tile_p.
    tile_p = min(tile_p_max, _round_up(HW, 128))
    hw_pad = _round_up(HW, tile_p)
    num_tiles = hw_pad // tile_p

    # NCHW -> (N, Cin, H*W) is a pure reshape: no HBM transpose, no cast pass.
    # Pad only in the uncommon case where the tile doesn't divide the pixel count.
    x = x_nchw.reshape(N, Cin, HW)
    if hw_pad != HW:
        x = jnp.pad(x, ((0, 0), (0, 0), (0, hw_pad - HW)))

    w1 = params["w1"].astype(jnp.float32)                # (ndf, Cin)
    b1 = params["b1"].astype(jnp.float32)                # (ndf, 1)
    w2 = params["w2"].astype(compute_dtype)              # (2*ndf, ndf)  bf16 for MXU
    gamma = params["gamma"].astype(jnp.float32)          # (2*ndf, 1)
    beta = params["beta"].astype(jnp.float32)            # (2*ndf, 1)
    w3 = params["w3"].astype(jnp.float32)                # (2*ndf, 1)

    def full(shape):
        nd = len(shape)
        return pl.BlockSpec(shape, lambda n, t: (0,) * nd)

    x_spec = pl.BlockSpec((1, Cin, tile_p), lambda n, t: (n, 0, t))

    def cparams(sem):
        # 32 MiB scoped VMEM: needed on v5e (16 MiB default) for 8192-lane tiles,
        # within the <=~48 MiB guidance for v7x's 64 MiB physical VMEM.
        return pltpu.CompilerParams(dimension_semantics=sem,
                                    vmem_limit_bytes=32 << 20)

    # ---- Pass 1: per-batch partial sum / sum-of-squares of h2 (N axis parallel so
    #      v7x megacore shards it; t is the reduction axis, kept last / arbitrary).
    sum_part, sq_part = pl.pallas_call(
        functools.partial(_bn_stats_kernel, hw=HW, tile_p=tile_p),
        grid=(N, num_tiles),
        in_specs=[x_spec, full(w1.shape), full(b1.shape), full(w2.shape)],
        out_specs=(pl.BlockSpec((1, ndf2, 1), lambda n, t: (n, 0, 0)),
                   pl.BlockSpec((1, ndf2, 1), lambda n, t: (n, 0, 0))),
        out_shape=(jax.ShapeDtypeStruct((N, ndf2, 1), jnp.float32),
                   jax.ShapeDtypeStruct((N, ndf2, 1), jnp.float32)),
        compiler_params=cparams(("parallel", "arbitrary")),
    )(x, w1, b1, w2)

    # ---- Pass 2: fully fused per-tile forward.  BN scale/shift computed in-kernel
    #      from the pass-1 partials (no XLA dispatch between the two kernels).
    out = pl.pallas_call(
        functools.partial(_forward_kernel, count=float(N * HW)),
        grid=(N, num_tiles),
        in_specs=[x_spec, full(w1.shape), full(b1.shape), full(w2.shape),
                  full(sum_part.shape), full(sq_part.shape),
                  full(gamma.shape), full(beta.shape), full(w3.shape)],
        out_specs=pl.BlockSpec((1, 1, tile_p), lambda n, t: (n, t, 0)),
        out_shape=jax.ShapeDtypeStruct((N, num_tiles, tile_p), jnp.float32),
        compiler_params=cparams(("parallel", "parallel")),
    )(x, w1, b1, w2, sum_part, sq_part, gamma, beta, w3)

    out = out.reshape(N, hw_pad)[:, :HW]
    return out.reshape(N, 1, H, W)


def init_params(key, input_nc, ndf=64):
    """Deterministic synthetic parameters (shapes match PixelDiscriminator).

    Conv weights stored channel-major (Cout, Cin) == PyTorch weight[:, :, 0, 0]."""
    k1, k2, k3, k4, k5, k6 = jax.random.split(key, 6)
    s = 0.1
    return {
        "w1": s * jax.random.normal(k1, (ndf, input_nc), jnp.float32),
        "b1": s * jax.random.normal(k2, (ndf, 1), jnp.float32),
        "w2": s * jax.random.normal(k3, (2 * ndf, ndf), jnp.float32),
        "gamma": 1.0 + s * jax.random.normal(k4, (2 * ndf, 1), jnp.float32),
        "beta": s * jax.random.normal(k5, (2 * ndf, 1), jnp.float32),
        "w3": s * jax.random.normal(k6, (2 * ndf, 1), jnp.float32),
    }


def _reference_matched(x_nchw, params, compute_dtype=jnp.bfloat16):
    """Pure-JAX reference mirroring the kernel's numerics (same casts / stat form)."""
    N, Cin, H, W = x_nchw.shape
    P = N * H * W
    xf = jnp.transpose(x_nchw.reshape(N, Cin, H * W), (1, 0, 2)).reshape(Cin, P)
    xf = xf.astype(jnp.float32)
    w1 = params["w1"].astype(jnp.float32)
    b1 = params["b1"].astype(jnp.float32)
    w2 = params["w2"].astype(compute_dtype)
    gamma, beta = params["gamma"], params["beta"]
    w3 = params["w3"].astype(jnp.float32)

    h1 = b1
    for k in range(Cin):
        h1 = h1 + w1[:, k:k + 1] * xf[k:k + 1, :]
    h1 = _leaky_relu(h1)
    h2 = jnp.dot(w2, h1.astype(compute_dtype), preferred_element_type=jnp.float32)
    inv = 1.0 / P
    mean = jnp.sum(h2, axis=1, keepdims=True) * inv
    var = jnp.maximum(jnp.sum(h2 * h2, axis=1, keepdims=True) * inv - mean * mean, 0.0)
    scale = gamma * jax.lax.rsqrt(var + 1e-5)
    shift = beta - mean * scale
    h3 = _leaky_relu(h2 * scale + shift)
    out = jnp.sum(h3 * w3, axis=0)                       # (P,)
    return out.reshape(N, H, W)[:, None, :, :]


def _reference_f32(x_nchw, params):
    """PyTorch-faithful full-f32 reference (training-mode BatchNorm, biased var)."""
    N, Cin, H, W = x_nchw.shape
    xf = jnp.transpose(x_nchw.reshape(N, Cin, H * W), (1, 0, 2)).reshape(Cin, -1)
    h1 = _leaky_relu(params["w1"] @ xf + params["b1"])
    h2 = params["w2"] @ h1
    mean = jnp.mean(h2, axis=1, keepdims=True)
    var = jnp.mean((h2 - mean) ** 2, axis=1, keepdims=True)
    h2 = (h2 - mean) * jax.lax.rsqrt(var + 1e-5) * params["gamma"] + params["beta"]
    out = jnp.sum(_leaky_relu(h2) * params["w3"], axis=0)
    return out.reshape(N, H, W)[:, None, :, :]


if __name__ == "__main__":
    key = jax.random.PRNGKey(0)
    kx, kp = jax.random.split(key)

    N, Cin, H, W = 2, 4, 16, 16     # P = N*H*W = 512
    ndf = 64

    x = jax.random.normal(kx, (N, Cin, H, W), jnp.float32)
    params = init_params(kp, Cin, ndf)

    out = jax.jit(pixel_discriminator)(x, params)
    out = jax.block_until_ready(out)
    assert out.shape == (N, 1, H, W), out.shape

    # Strict check against a reference with identical (bf16-matmul, f32-accum) numerics.
    ref_m = _reference_matched(x, params)
    assert jnp.allclose(out, ref_m, atol=2e-3, rtol=2e-3), (
        "mismatch vs matched-precision reference: "
        f"max abs diff {float(jnp.max(jnp.abs(out - ref_m)))}")

    # Looser check against the PyTorch-faithful full-f32 reference (bf16 rounding only).
    ref_f = _reference_f32(x, params)
    assert jnp.allclose(out, ref_f, atol=1e-1, rtol=1e-1), (
        "mismatch vs f32 reference: "
        f"max abs diff {float(jnp.max(jnp.abs(out - ref_f)))}")

    print("KERNEL_OK")
</pallas_src>

<mosaic_0001>
module attributes {stable_mosaic.version = 11 : i64} {
  func.func @_forward_kernel(%arg0: i32, %arg1: i32, %arg2: memref<1x4x256xf32, #tpu.memory_space<vmem>>, %arg3: memref<64x4xf32, #tpu.memory_space<vmem>>, %arg4: memref<64x1xf32, #tpu.memory_space<vmem>>, %arg5: memref<128x64xbf16, #tpu.memory_space<vmem>>, %arg6: memref<2x128x1xf32, #tpu.memory_space<vmem>>, %arg7: memref<2x128x1xf32, #tpu.memory_space<vmem>>, %arg8: memref<128x1xf32, #tpu.memory_space<vmem>>, %arg9: memref<128x1xf32, #tpu.memory_space<vmem>>, %arg10: memref<128x1xf32, #tpu.memory_space<vmem>>, %arg11: memref<1x1x256xf32, #tpu.memory_space<vmem>>) attributes {dimension_semantics = [#tpu.dimension_semantics<parallel>, #tpu.dimension_semantics<parallel>], iteration_bounds = array<i64: 2, 1>, scalar_prefetch = 0 : i64, scratch_operands = 0 : i64, tpu.core_type = #tpu.core_type<tc>, window_params = [{transform_indices = @transform_0, window_bounds = array<i64: 1, 4, 256>}, {pipeline_mode = #tpu.pipeline_mode<synchronous>, transform_indices = @transform_1, window_bounds = array<i64: 64, 4>}, {pipeline_mode = #tpu.pipeline_mode<synchronous>, transform_indices = @transform_2, window_bounds = array<i64: 64, 1>}, {pipeline_mode = #tpu.pipeline_mode<synchronous>, transform_indices = @transform_3, window_bounds = array<i64: 128, 64>}, {pipeline_mode = #tpu.pipeline_mode<synchronous>, transform_indices = @transform_4, window_bounds = array<i64: 2, 128, 1>}, {pipeline_mode = #tpu.pipeline_mode<synchronous>, transform_indices = @transform_5, window_bounds = array<i64: 2, 128, 1>}, {pipeline_mode = #tpu.pipeline_mode<synchronous>, transform_indices = @transform_6, window_bounds = array<i64: 128, 1>}, {pipeline_mode = #tpu.pipeline_mode<synchronous>, transform_indices = @transform_7, window_bounds = array<i64: 128, 1>}, {pipeline_mode = #tpu.pipeline_mode<synchronous>, transform_indices = @transform_8, window_bounds = array<i64: 128, 1>}, {transform_indices = @transform_9, window_bounds = array<i64: 1, 1, 256>}]} {
    %c0 = arith.constant 0 : index
    %c0_0 = arith.constant 0 : index
    %c0_1 = arith.constant 0 : index
    %0 = vector.load %arg2[%c0, %c0_0, %c0_1] : memref<1x4x256xf32, #tpu.memory_space<vmem>>, vector<1x4x256xf32>
    %1 = vector.shape_cast %0 : vector<1x4x256xf32> to vector<4x256xf32>
    %c0_2 = arith.constant 0 : index
    %c0_3 = arith.constant 0 : index
    %2 = vector.load %arg4[%c0_2, %c0_3] : memref<64x1xf32, #tpu.memory_space<vmem>>, vector<64x1xf32>
    %c0_4 = arith.constant 0 : index
    %c0_5 = arith.constant 0 : index
    %3 = vector.load %arg3[%c0_4, %c0_5] : memref<64x4xf32, #tpu.memory_space<vmem>>, vector<64x1xf32>
    %4 = vector.extract_strided_slice %1 {offsets = [0, 0], sizes = [1, 256], strides = [1, 1]} : vector<4x256xf32> to vector<1x256xf32>
    %5 = vector.broadcast %3 : vector<64x1xf32> to vector<64x256xf32>
    %6 = vector.broadcast %4 : vector<1x256xf32> to vector<64x256xf32>
    %7 = arith.mulf %5, %6 : vector<64x256xf32>
    %8 = vector.broadcast %2 : vector<64x1xf32> to vector<64x256xf32>
    %9 = arith.addf %8, %7 : vector<64x256xf32>
    %c0_6 = arith.constant 0 : index
    %c1 = arith.constant 1 : index
    %10 = vector.load %arg3[%c0_6, %c1] : memref<64x4xf32, #tpu.memory_space<vmem>>, vector<64x1xf32>
    %11 = vector.extract_strided_slice %1 {offsets = [1, 0], sizes = [1, 256], strides = [1, 1]} : vector<4x256xf32> to vector<1x256xf32>
    %12 = vector.broadcast %10 : vector<64x1xf32> to vector<64x256xf32>
    %13 = vector.broadcast %11 : vector<1x256xf32> to vector<64x256xf32>
    %14 = arith.mulf %12, %13 : vector<64x256xf32>
    %15 = arith.addf %9, %14 : vector<64x256xf32>
    %c0_7 = arith.constant 0 : index
    %c2 = arith.constant 2 : index
    %16 = vector.load %arg3[%c0_7, %c2] : memref<64x4xf32, #tpu.memory_space<vmem>>, vector<64x1xf32>
    %17 = vector.extract_strided_slice %1 {offsets = [2, 0], sizes = [1, 256], strides = [1, 1]} : vector<4x256xf32> to vector<1x256xf32>
    %18 = vector.broadcast %16 : vector<64x1xf32> to vector<64x256xf32>
    %19 = vector.broadcast %17 : vector<1x256xf32> to vector<64x256xf32>
    %20 = arith.mulf %18, %19 : vector<64x256xf32>
    %21 = arith.addf %15, %20 : vector<64x256xf32>
    %c0_8 = arith.constant 0 : index
    %c3 = arith.constant 3 : index
    %22 = vector.load %arg3[%c0_8, %c3] : memref<64x4xf32, #tpu.memory_space<vmem>>, vector<64x1xf32>
    %23 = vector.extract_strided_slice %1 {offsets = [3, 0], sizes = [1, 256], strides = [1, 1]} : vector<4x256xf32> to vector<1x256xf32>
    %24 = vector.broadcast %22 : vector<64x1xf32> to vector<64x256xf32>
    %25 = vector.broadcast %23 : vector<1x256xf32> to vector<64x256xf32>
    %26 = arith.mulf %24, %25 : vector<64x256xf32>
    %27 = arith.addf %21, %26 : vector<64x256xf32>
    %cst = arith.constant 0.000000e+00 : f32
    %28 = vector.broadcast %cst : f32 to vector<64x256xf32>
    %29 = arith.cmpf oge, %27, %28 : vector<64x256xf32>
    %cst_9 = arith.constant 2.000000e-01 : f32
    %30 = vector.broadcast %cst_9 : f32 to vector<64x256xf32>
    %31 = arith.mulf %30, %27 : vector<64x256xf32>
    %32 = arith.select %29, %27, %31 : vector<64x256xi1>, vector<64x256xf32>
    %c0_10 = arith.constant 0 : index
    %c0_11 = arith.constant 0 : index
    %33 = vector.load %arg5[%c0_10, %c0_11] : memref<128x64xbf16, #tpu.memory_space<vmem>>, vector<128x64xbf16>
    %34 = arith.truncf %32 : vector<64x256xf32> to vector<64x256xbf16>
    %cst_12 = arith.constant dense<0.000000e+00> : vector<128x256xf32>
    %35 = tpu.matmul %33, %34, %cst_12 {dimension_numbers = #tpu.dot_dimension_numbers<[1], [0], [0], [1], [0, 0, 1, 1], [], []>} : vector<128x64xbf16>, vector<64x256xbf16>, vector<128x256xf32> -> vector<128x256xf32>
    %c0_13 = arith.constant 0 : index
    %c0_14 = arith.constant 0 : index
    %c0_15 = arith.constant 0 : index
    %36 = vector.load %arg6[%c0_13, %c0_14, %c0_15] : memref<2x128x1xf32, #tpu.memory_space<vmem>>, vector<2x128x1xf32>
    %cst_16 = arith.constant dense<0.000000e+00> : vector<128x1xf32>
    %37 = vector.multi_reduction <add>, %36, %cst_16 [0] : vector<2x128x1xf32> to vector<128x1xf32>
    %c0_17 = arith.constant 0 : index
    %c0_18 = arith.constant 0 : index
    %c0_19 = arith.constant 0 : index
    %38 = vector.load %arg7[%c0_17, %c0_18, %c0_19] : memref<2x128x1xf32, #tpu.memory_space<vmem>>, vector<2x128x1xf32>
    %cst_20 = arith.constant dense<0.000000e+00> : vector<128x1xf32>
    %39 = vector.multi_reduction <add>, %38, %cst_20 [0] : vector<2x128x1xf32> to vector<128x1xf32>
    %cst_21 = arith.constant 0.001953125 : f32
    %40 = vector.broadcast %cst_21 : f32 to vector<128x1xf32>
    %41 = arith.mulf %37, %40 : vector<128x1xf32>
    %cst_22 = arith.constant 0.001953125 : f32
    %42 = vector.broadcast %cst_22 : f32 to vector<128x1xf32>
    %43 = arith.mulf %39, %42 : vector<128x1xf32>
    %44 = arith.mulf %41, %41 : vector<128x1xf32>
    %45 = arith.subf %43, %44 : vector<128x1xf32>
    %cst_23 = arith.constant 0.000000e+00 : f32
    %46 = vector.broadcast %cst_23 : f32 to vector<128x1xf32>
    %47 = arith.maximumf %45, %46 : vector<128x1xf32>
    %c0_24 = arith.constant 0 : index
    %c0_25 = arith.constant 0 : index
    %48 = vector.load %arg8[%c0_24, %c0_25] : memref<128x1xf32, #tpu.memory_space<vmem>>, vector<128x1xf32>
    %cst_26 = arith.constant 9.99999974E-6 : f32
    %49 = vector.broadcast %cst_26 : f32 to vector<128x1xf32>
    %50 = arith.addf %47, %49 : vector<128x1xf32>
    %51 = math.rsqrt %50 : vector<128x1xf32>
    %52 = arith.mulf %48, %51 : vector<128x1xf32>
    %c0_27 = arith.constant 0 : index
    %c0_28 = arith.constant 0 : index
    %53 = vector.load %arg9[%c0_27, %c0_28] : memref<128x1xf32, #tpu.memory_space<vmem>>, vector<128x1xf32>
    %54 = arith.mulf %41, %52 : vector<128x1xf32>
    %55 = arith.subf %53, %54 : vector<128x1xf32>
    %56 = vector.broadcast %52 : vector<128x1xf32> to vector<128x256xf32>
    %57 = arith.mulf %35, %56 : vector<128x256xf32>
    %58 = vector.broadcast %55 : vector<128x1xf32> to vector<128x256xf32>
    %59 = arith.addf %57, %58 : vector<128x256xf32>
    %cst_29 = arith.constant 0.000000e+00 : f32
    %60 = vector.broadcast %cst_29 : f32 to vector<128x256xf32>
    %61 = arith.cmpf oge, %59, %60 : vector<128x256xf32>
    %cst_30 = arith.constant 2.000000e-01 : f32
    %62 = vector.broadcast %cst_30 : f32 to vector<128x256xf32>
    %63 = arith.mulf %62, %59 : vector<128x256xf32>
    %64 = arith.select %61, %59, %63 : vector<128x256xi1>, vector<128x256xf32>
    %c0_31 = arith.constant 0 : index
    %c0_32 = arith.constant 0 : index
    %65 = vector.load %arg10[%c0_31, %c0_32] : memref<128x1xf32, #tpu.memory_space<vmem>>, vector<128x1xf32>
    %66 = vector.broadcast %65 : vector<128x1xf32> to vector<128x256xf32>
    %67 = arith.mulf %64, %66 : vector<128x256xf32>
    %cst_33 = arith.constant dense<0.000000e+00> : vector<256xf32>
    %68 = vector.multi_reduction <add>, %67, %cst_33 [0] : vector<128x256xf32> to vector<256xf32>
    %69 = vector.shape_cast %68 : vector<256xf32> to vector<1x256xf32>
    %70 = vector.shape_cast %69 : vector<1x256xf32> to vector<1x1x256xf32>
    %c0_34 = arith.constant 0 : index
    %c0_35 = arith.constant 0 : index
    %c0_36 = arith.constant 0 : index
    %71 = vector.load %arg11[%c0_34, %c0_35, %c0_36] : memref<1x1x256xf32, #tpu.memory_space<vmem>>, vector<1x1x256xf32>
    tpu.vector_store %arg11[%c0_34, %c0_35, %c0_36], %70 {strides = array<i32>} : memref<1x1x256xf32, #tpu.memory_space<vmem>>, vector<1x1x256xf32>,
    return
  }
  func.func @transform_0(%arg0: i32, %arg1: i32) -> (i32, i32, i32) {
    %c0_i32 = arith.constant 0 : i32
    %c0_i32_0 = arith.constant 0 : i32
    return %arg0, %c0_i32, %arg1 : i32, i32, i32
  }
  func.func @transform_1(%arg0: i32, %arg1: i32) -> (i32, i32) {
    %c0_i32 = arith.constant 0 : i32
    %c0_i32_0 = arith.constant 0 : i32
    %c0_i32_1 = arith.constant 0 : i32
    return %c0_i32, %c0_i32_0 : i32, i32
  }
  func.func @transform_2(%arg0: i32, %arg1: i32) -> (i32, i32) {
    %c0_i32 = arith.constant 0 : i32
    %c0_i32_0 = arith.constant 0 : i32
    %c0_i32_1 = arith.constant 0 : i32
    return %c0_i32, %c0_i32_0 : i32, i32
  }
  func.func @transform_3(%arg0: i32, %arg1: i32) -> (i32, i32) {
    %c0_i32 = arith.constant 0 : i32
    %c0_i32_0 = arith.constant 0 : i32
    %c0_i32_1 = arith.constant 0 : i32
    return %c0_i32, %c0_i32_0 : i32, i32
  }
  func.func @transform_4(%arg0: i32, %arg1: i32) -> (i32, i32, i32) {
    %c0_i32 = arith.constant 0 : i32
    %c0_i32_0 = arith.constant 0 : i32
    %c0_i32_1 = arith.constant 0 : i32
    %c0_i32_2 = arith.constant 0 : i32
    return %c0_i32, %c0_i32_0, %c0_i32_1 : i32, i32, i32
  }
  func.func @transform_5(%arg0: i32, %arg1: i32) -> (i32, i32, i32) {
    %c0_i32 = arith.constant 0 : i32
    %c0_i32_0 = arith.constant 0 : i32
    %c0_i32_1 = arith.constant 0 : i32
    %c0_i32_2 = arith.constant 0 : i32
    return %c0_i32, %c0_i32_0, %c0_i32_1 : i32, i32, i32
  }
  func.func @transform_6(%arg0: i32, %arg1: i32) -> (i32, i32) {
    %c0_i32 = arith.constant 0 : i32
    %c0_i32_0 = arith.constant 0 : i32
    %c0_i32_1 = arith.constant 0 : i32
    return %c0_i32, %c0_i32_0 : i32, i32
  }
  func.func @transform_7(%arg0: i32, %arg1: i32) -> (i32, i32) {
    %c0_i32 = arith.constant 0 : i32
    %c0_i32_0 = arith.constant 0 : i32
    %c0_i32_1 = arith.constant 0 : i32
    return %c0_i32, %c0_i32_0 : i32, i32
  }
  func.func @transform_8(%arg0: i32, %arg1: i32) -> (i32, i32) {
    %c0_i32 = arith.constant 0 : i32
    %c0_i32_0 = arith.constant 0 : i32
    %c0_i32_1 = arith.constant 0 : i32
    return %c0_i32, %c0_i32_0 : i32, i32
  }
  func.func @transform_9(%arg0: i32, %arg1: i32) -> (i32, i32, i32) {
    %c0_i32 = arith.constant 0 : i32
    %c0_i32_0 = arith.constant 0 : i32
    return %arg0, %arg1, %c0_i32 : i32, i32, i32
  }
}

module attributes {stable_mosaic.version = 11 : i64} {
  func.func @_bn_stats_kernel(%arg0: i32, %arg1: i32, %arg2: memref<1x4x256xf32, #tpu.memory_space<vmem>>, %arg3: memref<64x4xf32, #tpu.memory_space<vmem>>, %arg4: memref<64x1xf32, #tpu.memory_space<vmem>>, %arg5: memref<128x64xbf16, #tpu.memory_space<vmem>>, %arg6: memref<1x128x1xf32, #tpu.memory_space<vmem>>, %arg7: memref<1x128x1xf32, #tpu.memory_space<vmem>>) attributes {dimension_semantics = [#tpu.dimension_semantics<parallel>, #tpu.dimension_semantics<arbitrary>], iteration_bounds = array<i64: 2, 1>, scalar_prefetch = 0 : i64, scratch_operands = 0 : i64, tpu.core_type = #tpu.core_type<tc>, window_params = [{transform_indices = @transform_0, window_bounds = array<i64: 1, 4, 256>}, {pipeline_mode = #tpu.pipeline_mode<synchronous>, transform_indices = @transform_1, window_bounds = array<i64: 64, 4>}, {pipeline_mode = #tpu.pipeline_mode<synchronous>, transform_indices = @transform_2, window_bounds = array<i64: 64, 1>}, {pipeline_mode = #tpu.pipeline_mode<synchronous>, transform_indices = @transform_3, window_bounds = array<i64: 128, 64>}, {transform_indices = @transform_4, window_bounds = array<i64: 1, 128, 1>}, {transform_indices = @transform_5, window_bounds = array<i64: 1, 128, 1>}]} {
    %c0_i32 = arith.constant 0 : i32
    %0 = arith.cmpi eq, %arg1, %c0_i32 : i32
    %1 = arith.extui %0 : i1 to i32
    %c0_i32_0 = arith.constant 0 : i32
    %2 = arith.cmpi ne, %1, %c0_i32_0 : i32
    scf.if %2 {
      %cst_28 = arith.constant 0.000000e+00 : f32
      %52 = vector.broadcast %cst_28 : f32 to vector<1x128x1xf32>
      %c0_29 = arith.constant 0 : index
      %c0_30 = arith.constant 0 : index
      %c0_31 = arith.constant 0 : index
      %53 = vector.load %arg6[%c0_29, %c0_30, %c0_31] : memref<1x128x1xf32, #tpu.memory_space<vmem>>, vector<1x128x1xf32>
      tpu.vector_store %arg6[%c0_29, %c0_30, %c0_31], %52 {strides = array<i32>} : memref<1x128x1xf32, #tpu.memory_space<vmem>>, vector<1x128x1xf32>,
      %cst_32 = arith.constant 0.000000e+00 : f32
      %54 = vector.broadcast %cst_32 : f32 to vector<1x128x1xf32>
      %c0_33 = arith.constant 0 : index
      %c0_34 = arith.constant 0 : index
      %c0_35 = arith.constant 0 : index
      %55 = vector.load %arg7[%c0_33, %c0_34, %c0_35] : memref<1x128x1xf32, #tpu.memory_space<vmem>>, vector<1x128x1xf32>
      tpu.vector_store %arg7[%c0_33, %c0_34, %c0_35], %54 {strides = array<i32>} : memref<1x128x1xf32, #tpu.memory_space<vmem>>, vector<1x128x1xf32>,
    } else {
    }
    %c0 = arith.constant 0 : index
    %c0_1 = arith.constant 0 : index
    %c0_2 = arith.constant 0 : index
    %3 = vector.load %arg2[%c0, %c0_1, %c0_2] : memref<1x4x256xf32, #tpu.memory_space<vmem>>, vector<1x4x256xf32>
    %4 = vector.shape_cast %3 : vector<1x4x256xf32> to vector<4x256xf32>
    %c0_3 = arith.constant 0 : index
    %c0_4 = arith.constant 0 : index
    %5 = vector.load %arg4[%c0_3, %c0_4] : memref<64x1xf32, #tpu.memory_space<vmem>>, vector<64x1xf32>
    %c0_5 = arith.constant 0 : index
    %c0_6 = arith.constant 0 : index
    %6 = vector.load %arg3[%c0_5, %c0_6] : memref<64x4xf32, #tpu.memory_space<vmem>>, vector<64x1xf32>
    %7 = vector.extract_strided_slice %4 {offsets = [0, 0], sizes = [1, 256], strides = [1, 1]} : vector<4x256xf32> to vector<1x256xf32>
    %8 = vector.broadcast %6 : vector<64x1xf32> to vector<64x256xf32>
    %9 = vector.broadcast %7 : vector<1x256xf32> to vector<64x256xf32>
    %10 = arith.mulf %8, %9 : vector<64x256xf32>
    %11 = vector.broadcast %5 : vector<64x1xf32> to vector<64x256xf32>
    %12 = arith.addf %11, %10 : vector<64x256xf32>
    %c0_7 = arith.constant 0 : index
    %c1 = arith.constant 1 : index
    %13 = vector.load %arg3[%c0_7, %c1] : memref<64x4xf32, #tpu.memory_space<vmem>>, vector<64x1xf32>
    %14 = vector.extract_strided_slice %4 {offsets = [1, 0], sizes = [1, 256], strides = [1, 1]} : vector<4x256xf32> to vector<1x256xf32>
    %15 = vector.broadcast %13 : vector<64x1xf32> to vector<64x256xf32>
    %16 = vector.broadcast %14 : vector<1x256xf32> to vector<64x256xf32>
    %17 = arith.mulf %15, %16 : vector<64x256xf32>
    %18 = arith.addf %12, %17 : vector<64x256xf32>
    %c0_8 = arith.constant 0 : index
    %c2 = arith.constant 2 : index
    %19 = vector.load %arg3[%c0_8, %c2] : memref<64x4xf32, #tpu.memory_space<vmem>>, vector<64x1xf32>
    %20 = vector.extract_strided_slice %4 {offsets = [2, 0], sizes = [1, 256], strides = [1, 1]} : vector<4x256xf32> to vector<1x256xf32>
    %21 = vector.broadcast %19 : vector<64x1xf32> to vector<64x256xf32>
    %22 = vector.broadcast %20 : vector<1x256xf32> to vector<64x256xf32>
    %23 = arith.mulf %21, %22 : vector<64x256xf32>
    %24 = arith.addf %18, %23 : vector<64x256xf32>
    %c0_9 = arith.constant 0 : index
    %c3 = arith.constant 3 : index
    %25 = vector.load %arg3[%c0_9, %c3] : memref<64x4xf32, #tpu.memory_space<vmem>>, vector<64x1xf32>
    %26 = vector.extract_strided_slice %4 {offsets = [3, 0], sizes = [1, 256], strides = [1, 1]} : vector<4x256xf32> to vector<1x256xf32>
    %27 = vector.broadcast %25 : vector<64x1xf32> to vector<64x256xf32>
    %28 = vector.broadcast %26 : vector<1x256xf32> to vector<64x256xf32>
    %29 = arith.mulf %27, %28 : vector<64x256xf32>
    %30 = arith.addf %24, %29 : vector<64x256xf32>
    %cst = arith.constant 0.000000e+00 : f32
    %31 = vector.broadcast %cst : f32 to vector<64x256xf32>
    %32 = arith.cmpf oge, %30, %31 : vector<64x256xf32>
    %cst_10 = arith.constant 2.000000e-01 : f32
    %33 = vector.broadcast %cst_10 : f32 to vector<64x256xf32>
    %34 = arith.mulf %33, %30 : vector<64x256xf32>
    %35 = arith.select %32, %30, %34 : vector<64x256xi1>, vector<64x256xf32>
    %c0_11 = arith.constant 0 : index
    %c0_12 = arith.constant 0 : index
    %36 = vector.load %arg5[%c0_11, %c0_12] : memref<128x64xbf16, #tpu.memory_space<vmem>>, vector<128x64xbf16>
    %37 = arith.truncf %35 : vector<64x256xf32> to vector<64x256xbf16>
    %cst_13 = arith.constant dense<0.000000e+00> : vector<128x256xf32>
    %38 = tpu.matmul %36, %37, %cst_13 {dimension_numbers = #tpu.dot_dimension_numbers<[1], [0], [0], [1], [0, 0, 1, 1], [], []>} : vector<128x64xbf16>, vector<64x256xbf16>, vector<128x256xf32> -> vector<128x256xf32>
    %c0_14 = arith.constant 0 : index
    %c0_15 = arith.constant 0 : index
    %c0_16 = arith.constant 0 : index
    %39 = vector.load %arg6[%c0_14, %c0_15, %c0_16] : memref<1x128x1xf32, #tpu.memory_space<vmem>>, vector<1x128x1xf32>
    %cst_17 = arith.constant dense<0.000000e+00> : vector<128xf32>
    %40 = vector.multi_reduction <add>, %38, %cst_17 [1] : vector<128x256xf32> to vector<128xf32>
    %41 = vector.shape_cast %40 : vector<128xf32> to vector<128x1xf32>
    %42 = vector.shape_cast %41 : vector<128x1xf32> to vector<1x128x1xf32>
    %43 = arith.addf %39, %42 : vector<1x128x1xf32>
    %c0_18 = arith.constant 0 : index
    %c0_19 = arith.constant 0 : index
    %c0_20 = arith.constant 0 : index
    %44 = vector.load %arg6[%c0_18, %c0_19, %c0_20] : memref<1x128x1xf32, #tpu.memory_space<vmem>>, vector<1x128x1xf32>
    tpu.vector_store %arg6[%c0_18, %c0_19, %c0_20], %43 {strides = array<i32>} : memref<1x128x1xf32, #tpu.memory_space<vmem>>, vector<1x128x1xf32>,
    %c0_21 = arith.constant 0 : index
    %c0_22 = arith.constant 0 : index
    %c0_23 = arith.constant 0 : index
    %45 = vector.load %arg7[%c0_21, %c0_22, %c0_23] : memref<1x128x1xf32, #tpu.memory_space<vmem>>, vector<1x128x1xf32>
    %46 = arith.mulf %38, %38 : vector<128x256xf32>
    %cst_24 = arith.constant dense<0.000000e+00> : vector<128xf32>
    %47 = vector.multi_reduction <add>, %46, %cst_24 [1] : vector<128x256xf32> to vector<128xf32>
    %48 = vector.shape_cast %47 : vector<128xf32> to vector<128x1xf32>
    %49 = vector.shape_cast %48 : vector<128x1xf32> to vector<1x128x1xf32>
    %50 = arith.addf %45, %49 : vector<1x128x1xf32>
    %c0_25 = arith.constant 0 : index
    %c0_26 = arith.constant 0 : index
    %c0_27 = arith.constant 0 : index
    %51 = vector.load %arg7[%c0_25, %c0_26, %c0_27] : memref<1x128x1xf32, #tpu.memory_space<vmem>>, vector<1x128x1xf32>
    tpu.vector_store %arg7[%c0_25, %c0_26, %c0_27], %50 {strides = array<i32>} : memref<1x128x1xf32, #tpu.memory_space<vmem>>, vector<1x128x1xf32>,
    return
  }
  func.func @transform_0(%arg0: i32, %arg1: i32) -> (i32, i32, i32) {
    %c0_i32 = arith.constant 0 : i32
    %c0_i32_0 = arith.constant 0 : i32
    return %arg0, %c0_i32, %arg1 : i32, i32, i32
  }
  func.func @transform_1(%arg0: i32, %arg1: i32) -> (i32, i32) {
    %c0_i32 = arith.constant 0 : i32
    %c0_i32_0 = arith.constant 0 : i32
    %c0_i32_1 = arith.constant 0 : i32
    return %c0_i32, %c0_i32_0 : i32, i32
  }
  func.func @transform_2(%arg0: i32, %arg1: i32) -> (i32, i32) {
    %c0_i32 = arith.constant 0 : i32
    %c0_i32_0 = arith.constant 0 : i32
    %c0_i32_1 = arith.constant 0 : i32
    return %c0_i32, %c0_i32_0 : i32, i32
  }
  func.func @transform_3(%arg0: i32, %arg1: i32) -> (i32, i32) {
    %c0_i32 = arith.constant 0 : i32
    %c0_i32_0 = arith.constant 0 : i32
    %c0_i32_1 = arith.constant 0 : i32
    return %c0_i32, %c0_i32_0 : i32, i32
  }
  func.func @transform_4(%arg0: i32, %arg1: i32) -> (i32, i32, i32) {
    %c0_i32 = arith.constant 0 : i32
    %c0_i32_0 = arith.constant 0 : i32
    %c0_i32_1 = arith.constant 0 : i32
    return %arg0, %c0_i32, %c0_i32_0 : i32, i32, i32
  }
  func.func @transform_5(%arg0: i32, %arg1: i32) -> (i32, i32, i32) {
    %c0_i32 = arith.constant 0 : i32
    %c0_i32_0 = arith.constant 0 : i32
    %c0_i32_1 = arith.constant 0 : i32
    return %arg0, %c0_i32, %c0_i32_0 : i32, i32, i32
  }
}

</mosaic_0001>

<bundles_post_ra>
// kernel: pixel_discriminator.3
= control target key start
LH: loop header
LB: loop body
LE: loop exit
PB: predicated region body
PF: predicated region fallthrough
CT: control target
= control target key end

     0   :  { %s2260_s30 = smov 0   ;;  %s2262_s10 = smov 0   ;;  %s3734_s0 = inlined_call_operand.vmem [shape: f32[2,4,256], index: 0, kind: input, shape index: {}]   ;;  %s3735_s1 = inlined_call_operand.vmem [shape: f32[64,4], index: 1, kind: input, shape index: {}]   ;;  %s3736_s2 = inlined_call_operand.vmem [shape: f32[64,1], index: 2, kind: input, shape index: {}]   ;;  %s3737_s3 = inlined_call_operand.vmem [shape: bf16[128,64], index: 3, kind: input, shape index: {}]   ;;  %s3738_s4 = inlined_call_operand.vmem [shape: f32[2,128,1], index: 4, kind: input, shape index: {}]   ;;  %s3739_s5 = inlined_call_operand.vmem [shape: f32[2,128,1], index: 5, kind: input, shape index: {}]   ;;  %s3740_s6 = inlined_call_operand.vmem [shape: f32[128,1], index: 6, kind: input, shape index: {}]   ;;  %s3741_s7 = inlined_call_operand.vmem [shape: f32[128,1], index: 7, kind: input, shape index: {}]   ;;  %s3742_s8 = inlined_call_operand.vmem [shape: f32[128,1], index: 8, kind: input, shape index: {}]   ;;  %s3743_s9 = inlined_call_operand.vmem [shape: f32[2,1,256], index: 9, kind: output, shape index: {}]  }
   0x1   :  { %s2264_s11 = smov 0  }
   0x2 LB: > { %s31_s12 = sadd.s32 1, %s2200_s10  ;;  %p2036_p0 = scmp.ge.s32.totalorder %s2204_s11, 1  ;;  %s2204_s11 = sphi %s2264_s11, %s19_s11   ;;  %s2200_s10 = sphi %s2262_s10, %s3791_s10   ;;  %s2196_s30 = sphi %s2260_s30, %s3790_s30  }
   0x3   : > { %p33_p1 = scmp.ge.s32.totalorder %s31_s12, 2  ;;  %p308_p2 = scmp.lt.s32.totalorder %s2204_s11, 3 }
   0x5   : > { %s3793_s12 = smov (%p33_p1, %s31_s12), 0  ;;  %p309_p3 = pnand %p2036_p0, %p308_p2 }
   0x7   : > { %312 = sbr.rel (%p309_p3) target bundleno = 483 (0x1e3), region = 56 }
   0xc   : > { %v2283_v0 = vld [vmem:[%s3735_s1 + $0x20] sm:$0xff]  ;;  %v2288_v1 = vld [vmem:[%s3735_s1 + $0x10] sm:$0xff]  ;;  %v2206_v3 = vmov 0   ;;  %v2304_v4 = vld [vmem:[%s3735_s1 + $0x28] sm:$0xff]  ;;  %v2207_v17 = vmov 1   ;;  %vm983_vm0 = vcmask 7168  }
   0xd   : > { %v2293_v2 = vld [vmem:[%s3735_s1] sm:$0xff]  ;;  %2137 = vset.pattern.permute.xlu2 %v2206_v3  ;;  %2136 = vset.pattern.permute.xlu1 %v2206_v3  ;;  %v2309_v5 = vld [vmem:[%s3735_s1 + $0x18] sm:$0xff]  ;;  %v2314_v6 = vld [vmem:[%s3735_s1 + $0x8] sm:$0xff]  ;;  %p352_p4 = scmp.lt.s32.totalorder %s2196_s30, 1 }
   0xe   : > { %2135 = vset.pattern.permute.xlu0 %v2206_v3  ;;  %409 = vperm.xlu2 %2137, %v2283_v0   ;;  %v371_v7 = vld [vmem:[%s3736_s2] sm:$0xff]  ;;  %v2325_v8 = vld [vmem:[%s3735_s1 + $0x38] sm:$0xff]  ;;  %v2330_v9 = vld [vmem:[%s3735_s1 + $0x30] sm:$0xff] }
   0xf   : > { %399 = vperm.xlu1 %2136, %v2288_v1   ;;  %389 = vperm.xlu0 %2135, %v2293_v2   ;;  %v374_v10 = vld [vmem:[%s3736_s2 + $0x18] sm:$0xff]  ;;  %v373_v11 = vld [vmem:[%s3736_s2 + $0x10] sm:$0xff]  ;;  %v372_v12 = vld [vmem:[%s3736_s2 + $0x8] sm:$0xff]  ;;  %s3795_s30 = smov (!%p352_p4, %s2196_s30), 1 }
  0x10   : > { %v377_v13 = vld [vmem:[%s3736_s2 + $0x30] sm:$0xff]  ;;  %v376_v14 = vld [vmem:[%s3736_s2 + $0x28] sm:$0xff]  ;;  %v375_v15 = vld [vmem:[%s3736_s2 + $0x20] sm:$0xff]  ;;  %s2090_s22 = sshll.u32 %s3795_s30, 3  ;;  %s2039_s17 = sshll.u32 %s3795_s30, 1 }
  0x11   : > { %v378_v16 = vld [vmem:[%s3736_s2 + $0x38] sm:$0xff]  ;;  %v953_v18 = vld [vmem:[%s3738_s4 + $0x10] sm:$0xff]  ;;  %v951_v40 = vld [vmem:[%s3738_s4] sm:$0xff]  ;;  %s359_s27 = scalar_lea.vmem %s3734_s0, %s2090_s22  ;;  %s368_s20 = scalar_lea.vmem %s3743_s9, %s2039_s17 }
  0x12   : > { %v969_v19 = vld [vmem:[%s3738_s4 + $0x90] sm:$0xff]  ;;  %v990_v20 = vsel %vm983_vm0, %v953_v18, 0.0  ;;  %v958_v32 = vld [vmem:[%s3738_s4 + $0x38] sm:$0xff]  ;;  %v967_v43 = vld [vmem:[%s3738_s4 + $0x80] sm:$0xff]  ;;  %v984_v44 = vsel %vm983_vm0, %v951_v40, 0.0 }
  0x13   : > { %v991_v21 = vsel %vm983_vm0, %v969_v19, 0.0  ;;  %v1034_v23 = vld [vmem:[%s3739_s5 + $0x10] sm:$0xff]  ;;  %v974_v33 = vld [vmem:[%s3738_s4 + $0xb8] sm:$0xff]  ;;  %v1005_v34 = vsel %vm983_vm0, %v958_v32, 0.0  ;;  %v952_v45 = vld [vmem:[%s3738_s4 + $0x8] sm:$0xff]  ;;  %v985_v50 = vsel %vm983_vm0, %v967_v43, 0.0 }
  0x14   : > { %v992_v22 = vadd.f32 %v991_v21, %v990_v20  ;;  %v1050_v24 = vld [vmem:[%s3739_s5 + $0x90] sm:$0xff]  ;;  %v1070_v25 = vsel %vm983_vm0, %v1034_v23, 0.0  ;;  %v1006_v35 = vsel %vm983_vm0, %v974_v33, 0.0  ;;  %v1039_v38 = vld [vmem:[%s3739_s5 + $0x38] sm:$0xff]  ;;  %v968_v46 = vld [vmem:[%s3738_s4 + $0x88] sm:$0xff]  ;;  %v986_v53 = vadd.f32 %v985_v50, %v984_v44 }
  0x15   : > { %v1071_v26 = vsel %vm983_vm0, %v1050_v24, 0.0  ;;  %v1007_v37 = vadd.f32 %v1006_v35, %v1005_v34  ;;  %v1055_v39 = vld [vmem:[%s3739_s5 + $0xb8] sm:$0xff]  ;;  %v1085_v41 = vsel %vm983_vm0, %v1039_v38, 0.0  ;;  %v1032_v51 = vld [vmem:[%s3739_s5] sm:$0xff]  ;;  %v987_v56 = vsel %vm983_vm0, %v952_v45, 0.0  ;;  %v1033_v57 = vld [vmem:[%s3739_s5 + $0x8] sm:$0xff] }
  0x16   : > { %414 = vperm.xlu2 %2137, %v2304_v4   ;;  %v1072_v27 = vadd.f32 %v1071_v26, %v1070_v25  ;;  %v2373_v28 = vmul.f32 0.001953125, %v992_v22  ;;  %v1086_v42 = vsel %vm983_vm0, %v1055_v39, 0.0  ;;  %v1048_v52 = vld [vmem:[%s3739_s5 + $0x80] sm:$0xff]  ;;  %v1064_v54 = vsel %vm983_vm0, %v1032_v51, 0.0  ;;  %v1049_v58 = vld [vmem:[%s3739_s5 + $0x88] sm:$0xff]  ;;  %v1042_v23 = vld [vmem:[%s3739_s5 + $0x50] sm:$0xff] }
  0x17   : > { %404 = vperm.xlu1 %2136, %v2309_v5   ;;  %394 = vperm.xlu0 %2135, %v2314_v6   ;;  %v1087_v48 = vadd.f32 %v1086_v42, %v1085_v41  ;;  %v2411_v49 = vmul.f32 0.001953125, %v1007_v37  ;;  %v1065_v55 = vsel %vm983_vm0, %v1048_v52, 0.0  ;;  %v2432_v62 = vmul.f32 0.001953125, %v986_v53  ;;  %v1058_v24 = vld [vmem:[%s3739_s5 + $0xd0] sm:$0xff]  ;;  %v1035_v39 = vld [vmem:[%s3739_s5 + $0x18] sm:$0xff]  ;;  %v955_v50 = vld [vmem:[%s3738_s4 + $0x20] sm:$0xff] }
  0x18   : > { %v1130_v29 = vmul.f32 0.001953125, %v1072_v27  ;;  %v1146_v30 = vmul.f32 %v2373_v28, %v2373_v28  ;;  %v1066_v61 = vadd.f32 %v1065_v55, %v1064_v54  ;;  %v988_v63 = vsel %vm983_vm0, %v968_v46, 0.0  ;;  %v954_v27 = vld [vmem:[%s3738_s4 + $0x18] sm:$0xff]  ;;  %v971_v51 = vld [vmem:[%s3738_s4 + $0xa0] sm:$0xff] }
  0x19   : > { %v1135_v59 = vmul.f32 0.001953125, %v1087_v48  ;;  %v1151_v60 = vmul.f32 %v2411_v49, %v2411_v49  ;;  %v1094_v33 = vsel %vm983_vm0, %v1042_v23, 0.0  ;;  %v1095_v34 = vsel %vm983_vm0, %v1058_v24, 0.0  ;;  %v1051_v40 = vld [vmem:[%s3739_s5 + $0x98] sm:$0xff] }
  0x1a   : > { %v1162_v31 = vsub.f32 %v1130_v29, %v1146_v30  ;;  %v970_v29 = vld [vmem:[%s3738_s4 + $0x98] sm:$0xff]  ;;  %v1096_v37 = vadd.f32 %v1095_v34, %v1094_v33  ;;  %v993_v42 = vsel %vm983_vm0, %v954_v27, 0.0  ;;  %v2208_v52 = vmov 2   ;;  %v1045_v27 = vld [vmem:[%s3739_s5 + $0x68] sm:$0xff] }
  0x1b   : > { %v994_v43 = vsel %vm983_vm0, %v970_v29, 0.0  ;;  %v1073_v55 = vsel %vm983_vm0, %v1035_v39, 0.0 }
  0x1c   : > { %v1178_v36 = vmax.f32 %v1162_v31, 0.0  ;;  %v1138_v46 = vmul.f32 0.001953125, %v1096_v37  ;;  %v995_v54 = vadd.f32 %v994_v43, %v993_v42  ;;  %v1103_v43 = vsel %vm983_vm0, %v1045_v27, 0.0 }
  0x1e   : > { %452 = vperm.xlu2 %2137, %v371_v7   ;;  %v2409_v47 = vadd.f32 1e-05, %v1178_v36  ;;  %v1067_v7 = vsel %vm983_vm0, %v1033_v57, 0.0 }
  0x1f   : > { %424 = vperm.xlu1 %2136, %v2325_v8   ;;  %419 = vperm.xlu0 %2135, %v2330_v9  }
  0x20   : > { %2150 = vrsqrt.f32 %v2409_v47  ;;  %vm1250_vm1 = vweird.f32 %v2409_v47 }
  0x26   : > { %467 = vperm.xlu2 %2137, %v374_v10   ;;  %v1068_v10 = vsel %vm983_vm0, %v1049_v58, 0.0  ;;  %v2464_v30 = vpop.eup %2150 }
  0x27   : > { %462 = vperm.xlu1 %2136, %v373_v11   ;;  %457 = vperm.xlu0 %2135, %v372_v12   ;;  %v1167_v11 = vsub.f32 %v1135_v59, %v1151_v60  ;;  %v1128_v12 = vmul.f32 0.001953125, %v1066_v61  ;;  %v1245_v35 = vmul.f32 %v2464_v30, %v2409_v47  ;;  %v2505_v61 = vmul.f32 0.001953125, %v995_v54  ;;  %v956_v47 = vld [vmem:[%s3738_s4 + $0x28] sm:$0xff] }
  0x28   : > { %vm1251_vm2 = vweird.f32 %v2464_v30 }
  0x29   : > { %v1183_v19 = vmax.f32 %v1167_v11, 0.0  ;;  %v1246_v44 = vmul.f32 %v2464_v30, %v1245_v35  ;;  %v1061_v35 = vld [vmem:[%s3739_s5 + $0xe8] sm:$0xff]  ;;  %vm2581_vm3 = vmor %vm1250_vm1, %vm1251_vm2 }
  0x2b   : > { %v2466_v31 = vadd.f32 1e-05, %v1183_v19  ;;  %v1247_v57 = vmul.f32 0.5, %v1246_v44 }
  0x2d   : > { %2152 = vrsqrt.f32 %v2466_v31  ;;  %vm1300_vm4 = vweird.f32 %v2466_v31 }
  0x2e   : > { %482 = vperm.xlu2 %2137, %v377_v13   ;;  %v989_v13 = vadd.f32 %v988_v63, %v987_v56  ;;  %v1074_v56 = vsel %vm983_vm0, %v1051_v40, 0.0  ;;  %v996_v63 = vsel %vm983_vm0, %v955_v50, 0.0  ;;  %v1104_v50 = vsel %vm983_vm0, %v1061_v35, 0.0 }
  0x2f   : > { %477 = vperm.xlu1 %2136, %v376_v14   ;;  %472 = vperm.xlu0 %2135, %v375_v15   ;;  %v1069_v14 = vadd.f32 %v1068_v10, %v1067_v7  ;;  %v961_v15 = vld [vmem:[%s3738_s4 + $0x50] sm:$0xff]  ;;  %v1075_v59 = vadd.f32 %v1074_v56, %v1073_v55  ;;  %v997_v7 = vsel %vm983_vm0, %v971_v51, 0.0  ;;  %v1036_v10 = vld [vmem:[%s3739_s5 + $0x20] sm:$0xff]  ;;  %v1105_v56 = vadd.f32 %v1104_v50, %v1103_v43  ;;  %v1199_v43 = vld [vmem:[%s3740_s6 + $0x38] sm:$0xff] }
  0x30   : > { %v1014_v18 = vsel %vm983_vm0, %v961_v15, 0.0  ;;  %v2449_v20 = vmul.f32 0.001953125, %v989_v13  ;;  %v1147_v15 = vmul.f32 %v2505_v61, %v2505_v61 }
  0x31   : > { %v1129_v21 = vmul.f32 0.001953125, %v1069_v14  ;;  %v1131_v14 = vmul.f32 0.001953125, %v1075_v59 }
  0x32   : > { %v1145_v32 = vmul.f32 %v2449_v20, %v2449_v20 }
  0x33   : > { %v2520_v13 = vpop.eup %2152  ;;  %v1163_v23 = vsub.f32 %v1131_v14, %v1147_v15  ;;  %v972_v15 = vld [vmem:[%s3738_s4 + $0xa8] sm:$0xff] }
  0x34   : > { %v1161_v41 = vsub.f32 %v1129_v21, %v1145_v32  ;;  %v1076_v21 = vsel %vm983_vm0, %v1036_v10, 0.0  ;;  %vm1301_vm5 = vweird.f32 %v2520_v13 }
  0x35   : > { %v1179_v37 = vmax.f32 %v1163_v23, 0.0  ;;  %vm2612_vm6 = vmor %vm1300_vm4, %vm1301_vm5  ;;  %v1054_v23 = vld [vmem:[%s3739_s5 + $0xb0] sm:$0xff] }
  0x36   : > { %2139 = vset.pattern.permute.xlu2 %v2207_v17  ;;  %v1177_v53 = vmax.f32 %v1161_v41, 0.0 }
  0x37   : > { %2138 = vset.pattern.permute.xlu1 %v2207_v17  ;;  %487 = vperm.xlu0 %2135, %v378_v16   ;;  %v977_v16 = vld [vmem:[%s3738_s4 + $0xd0] sm:$0xff] }
  0x38   : > { %507 = vperm.xlu1 %2138, %v2293_v2   ;;  %511 = vperm.xlu2 %2139, %v2314_v6   ;;  %v1015_v22 = vsel %vm983_vm0, %v977_v16, 0.0  ;;  %v2503_v60 = vadd.f32 1e-05, %v1177_v53  ;;  %v998_v16 = vadd.f32 %v997_v7, %v996_v63 }
  0x39   : > { %v1016_v26 = vadd.f32 %v1015_v22, %v1014_v18  ;;  %v1295_v18 = vmul.f32 %v2520_v13, %v2466_v31  ;;  %v1248_v22 = vsub.f32 1.5, %v1247_v57  ;;  %v1194_v31 = vld [vmem:[%s3740_s6 + $0x10] sm:$0xff] }
  0x3a   : > { %vm1240_vm9 = vweird.f32 %v2503_v60 }
  0x3b   : > { %v2474_v38 = vmul.f32 0.001953125, %v1016_v26  ;;  %v980_v26 = vld [vmem:[%s3738_s4 + $0xe8] sm:$0xff]  ;;  %v1296_v32 = vmul.f32 %v2520_v13, %v1295_v18  ;;  %v1249_v55 = vmul.f32 %v2464_v30, %v1248_v22 }
  0x3c   : > { %v1024_v42 = vsel %vm983_vm0, %v980_v26, 0.0 }
  0x3d   : > { %v1154_v48 = vmul.f32 %v2474_v38, %v2474_v38  ;;  %v1297_v40 = vmul.f32 0.5, %v1296_v32  ;;  %v1253_v22 = vsel %vm2581_vm3, %v2464_v30, %v1249_v55  ;;  %v2209_v30 = vmov 3  }
  0x3f   : > { %2140 = vset.pattern.permute.xlu0 %v2207_v17  ;;  %v1144_v17 = vmul.f32 %v2432_v62, %v2432_v62  ;;  %v1170_v58 = vsub.f32 %v1138_v46, %v1154_v48  ;;  %v2567_v46 = vadd.f32 1e-05, %v1179_v37  ;;  %v1298_v51 = vsub.f32 1.5, %v1297_v40 }
  0x40   : > { %519 = vperm.xlu1 %2138, %v2309_v5   ;;  %515 = vperm.xlu0 %2140, %v2288_v1  }
  0x41   : > { %523 = vperm.xlu2 %2139, %v2283_v0   ;;  %v1160_v25 = vsub.f32 %v1128_v12, %v1144_v17  ;;  %v1186_v11 = vmax.f32 %v1170_v58, 0.0  ;;  %v1052_v12 = vld [vmem:[%s3739_s5 + $0xa0] sm:$0xff]  ;;  %v964_v17 = vld [vmem:[%s3738_s4 + $0x68] sm:$0xff]  ;;  %vm1260_vm14 = vweird.f32 %v2567_v46 }
  0x42   : > { %v1077_v24 = vsel %vm983_vm0, %v1052_v12, 0.0  ;;  %v1023_v34 = vsel %vm983_vm0, %v964_v17, 0.0  ;;  %v2577_v58 = vld [vmem:[%s359_s27] sm:$0xff]  ;;  %v1299_v12 = vmul.f32 %v2520_v13, %v1298_v51  ;;  %v1053_v17 = vld [vmem:[%s3739_s5 + $0xa8] sm:$0xff] }
  0x43   : > { %v1176_v36 = vmax.f32 %v1160_v25, 0.0  ;;  %v2530_v19 = vadd.f32 1e-05, %v1186_v11  ;;  %v2534_v25 = vmul.f32 0.001953125, %v998_v16  ;;  %v1078_v33 = vadd.f32 %v1077_v24, %v1076_v21  ;;  %v1037_v16 = vld [vmem:[%s3739_s5 + $0x28] sm:$0xff] }
  0x44   : > { %v1025_v48 = vadd.f32 %v1024_v42, %v1023_v34  ;;  %v428_v18 = vperm.slane %v2577_v58, 0  ;;  %v429_v21 = vperm.slane %v2577_v58, 4  ;;  %v1141_v24 = vmul.f32 0.001953125, %v1105_v56 }
  0x45   : > { %v2487_v45 = vadd.f32 1e-05, %v1176_v36  ;;  %v1148_v39 = vmul.f32 %v2534_v25, %v2534_v25  ;;  %v1132_v41 = vmul.f32 0.001953125, %v1078_v33  ;;  %v999_v33 = vsel %vm983_vm0, %v956_v47, 0.0 }
  0x46   : > { %v2588_v7 = vmul.f32 0.001953125, %v1025_v48  ;;  %v1079_v37 = vsel %vm983_vm0, %v1037_v16, 0.0  ;;  %v1303_v40 = vsel %vm2612_vm6, %v2520_v13, %v1299_v12  ;;  %vm1330_vm11 = vweird.f32 %v2530_v19 }
  0x47   : > { %2154 = vrsqrt.f32 %v2487_v45  ;;  %v1164_v54 = vsub.f32 %v1132_v41, %v1148_v39  ;;  %v1080_v39 = vsel %vm983_vm0, %v1053_v17, 0.0  ;;  %vm1230_vm7 = vweird.f32 %v2487_v45  ;;  %v973_v17 = vld [vmem:[%s3738_s4 + $0xb0] sm:$0xff] }
  0x48   : > { %527 = vperm.xlu1 %2138, %v2304_v4   ;;  %535 = vperm.xlu0 %2140, %v2325_v8   ;;  %2156 = vrsqrt.f32 %v2503_v60  ;;  %v1157_v32 = vmul.f32 %v2588_v7, %v2588_v7  ;;  %v1081_v51 = vadd.f32 %v1080_v39, %v1079_v37 }
  0x49   : > { %531 = vperm.xlu2 %2139, %v2330_v9   ;;  %2158 = vrsqrt.f32 %v2530_v19  ;;  %v1180_v11 = vmax.f32 %v1164_v54, 0.0 }
  0x4a   : > { %2160 = vrsqrt.f32 %v2567_v46  ;;  %v1173_v48 = vsub.f32 %v1141_v24, %v1157_v32 }
  0x4b   : > { %v2617_v27 = vadd.f32 1e-05, %v1180_v11 }
  0x4c   : > { %v1189_v56 = vmax.f32 %v1173_v48, 0.0 }
  0x4d   : > { %v2542_v29 = vpop.eup %2154  ;;  %2162 = vrsqrt.f32 %v2617_v27  ;;  %vm1270_vm4 = vweird.f32 %v2617_v27 }
  0x4e   : > { %v1225_v36 = vmul.f32 %v2542_v29, %v2487_v45  ;;  %v2559_v44 = vpop.eup %2156  ;;  %vm1231_vm8 = vweird.f32 %v2542_v29 }
  0x4f   : > { %v1235_v53 = vmul.f32 %v2559_v44, %v2503_v60  ;;  %v2575_v57 = vpop.eup %2158  ;;  %vm1241_vm10 = vweird.f32 %v2559_v44  ;;  %vm2705_vm13 = vmor %vm1230_vm7, %vm1231_vm8  ;;  %v1056_v60 = vld [vmem:[%s3739_s5 + $0xc0] sm:$0xff] }
  0x50   : > { %2141 = vset.pattern.permute.xlu1 %v2208_v52  ;;  %2143 = vset.pattern.permute.xlu0 %v2208_v52  ;;  %v1325_v10 = vmul.f32 %v2575_v57, %v2530_v19  ;;  %v2622_v34 = vpop.eup %2160  ;;  %vm1331_vm12 = vweird.f32 %v2575_v57  ;;  %vm2719_vm15 = vmor %vm1240_vm9, %vm1241_vm10 }
  0x51   : > { %2142 = vset.pattern.permute.xlu2 %v2208_v52  ;;  %577 = vperm.xlu1 %2141, %v2293_v2   ;;  %v1226_v52 = vmul.f32 %v2542_v29, %v1225_v36  ;;  %v1236_v63 = vmul.f32 %v2559_v44, %v1235_v53  ;;  %v1000_v36 = vsel %vm983_vm0, %v972_v15, 0.0  ;;  %v1255_v42 = vmul.f32 %v2622_v34, %v2567_v46  ;;  %vm2741_vm2 = vmor %vm1330_vm11, %vm1331_vm12  ;;  %v960_v46 = vld [vmem:[%s3738_s4 + $0x48] sm:$0xff] }
  0x52   : > { %585 = vperm.xlu0 %2143, %v2288_v1   ;;  %581 = vperm.xlu2 %2142, %v2314_v6   ;;  %v1326_v35 = vmul.f32 %v2575_v57, %v1325_v10  ;;  %v1001_v50 = vadd.f32 %v1000_v36, %v999_v33  ;;  %v2646_v53 = vmul.f32 %v1253_v22, %v1194_v31  ;;  %v1133_v15 = vmul.f32 0.001953125, %v1081_v51  ;;  %v959_v33 = vld [vmem:[%s3738_s4 + $0x40] sm:$0xff] }
  0x53   : > { %v1227_v14 = vmul.f32 0.5, %v1226_v52  ;;  %v1237_v26 = vmul.f32 0.5, %v1236_v63  ;;  %v2642_v52 = vperm.slane %v428_v18, 0  ;;  %v1256_v55 = vmul.f32 %v2622_v34, %v1255_v42  ;;  %v957_v63 = vld [vmem:[%s3738_s4 + $0x30] sm:$0xff]  ;;  %v2682_v24 = vpop.eup %2162 }
  0x54   : > { %v1327_v54 = vmul.f32 0.5, %v1326_v35  ;;  %v2649_v59 = vmul.f32 0.001953125, %v1001_v50  ;;  %v2654_v10 = vmul.f32 %v1303_v40, %v1199_v43  ;;  %v1038_v18 = vld [vmem:[%s3739_s5 + $0x30] sm:$0xff]  ;;  %v1002_v22 = vsel %vm983_vm0, %v957_v63, 0.0  ;;  %v975_v35 = vld [vmem:[%s3738_s4 + $0xc0] sm:$0xff] }
  0x55   : > { %v1228_v41 = vsub.f32 1.5, %v1227_v14  ;;  %v1238_v13 = vsub.f32 1.5, %v1237_v26  ;;  %v1257_v12 = vmul.f32 0.5, %v1256_v55  ;;  %v2663_v14 = vadd.f32 1e-05, %v1189_v56  ;;  %v1040_v43 = vld [vmem:[%s3739_s5 + $0x40] sm:$0xff] }
  0x56   : > { %v1149_v16 = vmul.f32 %v2649_v59, %v2649_v59  ;;  %v1328_v26 = vsub.f32 1.5, %v1327_v54  ;;  %v1082_v31 = vsel %vm983_vm0, %v1038_v18, 0.0  ;;  %v1008_v42 = vsel %vm983_vm0, %v959_v33, 0.0  ;;  %v1193_v33 = vld [vmem:[%s3740_s6 + $0x8] sm:$0xff] }
  0x57   : > { %v2657_v11 = vmul.f32 %v2542_v29, %v1228_v41  ;;  %2164 = vrsqrt.f32 %v2663_v14  ;;  %v1258_v36 = vsub.f32 1.5, %v1257_v12  ;;  %vm1261_vm1 = vweird.f32 %v2622_v34 }
  0x58   : > { %v1165_v32 = vsub.f32 %v1133_v15, %v1149_v16  ;;  %v1009_v51 = vsel %vm983_vm0, %v975_v35, 0.0  ;;  %v1088_v18 = vsel %vm983_vm0, %v1040_v43, 0.0  ;;  %vm2762_vm3 = vmor %vm1260_vm14, %vm1261_vm1  ;;  %vm1271_vm5 = vweird.f32 %v2682_v24  ;;  %v1195_v35 = vld [vmem:[%s3740_s6 + $0x18] sm:$0xff] }
  0x59   : > { %589 = vperm.xlu1 %2141, %v2309_v5   ;;  %v1010_v56 = vadd.f32 %v1009_v51, %v1008_v42  ;;  %v1259_v16 = vmul.f32 %v2622_v34, %v1258_v36  ;;  %vm2819_vm6 = vmor %vm1270_vm4, %vm1271_vm5  ;;  %vm1360_vm7 = vweird.f32 %v2663_v14 }
  0x5a   : > { %605 = vperm.xlu0 %2143, %v2325_v8   ;;  %593 = vperm.xlu2 %2142, %v2283_v0   ;;  %v1181_v37 = vmax.f32 %v1165_v32, 0.0 }
  0x5b   : > { %v1263_v36 = vsel %vm2762_vm3, %v2622_v34, %v1259_v16 }
  0x5c   : > { %v2724_v48 = vadd.f32 1e-05, %v1181_v37 }
  0x5d   : > { %v2733_v63 = vpop.eup %2164 }
  0x5e   : > { %2166 = vrsqrt.f32 %v2724_v48  ;;  %v1355_v32 = vmul.f32 %v2733_v63, %v2663_v14  ;;  %vm1361_vm8 = vweird.f32 %v2733_v63  ;;  %vm1280_vm9 = vweird.f32 %v2724_v48 }
  0x5f   : > { %vm2886_vm10 = vmor %vm1360_vm7, %vm1361_vm8 }
  0x61   : > { %597 = vperm.xlu1 %2141, %v2304_v4  }
  0x62   : > { %2146 = vset.pattern.permute.xlu0 %v2209_v30  ;;  %601 = vperm.xlu2 %2142, %v2330_v9  }
  0x63   : > { %655 = vperm.xlu0 %2146, %v2288_v1   ;;  %v2644_v1 = vperm.slane %v429_v21, 0  ;;  %v2674_v21 = vmul.f32 %v2559_v44, %v1238_v13  ;;  %v1329_v13 = vmul.f32 %v2575_v57, %v1328_v26 }
  0x64   : > { %v2807_v42 = vpop.eup %2166 }
  0x65   : > { %v1243_v19 = vsel %vm2719_vm15, %v2559_v44, %v2674_v21  ;;  %v2771_v44 = vmul.f32 0.001953125, %v1010_v56  ;;  %v976_v21 = vld [vmem:[%s3738_s4 + $0xc8] sm:$0xff]  ;;  %v1275_v56 = vmul.f32 %v2807_v42, %v2724_v48  ;;  %vm1281_vm11 = vweird.f32 %v2807_v42 }
  0x66   : > { %v2811_v45 = vmul.f32 %v1243_v19, %v1193_v33  ;;  %v1059_v33 = vld [vmem:[%s3739_s5 + $0xd8] sm:$0xff] }
  0x68   : > { %v2661_v47 = vpop.permute.xlu2 %409 }
  0x69   : > { %2144 = vset.pattern.permute.xlu1 %v2209_v30 }
  0x6a   : > { %2145 = vset.pattern.permute.xlu2 %v2209_v30  ;;  %647 = vperm.xlu1 %2144, %v2293_v2   ;;  %v1265_v30 = vmul.f32 %v2682_v24, %v2617_v27  ;;  %v1003_v2 = vsel %vm983_vm0, %v973_v17, 0.0  ;;  %v1057_v27 = vld [vmem:[%s3739_s5 + $0xc8] sm:$0xff] }
  0x6b   : > { %675 = vperm.xlu0 %2146, %v2325_v8   ;;  %651 = vperm.xlu2 %2145, %v2314_v6   ;;  %v1004_v39 = vadd.f32 %v1003_v2, %v1002_v22  ;;  %v1083_v8 = vsel %vm983_vm0, %v1054_v23, 0.0  ;;  %v1233_v22 = vsel %vm2705_vm13, %v2542_v29, %v2657_v11  ;;  %v1089_v11 = vsel %vm983_vm0, %v1056_v60, 0.0  ;;  %v962_v60 = vld [vmem:[%s3738_s4 + $0x58] sm:$0xff]  ;;  %vm2985_vm13 = vmor %vm1280_vm9, %vm1281_vm11 }
  0x6c   : > { %v1266_v40 = vmul.f32 %v2682_v24, %v1265_v30  ;;  %v1084_v41 = vadd.f32 %v1083_v8, %v1082_v31  ;;  %v1202_v30 = vld [vmem:[%s3740_s6 + $0x50] sm:$0xff]  ;;  %v1333_v2 = vsel %vm2741_vm2, %v2575_v57, %v1329_v13  ;;  %v1090_v31 = vadd.f32 %v1089_v11, %v1088_v18  ;;  %v1196_v11 = vld [vmem:[%s3740_s6 + $0x20] sm:$0xff] }
  0x6d   : > { %v2726_v50 = vmul.f32 0.001953125, %v1004_v39  ;;  %v1152_v57 = vmul.f32 %v2771_v44, %v2771_v44  ;;  %v2813_v51 = vmul.f32 %v1333_v2, %v1202_v30  ;;  %v538_v23 = vperm.slane %v2577_v58, 1 }
  0x6e   : > { %v1267_v54 = vmul.f32 0.5, %v1266_v40  ;;  %v1134_v55 = vmul.f32 0.001953125, %v1084_v41  ;;  %v1136_v6 = vmul.f32 0.001953125, %v1090_v31  ;;  %v1011_v40 = vsel %vm983_vm0, %v960_v46, 0.0 }
  0x6f   : > { %v1150_v17 = vmul.f32 %v2726_v50, %v2726_v50  ;;  %v1012_v41 = vsel %vm983_vm0, %v976_v21, 0.0  ;;  %v1092_v21 = vsel %vm983_vm0, %v1057_v27, 0.0  ;;  %v539_v30 = vperm.slane %v2577_v58, 5 }
  0x70   : > { %v2735_v12 = vpop.permute.xlu2 %414  ;;  %v1268_v26 = vsub.f32 1.5, %v1267_v54  ;;  %v1041_v54 = vld [vmem:[%s3739_s5 + $0x48] sm:$0xff]  ;;  %v1013_v18 = vadd.f32 %v1012_v41, %v1011_v40  ;;  %v2899_v41 = vperm.slane %v538_v23, 1 }
  0x71   : > { %v1166_v29 = vsub.f32 %v1134_v55, %v1150_v17  ;;  %v2828_v55 = vmul.f32 %v1263_v36, %v1195_v35  ;;  %v1168_v17 = vsub.f32 %v1136_v6, %v1152_v57  ;;  %v1098_v6 = vsel %vm983_vm0, %v1059_v33, 0.0 }
  0x72   : > { %659 = vperm.xlu1 %2144, %v2309_v5   ;;  %v1192_v5 = vld [vmem:[%s3740_s6] sm:$0xff]  ;;  %v1269_v37 = vmul.f32 %v2682_v24, %v1268_v26  ;;  %v1276_v26 = vmul.f32 %v2807_v42, %v1275_v56  ;;  %v2908_v27 = vperm.slane %v539_v30, 1 }
  0x73   : > { %663 = vperm.xlu2 %2145, %v2283_v0   ;;  %2149 = vset.pattern.permute.xlu0 %v2206_v3  ;;  %v1356_v0 = vmul.f32 %v2733_v63, %v1355_v32  ;;  %v1182_v39 = vmax.f32 %v1166_v29, 0.0  ;;  %v2809_v43 = vmul.f32 %v1233_v22, %v1192_v5  ;;  %v978_v22 = vld [vmem:[%s3738_s4 + $0xd8] sm:$0xff]  ;;  %v1091_v32 = vsel %vm983_vm0, %v1041_v54, 0.0  ;;  %v963_v54 = vld [vmem:[%s3738_s4 + $0x60] sm:$0xff] }
  0x74   : > { %1460 = vperm.xlu0 %2149, %v2646_v53   ;;  %v1273_v19 = vsel %vm2819_vm6, %v2682_v24, %v1269_v37  ;;  %v1043_v29 = vld [vmem:[%s3739_s5 + $0x58] sm:$0xff]  ;;  %v1184_v46 = vmax.f32 %v1168_v17, 0.0  ;;  %v2860_v24 = vmul.f32 0.001953125, %v1013_v18  ;;  %v1017_v5 = vsel %vm983_vm0, %v962_v60, 0.0  ;;  %v979_v56 = vld [vmem:[%s3738_s4 + $0xe0] sm:$0xff]  ;;  %v1205_v18 = vld [vmem:[%s3740_s6 + $0x68] sm:$0xff] }
  0x75   : > { %v1357_v8 = vmul.f32 0.5, %v1356_v0  ;;  %v2823_v13 = vadd.f32 1e-05, %v1182_v39  ;;  %v1093_v2 = vadd.f32 %v1092_v21, %v1091_v32  ;;  %v1018_v0 = vsel %vm983_vm0, %v978_v22, 0.0  ;;  %v2893_v39 = vld [vmem:[%s3741_s7] sm:$0xff] }
  0x76   : > { %v2876_v35 = vadd.f32 1e-05, %v1184_v46  ;;  %v1019_v36 = vadd.f32 %v1018_v0, %v1017_v5  ;;  %v2880_v37 = vmul.f32 %v1273_v19, %v1196_v11  ;;  %v1277_v34 = vmul.f32 0.5, %v1276_v26 }
  0x77   : > { %v1358_v16 = vsub.f32 1.5, %v1357_v8  ;;  %2168 = vrsqrt.f32 %v2823_v13  ;;  %v1137_v57 = vmul.f32 0.001953125, %v1093_v2  ;;  %v1097_v8 = vsel %vm983_vm0, %v1043_v29, 0.0 }
  0x78   : > { %v2840_v15 = vpop.permute.xlu2 %452  ;;  %2170 = vrsqrt.f32 %v2876_v35  ;;  %v1099_v14 = vadd.f32 %v1098_v6, %v1097_v8  ;;  %vm1290_vm12 = vweird.f32 %v2823_v13  ;;  %v2924_v23 = vmul.f32 0.001953125, %v1019_v36 }
  0x79   : > { %v1359_v31 = vmul.f32 %v2733_v63, %v1358_v16  ;;  %v1020_v46 = vsel %vm983_vm0, %v963_v54, 0.0  ;;  %v1021_v21 = vsel %vm983_vm0, %v979_v56, 0.0  ;;  %v1278_v30 = vsub.f32 1.5, %v1277_v34  ;;  %v965_v34 = vld [vmem:[%s3738_s4 + $0x70] sm:$0xff] }
  0x7a   : > { %667 = vperm.xlu1 %2144, %v2304_v4   ;;  %v2870_v4 = vmul.f32 %v2809_v43, %v2432_v62  ;;  %v1139_v2 = vmul.f32 0.001953125, %v1099_v14  ;;  %v1155_v36 = vmul.f32 %v2924_v23, %v2924_v23  ;;  %v1060_v62 = vld [vmem:[%s3739_s5 + $0xe0] sm:$0xff]  ;;  %v981_v56 = vld [vmem:[%s3738_s4 + $0xf0] sm:$0xff]  ;;  %vm1310_vm15 = vweird.f32 %v2876_v35 }
  0x7b   : > { %671 = vperm.xlu2 %2145, %v2330_v9   ;;  %v1153_v9 = vmul.f32 %v2860_v24, %v2860_v24  ;;  %v1363_v22 = vsel %vm2886_vm10, %v2733_v63, %v1359_v31  ;;  %v1044_v63 = vld [vmem:[%s3739_s5 + $0x60] sm:$0xff]  ;;  %v1027_v48 = vsel %vm983_vm0, %v981_v56, 0.0 }
  0x7c   : > { %1485 = vperm.xlu0 %2149, %v2654_v10   ;;  %v2939_v0 = vmul.f32 %v1363_v22, %v1205_v18  ;;  %v1100_v6 = vsel %vm983_vm0, %v1044_v63, 0.0  ;;  %v1171_v18 = vsub.f32 %v1139_v2, %v1155_v36  ;;  %v1101_v22 = vsel %vm983_vm0, %v1060_v62, 0.0 }
  0x7d   : > { %v2897_v40 = vpop.eup %2168  ;;  %v1169_v16 = vsub.f32 %v1137_v57, %v1153_v9 }
  0x7e   : > { %v1285_v60 = vmul.f32 %v2897_v40, %v2823_v13  ;;  %3764 = vst [vmem:[#allocation2_spill] sm:$0xff] %v2939_v0  ;;  %v2948_v57 = vpop.eup %2170  ;;  %vm1291_vm14 = vweird.f32 %v2897_v40  ;;  %v1187_v63 = vmax.f32 %v1171_v18, 0.0  ;;  %v1062_v13 = vld [vmem:[%s3739_s5 + $0xf0] sm:$0xff] }
  0x7f   : > { %v1185_v11 = vmax.f32 %v1169_v16, 0.0  ;;  %v1305_v54 = vmul.f32 %v2948_v57, %v2876_v35  ;;  %v2976_v16 = vld [vmem:[%s3741_s7 + $0x18] sm:$0xff]  ;;  %vm3013_vm1 = vmor %vm1290_vm12, %vm1291_vm14  ;;  %vm1311_vm2 = vweird.f32 %v2948_v57 }
  0x80   : > { %v2913_v17 = vpop.permute.xlu2 %467  ;;  %v1286_v29 = vmul.f32 %v2897_v40, %v1285_v60  ;;  %v1279_v60 = vmul.f32 %v2807_v42, %v1278_v30  ;;  %vm3074_vm3 = vmor %vm1310_vm15, %vm1311_vm2 }
  0x81   : > { %v2926_v26 = vpop.permute.xlu1 %399  ;;  %v390_v32 = vpop.permute.xlu0 %389  ;;  %v2941_v9 = vadd.f32 1e-05, %v1185_v11  ;;  %v1102_v11 = vadd.f32 %v1101_v22, %v1100_v6 }
  0x82   : > { %v434_v5 = vmul.f32 %v2642_v52, %v390_v32  ;;  %v435_v33 = vmul.f32 %v2644_v1, %v390_v32  ;;  %2147 = vset.pattern.permute.xlu1 %v2206_v3  ;;  %v1287_v31 = vmul.f32 0.5, %v1286_v29  ;;  %v1306_v29 = vmul.f32 %v2948_v57, %v1305_v54 }
  0x83   : > { %2148 = vset.pattern.permute.xlu2 %v2206_v3  ;;  %1450 = vperm.xlu1 %2147, %v2809_v43   ;;  %v1022_v43 = vadd.f32 %v1021_v21, %v1020_v46  ;;  %2172 = vrsqrt.f32 %v2941_v9  ;;  %v1026_v46 = vsel %vm983_vm0, %v965_v34, 0.0  ;;  %v1140_v62 = vmul.f32 0.001953125, %v1102_v11 }
  0x84   : > { %v2951_v8 = vadd.f32 %v2840_v15, %v434_v5  ;;  %v2954_v3 = vadd.f32 %v2840_v15, %v435_v33  ;;  %1455 = vperm.xlu2 %2148, %v2811_v45   ;;  %1500 = vperm.xlu0 %2149, %v2813_v51   ;;  %v1288_v14 = vsub.f32 1.5, %v1287_v31  ;;  %v2967_v15 = vmul.f32 %v2828_v55, %v2505_v61 }
  0x85   : > { %v2979_v32 = vmul.f32 0.001953125, %v1022_v43  ;;  %v1307_v31 = vmul.f32 0.5, %v1306_v29  ;;  %v1046_v43 = vld [vmem:[%s3739_s5 + $0x70] sm:$0xff]  ;;  %v1283_v54 = vsel %vm2985_vm13, %v2807_v42, %v1279_v60  ;;  %v1028_v56 = vadd.f32 %v1027_v48, %v1026_v46 }
  0x86   : > { %v1289_v2 = vmul.f32 %v2897_v40, %v1288_v14  ;;  %v3021_v22 = vmul.f32 %v2642_v52, %v2926_v26  ;;  %v3024_v61 = vadd.f32 1e-05, %v1187_v63  ;;  %v1106_v63 = vsel %vm983_vm0, %v1046_v43, 0.0  ;;  %v966_v14 = vld [vmem:[%s3738_s4 + $0x78] sm:$0xff] }
  0x87   : > { %v1156_v5 = vmul.f32 %v2979_v32, %v2979_v32  ;;  %v1308_v29 = vsub.f32 1.5, %v1307_v31  ;;  %v3057_v43 = vmul.f32 0.001953125, %v1028_v56  ;;  %vm1320_vm4 = vweird.f32 %v2941_v9 }
  0x88   : > { %v2992_v21 = vpop.permute.xlu2 %482  ;;  %2174 = vrsqrt.f32 %v3024_v61  ;;  %vm1340_vm7 = vweird.f32 %v3024_v61 }
  0x89   : > { %v405_v33 = vpop.permute.xlu1 %404  ;;  %v395_v30 = vpop.permute.xlu0 %394  ;;  %v1172_v42 = vsub.f32 %v1140_v62, %v1156_v5  ;;  %v1198_v5 = vld [vmem:[%s3740_s6 + $0x30] sm:$0xff]  ;;  %v1107_v62 = vsel %vm983_vm0, %v1062_v13, 0.0  ;;  %3771 = vst [vmem:[#allocation5_spill] sm:$0xff] %v3057_v43 }
  0x8a   : > { %v440_v6 = vmul.f32 %v2642_v52, %v405_v33  ;;  %v441_v34 = vmul.f32 %v2644_v1, %v405_v33  ;;  %v3017_v18 = vpop.eup %2172  ;;  %v3053_v33 = vmul.f32 %v2644_v1, %v2926_v26  ;;  %v982_v26 = vld [vmem:[%s3738_s4 + $0xf8] sm:$0xff]  ;;  %v436_v13 = vmul.f32 %v2642_v52, %v395_v30 }
  0x8b   : > { %1465 = vperm.xlu1 %2147, %v2828_v55   ;;  %v1197_v55 = vld [vmem:[%s3740_s6 + $0x28] sm:$0xff]  ;;  %v1315_v46 = vmul.f32 %v3017_v18, %v2941_v9  ;;  %v1188_v48 = vmax.f32 %v1172_v42, 0.0  ;;  %vm1321_vm5 = vweird.f32 %v3017_v18  ;;  %v437_v19 = vmul.f32 %v2644_v1, %v395_v30 }
  0x8c   : > { %v3030_v60 = vadd.f32 %v2913_v17, %v440_v6  ;;  %v3033_v11 = vadd.f32 %v2913_v17, %v441_v34  ;;  %1470 = vperm.xlu2 %2148, %v2880_v37   ;;  %1515 = vperm.xlu0 %2149, %v2939_v0   ;;  %v1293_v17 = vsel %vm3013_vm1, %v2897_v40, %v1289_v2  ;;  %vm3120_vm6 = vmor %vm1320_vm4, %vm1321_vm5 }
  0x8d   : > { %v1316_v31 = vmul.f32 %v3017_v18, %v1315_v46  ;;  %v3059_v6 = vmul.f32 %v1283_v54, %v1197_v55  ;;  %v1309_v34 = vmul.f32 %v2948_v57, %v1308_v29  ;;  %v3062_v40 = vadd.f32 1e-05, %v1188_v48 }
  0x8e   : > { %3769 = vst [vmem:[#allocation3_spill] sm:$0xff] %v3030_v60  ;;  %v1108_v2 = vadd.f32 %v1107_v62, %v1106_v63  ;;  %v3070_v42 = vmul.f32 %v1293_v17, %v1198_v5  ;;  %v1158_v29 = vmul.f32 %v3057_v43, %v3057_v43  ;;  %v1029_v48 = vsel %vm983_vm0, %v966_v14, 0.0  ;;  %v1047_v62 = vld [vmem:[%s3739_s5 + $0x78] sm:$0xff]  ;;  %v3093_v36 = vpop.eup %2174 }
  0x8f   : > { %3770 = vst [vmem:[#allocation4_spill] sm:$0xff] %v3033_v11  ;;  %v1317_v56 = vmul.f32 0.5, %v1316_v31  ;;  %2176 = vrsqrt.f32 %v3062_v40  ;;  %v1030_v31 = vsel %vm983_vm0, %v982_v26, 0.0  ;;  %v1313_v14 = vsel %vm3074_vm3, %v2948_v57, %v1309_v34  ;;  %v1063_v11 = vld [vmem:[%s3739_s5 + $0xf8] sm:$0xff] }
  0x90   : > { %v1142_v35 = vmul.f32 0.001953125, %v1108_v2  ;;  %v1200_v2 = vld [vmem:[%s3740_s6 + $0x40] sm:$0xff]  ;;  %v3774_v43 = vsub.f32 %v2893_v39, %v2870_v4  ;;  %v1335_v34 = vmul.f32 %v3093_v36, %v3024_v61  ;;  %v1109_v54 = vsel %vm983_vm0, %v1047_v62, 0.0 }
  0x91   : > { %v3082_v55 = vpop.permute.xlu1 %424  ;;  %v420_v46 = vpop.permute.xlu0 %419  ;;  %vm1350_vm9 = vweird.f32 %v3062_v40 }
  0x92   : > { %v446_v63 = vmul.f32 %v2642_v52, %v420_v46  ;;  %v447_v5 = vmul.f32 %v2644_v1, %v420_v46  ;;  %v512_v17 = vpop.permute.xlu2 %511  ;;  %v1318_v46 = vsub.f32 1.5, %v1317_v56  ;;  %v1174_v26 = vsub.f32 %v1142_v35, %v1158_v29 }
  0x93   : > { %1475 = vperm.xlu1 %2147, %v3059_v6   ;;  %v546_v9 = vmul.f32 %v2899_v41, %v512_v17  ;;  %v3133_v56 = vmul.f32 %v1313_v14, %v1200_v2  ;;  %v1336_v29 = vmul.f32 %v3093_v36, %v1335_v34  ;;  %v1110_v35 = vsel %vm983_vm0, %v1063_v11, 0.0 }
  0x94   : > { %v3107_v60 = vadd.f32 %v2992_v21, %v446_v63  ;;  %v3110_v30 = vadd.f32 %v2992_v21, %v447_v5  ;;  %1480 = vperm.xlu2 %2148, %v3070_v42   ;;  %1562 = vperm.xlu0 %2149, %v3774_v43   ;;  %v1201_v21 = vld [vmem:[%s3740_s6 + $0x48] sm:$0xff]  ;;  %v1319_v4 = vmul.f32 %v3017_v18, %v1318_v46  ;;  %v1190_v39 = vmax.f32 %v1174_v26, 0.0 }
  0x95   : > { %v1031_v43 = vadd.f32 %v1030_v31, %v1029_v48  ;;  %v3137_v63 = vpop.eup %2176  ;;  %v1111_v46 = vadd.f32 %v1110_v35, %v1109_v54  ;;  %v547_v31 = vmul.f32 %v2908_v27, %v512_v17  ;;  %v1337_v2 = vmul.f32 0.5, %v1336_v29 }
  0x96   : > { %v1323_v5 = vsel %vm3120_vm6, %v3017_v18, %v1319_v4  ;;  %v3142_v0 = vadd.f32 1e-05, %v1190_v39  ;;  %v1345_v14 = vmul.f32 %v3137_v63, %v3062_v40  ;;  %vm1341_vm0 = vweird.f32 %v3093_v36  ;;  %v1204_v40 = vld [vmem:[%s3740_s6 + $0x60] sm:$0xff] }
  0x97   : > { %v3144_v48 = vmul.f32 0.001953125, %v1031_v43  ;;  %v3147_v62 = vmul.f32 %v1323_v5, %v1201_v21  ;;  %v1143_v18 = vmul.f32 0.001953125, %v1111_v46  ;;  %v1338_v43 = vsub.f32 1.5, %v1337_v2  ;;  %vm3172_vm8 = vmor %vm1340_vm7, %vm1341_vm0 }
  0x98   : > { %2178 = vrsqrt.f32 %v3142_v0  ;;  %v1346_v54 = vmul.f32 %v3137_v63, %v1345_v14  ;;  %vm1351_vm10 = vweird.f32 %v3137_v63  ;;  %v445_v2 = vmul.f32 %v2644_v1, %v2735_v12 }
  0x99   : > { %v463_v11 = vpop.permute.xlu1 %462  ;;  %v458_v26 = vpop.permute.xlu0 %457  ;;  %v1159_v57 = vmul.f32 %v3144_v48, %v3144_v48  ;;  %vm3207_vm11 = vmor %vm1350_vm9, %vm1351_vm10  ;;  %vm1370_vm12 = vweird.f32 %v3142_v0 }
  0x9a   : > { %v3156_v34 = vadd.f32 %v463_v11, %v3021_v22  ;;  %v3159_v17 = vadd.f32 %v463_v11, %v3053_v33  ;;  %v492_v21 = vadd.f32 %v458_v26, %v436_v13  ;;  %v493_v4 = vadd.f32 %v458_v26, %v437_v19  ;;  %v1203_v13 = vld [vmem:[%s3740_s6 + $0x58] sm:$0xff] }
  0x9b   : > { %v524_v39 = vpop.permute.xlu2 %523  ;;  %1490 = vperm.xlu1 %2147, %v3133_v56   ;;  %v1175_v29 = vsub.f32 %v1143_v18, %v1159_v57  ;;  %v1422_v19 = vmul.f32 %v3070_v42, %v2726_v50  ;;  %v3779_v33 = vsub.f32 %v2976_v16, %v2967_v15  ;;  %v1347_v61 = vmul.f32 0.5, %v1346_v54  ;;  %v1406_v16 = vld [vmem:[%s3741_s7 + $0x30] sm:$0xff] }
  0x9c   : > { %v3163_v35 = vadd.f32 %v546_v9, %v492_v21  ;;  %v3165_v5 = vadd.f32 %v547_v31, %v493_v4  ;;  %1495 = vperm.xlu2 %2148, %v3147_v62   ;;  %v1339_v9 = vmul.f32 %v3093_v36, %v1338_v43  ;;  %v442_v31 = vmul.f32 %v2642_v52, %v2661_v47 }
  0x9d   : > { %1577 = vperm.xlu0 %2149, %v3779_v33   ;;  %v1191_v46 = vmax.f32 %v1175_v29, 0.0  ;;  %v443_v50 = vmul.f32 %v2644_v1, %v2661_v47  ;;  %v444_v15 = vmul.f32 %v2642_v52, %v2735_v12  ;;  %v1348_v11 = vsub.f32 1.5, %v1347_v61 }
  0x9e   : > { %v2179_v42 = vpop.eup %2178  ;;  %v1343_v14 = vsel %vm3172_vm8, %v3093_v36, %v1339_v9  ;;  %v552_v18 = vmul.f32 %v2899_v41, %v524_v39  ;;  %v553_v47 = vmul.f32 %v2908_v27, %v524_v39  ;;  %v1438_v54 = vsub.f32 %v1406_v16, %v1422_v19  ;;  %v1409_v16 = vld [vmem:[%s3741_s7 + $0x48] sm:$0xff] }
  0x9f   : > { %v1223_v26 = vadd.f32 1e-05, %v1191_v46  ;;  %v3203_v57 = vmul.f32 %v1343_v14, %v1203_v13  ;;  %v1365_v12 = vmul.f32 %v2179_v42, %v3142_v0  ;;  %v1349_v36 = vmul.f32 %v3137_v63, %v1348_v11  ;;  %v1206_v0 = vld [vmem:[%s3740_s6 + $0x70] sm:$0xff] }
  0xa0   : > { %vm1371_vm13 = vweird.f32 %v2179_v42 }
  0xa1   : > { %v478_v4 = vpop.permute.xlu1 %477  ;;  %v473_v43 = vpop.permute.xlu0 %472  ;;  %2180 = vrsqrt.f32 %v1223_v26  ;;  %v1353_v9 = vsel %vm3207_vm11, %v3137_v63, %v1349_v36  ;;  %v1366_v19 = vmul.f32 %v2179_v42, %v1365_v12  ;;  %vm1372_vm14 = vmor %vm1370_vm12, %vm1371_vm13  ;;  %vm1380_vm15 = vweird.f32 %v1223_v26 }
  0xa2   : > { %v3213_v29 = vadd.f32 %v478_v4, %v444_v15  ;;  %v3215_v22 = vadd.f32 %v478_v4, %v445_v2  ;;  %v498_v39 = vadd.f32 %v473_v43, %v442_v31  ;;  %v499_v33 = vadd.f32 %v473_v43, %v443_v50 }
  0xa3   : > { %v3220_v13 = vpop.permute.xlu2 %531  ;;  %1505 = vperm.xlu1 %2147, %v3203_v57   ;;  %v1396_v31 = vmul.f32 %v1353_v9, %v1204_v40  ;;  %v1367_v50 = vmul.f32 0.5, %v1366_v19  ;;  %v1425_v15 = vmul.f32 %v3147_v62, %v2860_v24 }
  0xa4   : > { %v3226_v61 = vadd.f32 %v552_v18, %v498_v39  ;;  %v3228_v46 = vadd.f32 %v553_v47, %v499_v33 }
  0xa5   : > { %1592 = vperm.xlu0 %2149, %v1438_v54   ;;  %1510 = vperm.xlu2 %2148, %v1396_v31   ;;  %v1368_v63 = vsub.f32 1.5, %v1367_v50  ;;  %v1441_v47 = vsub.f32 %v1409_v16, %v1425_v15  ;;  %v1428_v9 = vmul.f32 %v1396_v31, %v2979_v32 }
  0xa7   : > { %v2181_v2 = vpop.eup %2180  ;;  %v1369_v18 = vmul.f32 %v2179_v42, %v1368_v63  ;;  %v1418_v63 = vmul.f32 %v2646_v53, %v2373_v28 }
  0xa8   : > { %v1375_v14 = vmul.f32 %v2181_v2, %v1223_v26  ;;  %vm1381_vm1 = vweird.f32 %v2181_v2  ;;  %v1401_v26 = vld [vmem:[%s3741_s7 + $0x8] sm:$0xff] }
  0xa9   : > { %v3236_v11 = vpop.permute.xlu0 %487  ;;  %v1373_v4 = vsel %vm1372_vm14, %v2179_v42, %v1369_v18  ;;  %v1417_v42 = vmul.f32 %v2811_v45, %v2449_v20  ;;  %vm1382_vm2 = vmor %vm1380_vm15, %vm1381_vm1  ;;  %v1404_v18 = vld [vmem:[%s3741_s7 + $0x20] sm:$0xff] }
  0xaa   : > { %v508_v21 = vpop.permute.xlu1 %507  ;;  %v1376_v12 = vmul.f32 %v2181_v2, %v1375_v14  ;;  %v3243_v43 = vmul.f32 %v1373_v4, %v1206_v0  ;;  %v1402_v14 = vld [vmem:[%s3741_s7 + $0x10] sm:$0xff]  ;;  %v1407_v4 = vld [vmem:[%s3741_s7 + $0x38] sm:$0xff] }
  0xab   : > { %v544_v24 = vmul.f32 %v2899_v41, %v508_v21  ;;  %v545_v62 = vmul.f32 %v2908_v27, %v508_v21  ;;  %v1433_v45 = vsub.f32 %v1401_v26, %v1417_v42  ;;  %v1434_v28 = vsub.f32 %v1402_v14, %v1418_v63 }
  0xac   : > { %v1377_v36 = vmul.f32 0.5, %v1376_v12  ;;  %v3245_v54 = vpop.permute.xlu2 %581  ;;  %1520 = vperm.xlu1 %2147, %v3243_v43   ;;  %v609_v26 = vperm.slane %v2577_v58, 6 }
  0xad   : > { %v3248_v39 = vadd.f32 %v544_v24, %v2951_v8  ;;  %v3251_v33 = vadd.f32 %v545_v62, %v2954_v3  ;;  %1607 = vperm.xlu0 %2149, %v1441_v47   ;;  %v1412_v8 = vld [vmem:[%s3741_s7 + $0x60] sm:$0xff]  ;;  %v1207_v3 = vld [vmem:[%s3740_s6 + $0x78] sm:$0xff] }
  0xae   : > { %v1378_v40 = vsub.f32 1.5, %v1377_v36  ;;  %v1444_v32 = vsub.f32 %v1412_v8, %v1428_v9  ;;  %v1415_v47 = vld [vmem:[%s3741_s7 + $0x78] sm:$0xff]  ;;  %v3329_v63 = vperm.slane %v609_v26, 2 }
  0xb0   : > { %v1379_v19 = vmul.f32 %v2181_v2, %v1378_v40  ;;  %v608_v40 = vperm.slane %v2577_v58, 2 }
  0xb2   : > { %v1383_v50 = vsel %vm1382_vm2, %v2181_v2, %v1379_v19  ;;  %v3266_v15 = vpop.permute.xlu1 %519  ;;  %v3268_v20 = vpop.permute.xlu0 %515  ;;  %v1420_v2 = vmul.f32 %v2880_v37, %v2534_v25  ;;  %v1421_v25 = vmul.f32 %v3059_v6, %v2649_v59  ;;  %v1405_v37 = vld [vmem:[%s3741_s7 + $0x28] sm:$0xff]  ;;  %v1770_v6 = vld [vmem:[%s3742_s8 + $0x10] sm:$0xff]  ;;  %v3313_v8 = vperm.slane %v608_v40, 2 }
  0xb3   : > { %v1399_v31 = vmul.f32 %v1383_v50, %v1207_v3  ;;  %v1408_v3 = vld [vmem:[%s3741_s7 + $0x40] sm:$0xff]  ;;  %v1426_v19 = vmul.f32 %v2813_v51, %v2474_v38  ;;  %v1410_v50 = vld [vmem:[%s3741_s7 + $0x50] sm:$0xff] }
  0xb4   : > { %v3270_v16 = vpop.permute.xlu2 %593  ;;  %1567 = vperm.xlu1 %2147, %v1433_v45   ;;  %v1436_v12 = vsub.f32 %v1404_v18, %v1420_v2  ;;  %v1437_v36 = vsub.f32 %v1405_v37, %v1421_v25  ;;  %v556_v45 = vmul.f32 %v2899_v41, %v3220_v13  ;;  %v616_v38 = vmul.f32 %v3313_v8, %v3245_v54 }
  0xb5   : > { %1525 = vperm.xlu2 %2148, %v1399_v31   ;;  %1622 = vperm.xlu0 %2149, %v1444_v32   ;;  %v1431_v0 = vmul.f32 %v1399_v31, %v3144_v48  ;;  %v1423_v48 = vmul.f32 %v2654_v10, %v2411_v49  ;;  %v1424_v49 = vmul.f32 %v3133_v56, %v2771_v44  ;;  %v678_v44 = vperm.slane %v2577_v58, 3 }
  0xb6   : > { %v679_v56 = vperm.slane %v2577_v58, 7  ;;  %v557_v32 = vmul.f32 %v2908_v27, %v3220_v13  ;;  %v1442_v51 = vsub.f32 %v1410_v50, %v1426_v19  ;;  %v1427_v2 = vmul.f32 %v3203_v57, %v2924_v23 }
  0xb7   : > { %v1447_v24 = vsub.f32 %v1415_v47, %v1431_v0  ;;  %v1439_v42 = vsub.f32 %v1407_v4, %v1423_v48  ;;  %v1440_v31 = vsub.f32 %v1408_v3, %v1424_v49  ;;  %v448_v58 = vmul.f32 %v2642_v52, %v3082_v55  ;;  %v1411_v47 = vld [vmem:[%s3741_s7 + $0x58] sm:$0xff]  ;;  %v3782_v48 = vld [vmem:[#allocation2_spill] sm:$0xff] }
  0xb8   : > { %v3339_v0 = vperm.slane %v678_v44, 3  ;;  %v3341_v18 = vperm.slane %v679_v56, 3  ;;  %v449_v23 = vmul.f32 %v2644_v1, %v3082_v55  ;;  %v572_v57 = vadd.f32 %v556_v45, %v3107_v60  ;;  %v3783_v49 = vld [vmem:[#allocation5_spill] sm:$0xff]  ;;  %v3784_v44 = vld [vmem:[#allocation3_spill] sm:$0xff]  ;;  %v3785_v56 = vld [vmem:[#allocation4_spill] sm:$0xff] }
  0xb9   : > { %v573_v52 = vadd.f32 %v557_v32, %v3110_v30  ;;  %v617_v25 = vmul.f32 %v3329_v63, %v3245_v54  ;;  %v632_v37 = vadd.f32 %v616_v38, %v3163_v35  ;;  %v1429_v4 = vmul.f32 %v3782_v48, %v2588_v7  ;;  %v1413_v54 = vld [vmem:[%s3741_s7 + $0x68] sm:$0xff] }
  0xba   : > { %v3286_v53 = vpop.permute.xlu1 %527  ;;  %v3288_v21 = vpop.permute.xlu0 %535  ;;  %v550_v1 = vmul.f32 %v2899_v41, %v3266_v15  ;;  %v551_v60 = vmul.f32 %v2908_v27, %v3266_v15  ;;  %v548_v55 = vmul.f32 %v2899_v41, %v3268_v20  ;;  %v1443_v30 = vsub.f32 %v1411_v47, %v1427_v2 }
  0xbb   : > { %v549_v35 = vmul.f32 %v2908_v27, %v3268_v20  ;;  %v622_v7 = vmul.f32 %v3313_v8, %v3270_v16  ;;  %v623_v15 = vmul.f32 %v3329_v63, %v3270_v16  ;;  %v1430_v26 = vmul.f32 %v3243_v43, %v3783_v49  ;;  %v1414_v16 = vld [vmem:[%s3741_s7 + $0x70] sm:$0xff] }
  0xbc   : > { %v3290_v62 = vpop.permute.xlu2 %601  ;;  %1582 = vperm.xlu1 %2147, %v1436_v12   ;;  %v633_v20 = vadd.f32 %v617_v25, %v3165_v5  ;;  %v1445_v19 = vsub.f32 %v1413_v54, %v1429_v4  ;;  %v505_v50 = vadd.f32 %v3236_v11, %v449_v23  ;;  %v567_v45 = vadd.f32 %v551_v60, %v3785_v56 }
  0xbd   : > { %1572 = vperm.xlu2 %2148, %v1434_v28   ;;  %1637 = vperm.xlu0 %2149, %v1447_v24   ;;  %v1773_v28 = vld [vmem:[%s3742_s8 + $0x28] sm:$0xff]  ;;  %v504_v24 = vadd.f32 %v3236_v11, %v448_v58  ;;  %v626_v3 = vmul.f32 %v3313_v8, %v3290_v62  ;;  %v564_v43 = vadd.f32 %v548_v55, %v3156_v34 }
  0xbe   : > { %v565_v32 = vadd.f32 %v549_v35, %v3159_v17  ;;  %v3408_v11 = vadd.f32 %v623_v15, %v3228_v46  ;;  %v1446_v34 = vsub.f32 %v1414_v16, %v1430_v26 }
  0xbf   : > { %v642_v23 = vadd.f32 %v626_v3, %v572_v57 }
  0xc3   : > { %v3303_v9 = vpop.permute.xlu1 %577 }
  0xc4   : > { %v3305_v59 = vpop.permute.xlu0 %585  ;;  %1597 = vperm.xlu1 %2147, %v1439_v42   ;;  %v558_v42 = vmul.f32 %v2899_v41, %v3288_v21  ;;  %v615_v25 = vmul.f32 %v3329_v63, %v3303_v9 }
  0xc5   : > { %1587 = vperm.xlu2 %2148, %v1437_v36   ;;  %v652_v10 = vpop.permute.xlu2 %651  ;;  %1796 = vperm.xlu0 %2149, %v1770_v6   ;;  %v559_v6 = vmul.f32 %v2908_v27, %v3288_v21  ;;  %v566_v21 = vadd.f32 %v550_v1, %v3784_v44  ;;  %v619_v46 = vmul.f32 %v3329_v63, %v3305_v59 }
  0xc6   : > { %v686_v36 = vmul.f32 %v3339_v0, %v652_v10  ;;  %v687_v40 = vmul.f32 %v3341_v18, %v652_v10  ;;  %v627_v10 = vmul.f32 %v3329_v63, %v3290_v62  ;;  %v574_v2 = vadd.f32 %v558_v42, %v504_v24 }
  0xc7   : > { %v575_v58 = vadd.f32 %v559_v6, %v505_v50  ;;  %v631_v55 = vadd.f32 %v615_v25, %v3251_v33 }
  0xc8   : > { %v702_v62 = vadd.f32 %v686_v36, %v632_v37  ;;  %v703_v38 = vadd.f32 %v687_v40, %v633_v20  ;;  %v643_v17 = vadd.f32 %v627_v10, %v573_v52  ;;  %v618_v37 = vmul.f32 %v3313_v8, %v3305_v59  ;;  %v1768_v40 = vld [vmem:[%s3742_s8] sm:$0xff] }
  0xca   : > { %v734_v4 = vmul.f32 0.2, %v702_v62  ;;  %vm718_vm3 = vcmp.ge.f32.partialorder %v702_v62, 0.0  ;;  %vm719_vm4 = vcmp.ge.f32.partialorder %v703_v38, 0.0  ;;  %v634_v35 = vadd.f32 %v618_v37, %v564_v43 }
  0xcb   : > { %v3333_v14 = vpop.permute.xlu1 %589 }
  0xcc   : > { %v3343_v13 = vpop.permute.xlu0 %605  ;;  %1612 = vperm.xlu1 %2147, %v1442_v51   ;;  %v1776_v51 = vld [vmem:[%s3742_s8 + $0x40] sm:$0xff]  ;;  %v620_v57 = vmul.f32 %v3313_v8, %v3333_v14  ;;  %v621_v52 = vmul.f32 %v3329_v63, %v3333_v14  ;;  %v635_v14 = vadd.f32 %v619_v46, %v565_v32  ;;  %v750_v33 = vsel %vm718_vm3, %v702_v62, %v734_v4  ;;  %v1769_v32 = vld [vmem:[%s3742_s8 + $0x8] sm:$0xff] }
  0xcd   : > { %1602 = vperm.xlu2 %2148, %v1440_v31   ;;  %v3355_v12 = vpop.permute.xlu2 %663  ;;  %1811 = vperm.xlu0 %2149, %v1773_v28   ;;  %v3402_v31 = vadd.f32 %v622_v7, %v3226_v61  ;;  %v614_v61 = vmul.f32 %v3313_v8, %v3303_v9  ;;  %v735_v9 = vmul.f32 0.2, %v703_v38  ;;  %v628_v1 = vmul.f32 %v3313_v8, %v3343_v13 }
  0xce   : > { %v629_v60 = vmul.f32 %v3329_v63, %v3343_v13  ;;  %v636_v15 = vadd.f32 %v620_v57, %v566_v21  ;;  %v637_v13 = vadd.f32 %v621_v52, %v567_v45  ;;  %vm828_vm3 = vcmask 523264  }
  0xcf   : > { %v630_v59 = vadd.f32 %v614_v61, %v3248_v39  ;;  %v1779_v39 = vld [vmem:[%s3742_s8 + $0x58] sm:$0xff]  ;;  %v751_v6 = vsel %vm719_vm4, %v703_v38, %v735_v9  ;;  %v644_v49 = vadd.f32 %v628_v1, %v574_v2  ;;  %v554_v1 = vmul.f32 %v2899_v41, %v3286_v53 }
  0xd0   : > { %v645_v26 = vadd.f32 %v629_v60, %v575_v58  ;;  %v555_v60 = vmul.f32 %v2908_v27, %v3286_v53 }
  0xd3   : > { %v3398_v5 = vpop.permute.xlu1 %597 }
  0xd4   : > { %1627 = vperm.xlu1 %2147, %v1445_v19   ;;  %v624_v27 = vmul.f32 %v3313_v8, %v3398_v5  ;;  %v625_v53 = vmul.f32 %v3329_v63, %v3398_v5  ;;  %v1772_v63 = vld [vmem:[%s3742_s8 + $0x20] sm:$0xff]  ;;  %v1774_v5 = vld [vmem:[%s3742_s8 + $0x30] sm:$0xff] }
  0xd5   : > { %1617 = vperm.xlu2 %2148, %v1443_v30   ;;  %v656_v47 = vpop.permute.xlu0 %655  ;;  %v672_v28 = vpop.permute.xlu2 %671  ;;  %1826 = vperm.xlu0 %2149, %v1776_v51  }
  0xd6   : > { %v696_v24 = vmul.f32 %v3339_v0, %v672_v28  ;;  %v697_v48 = vmul.f32 %v3341_v18, %v672_v28  ;;  %v688_v30 = vmul.f32 %v3339_v0, %v656_v47  ;;  %v689_v54 = vmul.f32 %v3341_v18, %v656_v47  ;;  %v1771_v47 = vld [vmem:[%s3742_s8 + $0x18] sm:$0xff] }
  0xd8   : > { %v712_v7 = vadd.f32 %v696_v24, %v642_v23  ;;  %v713_v36 = vadd.f32 %v697_v48, %v643_v17  ;;  %v3440_v19 = vadd.f32 %v688_v30, %v634_v35  ;;  %v3442_v16 = vadd.f32 %v689_v54, %v635_v14  ;;  %v1782_v30 = vld [vmem:[%s3742_s8 + $0x70] sm:$0xff] }
  0xda   : > { %v744_v45 = vmul.f32 0.2, %v712_v7  ;;  %v745_v43 = vmul.f32 0.2, %v713_v36  ;;  %vm728_vm5 = vcmp.ge.f32.partialorder %v712_v7, 0.0  ;;  %vm729_vm6 = vcmp.ge.f32.partialorder %v713_v36, 0.0 }
  0xdb   : > { %v736_v41 = vmul.f32 0.2, %v3440_v19  ;;  %v737_v14 = vmul.f32 0.2, %v3442_v16  ;;  %vm720_vm10 = vcmp.ge.f32.partialorder %v3440_v19, 0.0  ;;  %vm721_vm11 = vcmp.ge.f32.partialorder %v3442_v16, 0.0 }
  0xdc   : > { %v648_v42 = vpop.permute.xlu1 %647  ;;  %1786 = vperm.xlu1 %2147, %v1768_v40   ;;  %v760_v28 = vsel %vm728_vm5, %v712_v7, %v744_v45  ;;  %v761_v23 = vsel %vm729_vm6, %v713_v36, %v745_v43  ;;  %v570_v36 = vadd.f32 %v554_v1, %v3213_v29  ;;  %v571_v40 = vadd.f32 %v555_v60, %v3215_v22 }
  0xdd   : > { %1632 = vperm.xlu2 %2148, %v1446_v34   ;;  %v684_v20 = vmul.f32 %v3339_v0, %v648_v42  ;;  %v685_v3 = vmul.f32 %v3341_v18, %v648_v42  ;;  %v676_v10 = vpop.permute.xlu0 %675  ;;  %1841 = vperm.xlu0 %2149, %v1779_v39   ;;  %v753_v39 = vsel %vm721_vm11, %v3442_v16, %v737_v14 }
  0xde   : > { %v698_v50 = vmul.f32 %v3339_v0, %v676_v10  ;;  %v699_v44 = vmul.f32 %v3341_v18, %v676_v10 }
  0xdf   : > { %v700_v21 = vadd.f32 %v684_v20, %v630_v59  ;;  %v701_v56 = vadd.f32 %v685_v3, %v631_v55  ;;  %v692_v59 = vmul.f32 %v3339_v0, %v3355_v12  ;;  %v693_v55 = vmul.f32 %v3341_v18, %v3355_v12 }
  0xe0   : > { %v714_v62 = vadd.f32 %v698_v50, %v644_v49  ;;  %v715_v38 = vadd.f32 %v699_v44, %v645_v26  ;;  %v641_v49 = vadd.f32 %v625_v53, %v571_v40  ;;  %v1775_v44 = vld [vmem:[%s3742_s8 + $0x38] sm:$0xff] }
  0xe1   : > { %vm716_vm7 = vcmp.ge.f32.partialorder %v700_v21, 0.0  ;;  %v732_v51 = vmul.f32 0.2, %v700_v21  ;;  %vm717_vm0 = vcmp.ge.f32.partialorder %v701_v56, 0.0  ;;  %v733_v2 = vmul.f32 0.2, %v701_v56 }
  0xe2   : > { %vm730_vm8 = vcmp.ge.f32.partialorder %v714_v62, 0.0  ;;  %v746_v58 = vmul.f32 0.2, %v714_v62  ;;  %vm731_vm9 = vcmp.ge.f32.partialorder %v715_v38, 0.0  ;;  %v747_v34 = vmul.f32 0.2, %v715_v38 }
  0xe3   : > { %v748_v17 = vsel %vm716_vm7, %v700_v21, %v732_v51  ;;  %v749_v61 = vsel %vm717_vm0, %v701_v56, %v733_v2  ;;  %v708_v8 = vadd.f32 %v692_v59, %v3402_v31  ;;  %v640_v31 = vadd.f32 %v624_v27, %v570_v36  ;;  %v2091_v51 = vld [vmem:[%s3737_s3] sm:$0xff] }
  0xe4   : > { %v660_v25 = vpop.permute.xlu1 %659  ;;  %v762_v37 = vsel %vm730_vm8, %v714_v62, %v746_v58  ;;  %v763_v46 = vsel %vm731_vm9, %v715_v38, %v747_v34  ;;  %v3452_v24 = vpack.c.bf16 %v750_v33, %v748_v17  ;;  %v3454_v48 = vpack.c.bf16 %v751_v6, %v749_v61  ;;  %1801 = vperm.xlu1 %2147, %v1771_v47   ;;  %v1778_v62 = vld [vmem:[%s3742_s8 + $0x50] sm:$0xff]  ;;  %v1780_v38 = vld [vmem:[%s3742_s8 + $0x60] sm:$0xff]  ;;  %v1781_v58 = vld [vmem:[%s3742_s8 + $0x68] sm:$0xff] }
  0xe5   : > { %1791 = vperm.xlu2 %2148, %v1769_v32   ;;  %v690_v57 = vmul.f32 %v3339_v0, %v660_v25  ;;  %v691_v52 = vmul.f32 %v3341_v18, %v660_v25  ;;  %v786_v4 = vpack.c.bf16 %v762_v37, %v760_v28  ;;  %v787_v9 = vpack.c.bf16 %v763_v46, %v761_v23  ;;  %v2095_v2 = vld [vmem:[%s3737_s3 + $0x20] sm:$0xff]  ;;  %v1783_v34 = vld [vmem:[%s3742_s8 + $0x78] sm:$0xff]  ;;  %v2092_v47 = vld [vmem:[%s3737_s3 + $0x8] sm:$0xff]  ;;  %v1456_v25 = vpop.permute.xlu2 %1455 }
  0xe6   : > { %1856 = vperm.xlu0 %2149, %v1782_v30   ;;  %v740_v10 = vmul.f32 0.2, %v708_v8  ;;  %vm724_vm14 = vcmp.ge.f32.partialorder %v708_v8, 0.0  ;;  %v2096_v28 = vld [vmem:[%s3737_s3 + $0x28] sm:$0xff]  ;;  %v2093_v17 = vld [vmem:[%s3737_s3 + $0x10] sm:$0xff]  ;;  %v3545_v46 = vpop.permute.xlu0 %1460 }
  0xe7   : > { %v706_v54 = vadd.f32 %v690_v57, %v636_v15  ;;  %v707_v35 = vadd.f32 %v691_v52, %v637_v13  ;;  %857 = vmatpush.bf16.msra.mxu0 %v786_v4  ;;  %2099 = vmatpush.bf16.msra.mxu2 %v786_v4  ;;  %v709_v15 = vadd.f32 %v693_v55, %v3408_v11  ;;  %v2097_v61 = vld [vmem:[%s3737_s3 + $0x30] sm:$0xff]  ;;  %v2098_v57 = vld [vmem:[%s3737_s3 + $0x38] sm:$0xff] }
  0xe8   : > { %906 = vmatpush.bf16.msra.mxu1 %v787_v9  ;;  %2103 = vmatpush.bf16.msra.mxu3 %v787_v9  ;;  %v752_v13 = vsel %vm720_vm10, %v3440_v19, %v736_v41 }
  0xe9   : > { %vm722_vm12 = vcmp.ge.f32.partialorder %v706_v54, 0.0  ;;  %v738_v12 = vmul.f32 0.2, %v706_v54  ;;  %vm723_vm13 = vcmp.ge.f32.partialorder %v707_v35, 0.0  ;;  %v739_v7 = vmul.f32 0.2, %v707_v35 }
  0xea   : > { %v741_v50 = vmul.f32 0.2, %v709_v15  ;;  %vm725_vm15 = vcmp.ge.f32.partialorder %v709_v15, 0.0 }
  0xeb   : > { %v754_v42 = vsel %vm722_vm12, %v706_v54, %v738_v12  ;;  %v755_v29 = vsel %vm723_vm13, %v707_v35, %v739_v7 }
  0xec   : > { %v668_v33 = vpop.permute.xlu1 %667  ;;  %v782_v22 = vpack.c.bf16 %v754_v42, %v752_v13  ;;  %v783_v6 = vpack.c.bf16 %v755_v29, %v753_v39  ;;  %1816 = vperm.xlu1 %2147, %v1774_v5   ;;  %v757_v56 = vsel %vm725_vm15, %v709_v15, %v741_v50 }
  0xed   : > { %1806 = vperm.xlu2 %2148, %v1772_v63   ;;  %v694_v11 = vmul.f32 %v3339_v0, %v668_v33  ;;  %v695_v26 = vmul.f32 %v3341_v18, %v668_v33  ;;  %v1777_v0 = vld [vmem:[%s3742_s8 + $0x48] sm:$0xff]  ;;  %v756_v18 = vsel %vm724_vm14, %v708_v8, %v740_v10 }
  0xee   : > { %v3561_v4 = vpop.permute.xlu0 %1485 }
  0xef   : > { %v710_v20 = vadd.f32 %v694_v11, %v640_v31  ;;  %v711_v3 = vadd.f32 %v695_v26, %v641_v49 }
  0xf1   : > { %vm726_vm1 = vcmp.ge.f32.partialorder %v710_v20, 0.0  ;;  %v742_v19 = vmul.f32 0.2, %v710_v20  ;;  %vm727_vm2 = vcmp.ge.f32.partialorder %v711_v3, 0.0  ;;  %v743_v16 = vmul.f32 0.2, %v711_v3 }
  0xf3   : > { %v758_v21 = vsel %vm726_vm1, %v710_v20, %v742_v19  ;;  %v759_v45 = vsel %vm727_vm2, %v711_v3, %v743_v16 }
  0xf4   : > { %v784_v43 = vpack.c.bf16 %v758_v21, %v756_v18  ;;  %v785_v32 = vpack.c.bf16 %v759_v45, %v757_v56  ;;  %1831 = vperm.xlu1 %2147, %v1777_v0  }
  0xf5   : > { %1821 = vperm.xlu2 %2148, %v1775_v44   ;;  %v1451_v23 = vpop.permute.xlu1 %1450 }
  0xf6   : > { %858 = vmatpush.bf16.msra.mxu0 %v784_v43  ;;  %2100 = vmatpush.bf16.msra.mxu2 %v784_v43  ;;  %v3565_v60 = vpop.permute.xlu0 %1500 }
  0xf7   : > { %907 = vmatpush.bf16.msra.mxu1 %v785_v32  ;;  %2104 = vmatpush.bf16.msra.mxu3 %v785_v32 }
  0xfa   : > { %859 = vmatpush.bf16.msra.mxu0 %v782_v22  ;;  %2101 = vmatpush.bf16.msra.mxu2 %v782_v22 }
  0xfb   : > { %908 = vmatpush.bf16.msra.mxu1 %v783_v6  ;;  %2105 = vmatpush.bf16.msra.mxu3 %v783_v6 }
  0xfc   : > { %1846 = vperm.xlu1 %2147, %v1780_v38  }
  0xfd   : > { %1836 = vperm.xlu2 %2148, %v1778_v62   ;;  %v3543_v37 = vpop.permute.xlu1 %1465 }
  0xfe   : > { %860 = vmatpush.bf16.msra.mxu0 %v3452_v24  ;;  %2102 = vmatpush.bf16.msra.mxu2 %v3452_v24  ;;  %v3547_v24 = vpop.permute.xlu2 %1470  ;;  %v3571_v30 = vpop.permute.xlu0 %1515 }
  0xff   : > { %909 = vmatpush.bf16.msra.mxu1 %v3454_v48  ;;  %2106 = vmatpush.bf16.msra.mxu3 %v3454_v48  ;;  %v2094_v48 = vld [vmem:[%s3737_s3 + $0x18] sm:$0xff] }
 0x101   : > { %2072 = vmatmul.msk.bf16.vlgmr.msra.gmra.mxu0 %vm828_vm3, %v2091_v51  ;;  %2076 = vmatmul.msk.bf16.vlgmr.msra.gmra.mxu2 %vm828_vm3, %v2095_v2 }
 0x102   : > { %2080 = vmatmul.msk.bf16.vlgmr.msra.gmra.mxu1 %vm828_vm3, %v2091_v51  ;;  %2084 = vmatmul.msk.bf16.vlgmr.msra.gmra.mxu3 %vm828_vm3, %v2095_v2 }
 0x104   : > { %1861 = vperm.xlu1 %2147, %v1783_v34  }
 0x105   : > { %1851 = vperm.xlu2 %2148, %v1781_v58   ;;  %v3555_v52 = vpop.permute.xlu1 %1475 }
 0x106   : > { %v3563_v9 = vpop.permute.xlu2 %1480  ;;  %v1563_v41 = vpop.permute.xlu0 %1562 }
 0x10d   : > { %v1491_v1 = vpop.permute.xlu1 %1490 }
 0x10e   : > { %v3567_v59 = vpop.permute.xlu2 %1495 }
 0x10f   : > { %v3579_v53 = vpop.permute.xlu0 %1577 }
 0x111   : > { %2073 = vmatmul.msk.bf16.gmra.mxu0 %vm828_vm3, %v2092_v47  ;;  %2077 = vmatmul.msk.bf16.gmra.mxu2 %vm828_vm3, %v2096_v28 }
 0x112   : > { %2081 = vmatmul.msk.bf16.gmra.mxu1 %vm828_vm3, %v2092_v47  ;;  %2085 = vmatmul.msk.bf16.gmra.mxu3 %vm828_vm3, %v2096_v28 }
 0x115   : > { %v3569_v55 = vpop.permute.xlu1 %1505 }
 0x116   : > { %v3573_v54 = vpop.permute.xlu2 %1510 }
 0x117   : > { %v3585_v36 = vpop.permute.xlu0 %1592 }
 0x11e   : > { %v3575_v35 = vpop.permute.xlu1 %1520  ;;  %v3577_v14 = vpop.permute.xlu2 %1525 }
 0x11f   : > { %v3591_v15 = vpop.permute.xlu0 %1607 }
 0x121   : > { %2074 = vmatmul.msk.bf16.gmra.mxu0 %vm828_vm3, %v2093_v17  ;;  %2078 = vmatmul.msk.bf16.gmra.mxu2 %vm828_vm3, %v2097_v61 }
 0x122   : > { %2082 = vmatmul.msk.bf16.gmra.mxu1 %vm828_vm3, %v2093_v17  ;;  %2086 = vmatmul.msk.bf16.gmra.mxu3 %vm828_vm3, %v2097_v61 }
 0x126   : > { %v1568_v27 = vpop.permute.xlu1 %1567  ;;  %v3581_v12 = vpop.permute.xlu2 %1572 }
 0x127   : > { %v3595_v13 = vpop.permute.xlu0 %1622 }
 0x12e   : > { %v3583_v7 = vpop.permute.xlu1 %1582  ;;  %v3587_v40 = vpop.permute.xlu2 %1587 }
 0x12f   : > { %v3601_v22 = vpop.permute.xlu0 %1637 }
 0x130   : > { %3786 = vst [vmem:[#allocation2_spill] sm:$0xff] %v3601_v22 }
 0x131   : > { %2075 = vmatmul.msk.bf16.gmra.mxu0 %vm828_vm3, %v2094_v48  ;;  %2079 = vmatmul.msk.bf16.gmra.mxu2 %vm828_vm3, %v2098_v57 }
 0x132   : > { %2083 = vmatmul.msk.bf16.gmra.mxu1 %vm828_vm3, %v2094_v48  ;;  %2087 = vmatmul.msk.bf16.gmra.mxu3 %vm828_vm3, %v2098_v57 }
 0x136   : > { %v3589_v8 = vpop.permute.xlu1 %1597  ;;  %v1603_v63 = vpop.permute.xlu2 %1602 }
 0x137   : > { %v3605_v0 = vpop.permute.xlu0 %1796 }
 0x13e   : > { %v3593_v5 = vpop.permute.xlu1 %1612  ;;  %v3597_v42 = vpop.permute.xlu2 %1617 }
 0x146   : > { %v3599_v33 = vpop.permute.xlu1 %1627  ;;  %v3603_v6 = vpop.permute.xlu2 %1632 }
 0x147   : > { %3787 = vst [vmem:[#allocation5_spill] sm:$0xff] %v3603_v6 }
 0x14e   : > { %v1787_v20 = vpop.permute.xlu1 %1786  ;;  %v1792_v16 = vpop.permute.xlu2 %1791 }
 0x156   : > { %v3607_v43 = vpop.permute.xlu1 %1801  ;;  %v3610_v48 = vpop.permute.xlu2 %1806 }
 0x17e   : > { %v862_v39 = vpop.f32.mrf.mxu0 }
 0x17f   : > { %v911_v29 = vpop.f32.mrf.mxu1  ;;  %v1528_v10 = vmul.f32 %v1451_v23, %v862_v39  ;;  %v3612_v39 = vpop.permute.xlu0 %1811 }
 0x180   : > { %v1529_v18 = vmul.f32 %v1451_v23, %v911_v29 }
 0x181   : > { %v1640_v21 = vadd.f32 %v1563_v41, %v1528_v10 }
 0x182   : > { %v1641_v32 = vadd.f32 %v1563_v41, %v1529_v18 }
 0x183   : > { %v1704_v2 = vmul.f32 0.2, %v1640_v21  ;;  %vm1672_vm4 = vcmp.ge.f32.partialorder %v1640_v21, 0.0 }
 0x184   : > { %v882_v31 = vpop.f32.mrf.mxu2  ;;  %v1705_v23 = vmul.f32 0.2, %v1641_v32  ;;  %vm1673_vm5 = vcmp.ge.f32.partialorder %v1641_v32, 0.0 }
 0x185   : > { %v931_v49 = vpop.f32.mrf.mxu3  ;;  %v1544_v62 = vmul.f32 %v1491_v1, %v882_v31  ;;  %v1736_v41 = vsel %vm1672_vm4, %v1640_v21, %v1704_v2 }
 0x186   : > { %v864_v11 = vpop.f32.mrf.mxu0  ;;  %v1545_v38 = vmul.f32 %v1491_v1, %v931_v49  ;;  %v1864_v18 = vmul.f32 %v1787_v20, %v1736_v41 }
 0x187   : > { %v913_v26 = vpop.f32.mrf.mxu1  ;;  %v1530_v56 = vmul.f32 %v1456_v25, %v864_v11  ;;  %v1656_v57 = vadd.f32 %v1603_v63, %v1544_v62 }
 0x188   : > { %v1531_v45 = vmul.f32 %v1456_v25, %v913_v26  ;;  %v1657_v25 = vadd.f32 %v1603_v63, %v1545_v38  ;;  %v1737_v26 = vsel %vm1673_vm5, %v1641_v32, %v1705_v23 }
 0x189   : > { %v1642_v47 = vadd.f32 %v1568_v27, %v1530_v56  ;;  %v1720_v10 = vmul.f32 0.2, %v1656_v57  ;;  %vm1688_vm0 = vcmp.ge.f32.partialorder %v1656_v57, 0.0  ;;  %v1865_v62 = vmul.f32 %v1787_v20, %v1737_v26 }
 0x18a   : > { %v1643_v28 = vadd.f32 %v1568_v27, %v1531_v45  ;;  %vm1689_vm8 = vcmp.ge.f32.partialorder %v1657_v25, 0.0 }
 0x18b   : > { %v1706_v29 = vmul.f32 0.2, %v1642_v47  ;;  %vm1674_vm6 = vcmp.ge.f32.partialorder %v1642_v47, 0.0  ;;  %v1752_v23 = vsel %vm1688_vm0, %v1656_v57, %v1720_v10 }
 0x18c   : > { %v884_v3 = vpop.f32.mrf.mxu2  ;;  %v1707_v31 = vmul.f32 0.2, %v1643_v28  ;;  %vm1675_vm7 = vcmp.ge.f32.partialorder %v1643_v28, 0.0 }
 0x18d   : > { %v933_v50 = vpop.f32.mrf.mxu3  ;;  %v1546_v1 = vmul.f32 %v3567_v59, %v884_v3 }
 0x18e   : > { %v867_v19 = vpop.f32.mrf.mxu0  ;;  %v1547_v49 = vmul.f32 %v3567_v59, %v933_v50  ;;  %v3623_v59 = vpop.permute.xlu1 %1816  ;;  %v1739_v50 = vsel %vm1675_vm7, %v1643_v28, %v1707_v31 }
 0x18f   : > { %v916_v44 = vpop.f32.mrf.mxu1  ;;  %v1532_v61 = vmul.f32 %v3545_v46, %v867_v19  ;;  %v1721_v19 = vmul.f32 0.2, %v1657_v25  ;;  %v1658_v3 = vadd.f32 %v3591_v15, %v1546_v1  ;;  %v1867_v6 = vmul.f32 %v1792_v16, %v1739_v50  ;;  %v3630_v28 = vpop.permute.xlu2 %1821 }
 0x190   : > { %v1533_v27 = vmul.f32 %v3545_v46, %v916_v44  ;;  %v1738_v46 = vsel %vm1674_vm6, %v1642_v47, %v1706_v29  ;;  %v1659_v44 = vadd.f32 %v3591_v15, %v1547_v49  ;;  %v1827_v29 = vpop.permute.xlu0 %1826 }
 0x191   : > { %v1644_v11 = vadd.f32 %v3581_v12, %v1532_v61  ;;  %v1753_v41 = vsel %vm1689_vm8, %v1657_v25, %v1721_v19  ;;  %v1866_v22 = vmul.f32 %v1792_v16, %v1738_v46  ;;  %vm1690_vm10 = vcmp.ge.f32.partialorder %v1658_v3, 0.0 }
 0x192   : > { %v1645_v45 = vadd.f32 %v3581_v12, %v1533_v27  ;;  %v1722_v47 = vmul.f32 0.2, %v1658_v3  ;;  %vm1691_vm11 = vcmp.ge.f32.partialorder %v1659_v44, 0.0  ;;  %v1723_v12 = vmul.f32 0.2, %v1659_v44 }
 0x193   : > { %v1708_v38 = vmul.f32 0.2, %v1644_v11  ;;  %vm1676_vm9 = vcmp.ge.f32.partialorder %v1644_v11, 0.0  ;;  %v3635_v25 = vmul.f32 %v1827_v29, %v1752_v23  ;;  %v3640_v49 = vmul.f32 %v1827_v29, %v1753_v41 }
 0x194   : > { %v887_v51 = vpop.f32.mrf.mxu2  ;;  %v1709_v15 = vmul.f32 0.2, %v1645_v45  ;;  %vm1677_vm12 = vcmp.ge.f32.partialorder %v1645_v45, 0.0  ;;  %v1896_v27 = vadd.f32 %v1866_v22, %v1864_v18  ;;  %v1755_v10 = vsel %vm1691_vm11, %v1659_v44, %v1723_v12 }
 0x195   : > { %v936_v58 = vpop.f32.mrf.mxu3  ;;  %v1548_v2 = vmul.f32 %v3565_v60, %v887_v51  ;;  %v1740_v51 = vsel %vm1676_vm9, %v1644_v11, %v1708_v38 }
 0x196   : > { %v869_v34 = vpop.f32.mrf.mxu0  ;;  %v1549_v20 = vmul.f32 %v3565_v60, %v936_v58  ;;  %v1917_v60 = vadd.f32 %v1867_v6, %v1865_v62  ;;  %v1754_v58 = vsel %vm1690_vm10, %v1658_v3, %v1722_v47  ;;  %v1868_v19 = vmul.f32 %v3605_v0, %v1740_v51  ;;  %v1832_v22 = vpop.permute.xlu1 %1831 }
 0x197   : > { %v918_v17 = vpop.f32.mrf.mxu1  ;;  %v1534_v61 = vmul.f32 %v3543_v37, %v869_v34  ;;  %v1660_v34 = vadd.f32 %v3593_v5, %v1548_v2  ;;  %v3652_v44 = vmul.f32 %v1832_v22, %v1754_v58 }
 0x198   : > { %v1535_v1 = vmul.f32 %v3543_v37, %v918_v17  ;;  %v1897_v38 = vadd.f32 %v1896_v27, %v1868_v19 }
 0x199   : > { %v1646_v57 = vadd.f32 %v3579_v53, %v1534_v61  ;;  %vm1692_vm13 = vcmp.ge.f32.partialorder %v1660_v34, 0.0 }
 0x19a   : > { %v1647_v37 = vadd.f32 %v3579_v53, %v1535_v1  ;;  %v1741_v53 = vsel %vm1677_vm12, %v1645_v45, %v1709_v15  ;;  %v3656_v45 = vmul.f32 %v1832_v22, %v1755_v10  ;;  %v3664_v1 = vpop.permute.xlu2 %1836 }
 0x19b   : > { %vm1678_vm14 = vcmp.ge.f32.partialorder %v1646_v57, 0.0  ;;  %v1710_v50 = vmul.f32 0.2, %v1646_v57  ;;  %v1869_v62 = vmul.f32 %v3605_v0, %v1741_v53 }
 0x19c   : > { %v3618_v63 = vpop.f32.mrf.mxu2  ;;  %v1711_v6 = vmul.f32 0.2, %v1647_v37  ;;  %vm1679_vm15 = vcmp.ge.f32.partialorder %v1647_v37, 0.0 }
 0x19d   : > { %v3621_v21 = vpop.f32.mrf.mxu3  ;;  %v1550_v61 = vmul.f32 %v3569_v55, %v3618_v63 }
 0x19e   : > { %v872_v56 = vpop.f32.mrf.mxu0  ;;  %v1551_v41 = vmul.f32 %v3569_v55, %v3621_v21  ;;  %v1743_v0 = vsel %vm1679_vm15, %v1647_v37, %v1711_v6 }
 0x19f   : > { %v921_v32 = vpop.f32.mrf.mxu1  ;;  %v1536_v16 = vmul.f32 %v3547_v24, %v872_v56  ;;  %v1661_v56 = vadd.f32 %v3593_v5, %v1549_v20  ;;  %v1918_v20 = vadd.f32 %v1917_v60, %v1869_v62  ;;  %v1662_v21 = vadd.f32 %v3597_v42, %v1550_v61 }
 0x1a0   : > { %v1537_v17 = vmul.f32 %v3547_v24, %v921_v32  ;;  %v1724_v24 = vmul.f32 0.2, %v1660_v34  ;;  %v1663_v27 = vadd.f32 %v3597_v42, %v1551_v41 }
 0x1a1   : > { %v1648_v18 = vadd.f32 %v3583_v7, %v1536_v16  ;;  %v1725_v2 = vmul.f32 0.2, %v1661_v56  ;;  %vm1693_vm1 = vcmp.ge.f32.partialorder %v1661_v56, 0.0  ;;  %vm1694_vm5 = vcmp.ge.f32.partialorder %v1662_v21, 0.0 }
 0x1a2   : > { %v1649_v3 = vadd.f32 %v3583_v7, %v1537_v17  ;;  %v1756_v23 = vsel %vm1692_vm13, %v1660_v34, %v1724_v24  ;;  %v1742_v7 = vsel %vm1678_vm14, %v1646_v57, %v1710_v50  ;;  %v1871_v17 = vmul.f32 %v3607_v43, %v1743_v0 }
 0x1a3   : > { %v1712_v47 = vmul.f32 0.2, %v1648_v18  ;;  %vm1680_vm2 = vcmp.ge.f32.partialorder %v1648_v18, 0.0  ;;  %v3669_v34 = vmul.f32 %v3664_v1, %v1756_v23  ;;  %v3672_v55 = vsel %vm1693_vm1, %v1661_v56, %v1725_v2 }
 0x1a4   : > { %v892_v31 = vpop.f32.mrf.mxu2  ;;  %vm1681_vm3 = vcmp.ge.f32.partialorder %v1649_v3, 0.0  ;;  %v1870_v16 = vmul.f32 %v3607_v43, %v1742_v7  ;;  %vm1695_vm7 = vcmp.ge.f32.partialorder %v1663_v27, 0.0  ;;  %v1727_v43 = vmul.f32 0.2, %v1663_v27 }
 0x1a5   : > { %v3643_v11 = vpop.f32.mrf.mxu3  ;;  %v1744_v60 = vsel %vm1680_vm2, %v1648_v18, %v1712_v47  ;;  %v1552_v19 = vmul.f32 %v3573_v54, %v892_v31 }
 0x1a6   : > { %v874_v26 = vpop.f32.mrf.mxu0  ;;  %v1898_v31 = vadd.f32 %v1897_v38, %v1870_v16 }
 0x1a7   : > { %v923_v46 = vpop.f32.mrf.mxu1  ;;  %v1538_v32 = vmul.f32 %v3555_v52, %v874_v26  ;;  %v1664_v18 = vadd.f32 %v3595_v13, %v1552_v19  ;;  %v1842_v19 = vpop.permute.xlu0 %1841 }
 0x1a8   : > { %v1539_v5 = vmul.f32 %v3555_v52, %v923_v46  ;;  %v1713_v52 = vmul.f32 0.2, %v1649_v3  ;;  %v1726_v46 = vmul.f32 0.2, %v1662_v21 }
 0x1a9   : > { %v1650_v12 = vadd.f32 %v3587_v40, %v1538_v32  ;;  %vm1696_vm9 = vcmp.ge.f32.partialorder %v1664_v18, 0.0  ;;  %v1728_v16 = vmul.f32 0.2, %v1664_v18 }
 0x1aa   : > { %v1651_v63 = vadd.f32 %v3587_v40, %v1539_v5  ;;  %v1745_v58 = vsel %vm1681_vm3, %v1649_v3, %v1713_v52  ;;  %v1919_v5 = vadd.f32 %v1918_v20, %v1871_v17  ;;  %v1758_v2 = vsel %vm1694_vm5, %v1662_v21, %v1726_v46 }
 0x1ab   : > { %v1714_v26 = vmul.f32 0.2, %v1650_v12  ;;  %vm1682_vm4 = vcmp.ge.f32.partialorder %v1650_v12, 0.0  ;;  %v1873_v50 = vmul.f32 %v3610_v48, %v1745_v58 }
 0x1ac   : > { %v894_v15 = vpop.f32.mrf.mxu2  ;;  %v1715_v53 = vmul.f32 0.2, %v1651_v63  ;;  %vm1683_vm6 = vcmp.ge.f32.partialorder %v1651_v63, 0.0 }
 0x1ad   : > { %v943_v29 = vpop.f32.mrf.mxu3  ;;  %v1746_v22 = vsel %vm1682_vm4, %v1650_v12, %v1714_v26  ;;  %v1920_v52 = vadd.f32 %v1919_v5, %v1873_v50  ;;  %vm1941_vm4 = vcmask 1040384  }
 0x1ae   : > { %v877_v51 = vpop.f32.mrf.mxu0  ;;  %v1747_v3 = vsel %vm1683_vm6, %v1651_v63, %v1715_v53  ;;  %v1874_v41 = vmul.f32 %v3612_v39, %v1746_v22  ;;  %v1885_v53 = vmul.f32 %v3664_v1, %v3672_v55  ;;  %v1760_v22 = vsel %vm1696_vm9, %v1664_v18, %v1728_v16  ;;  %v3789_v55 = vld [vmem:[#allocation2_spill] sm:$0xff] }
 0x1af   : > { %v1540_v57 = vmul.f32 %v3563_v9, %v877_v51  ;;  %v926_v37 = vpop.f32.mrf.mxu1  ;;  %v1554_v51 = vmul.f32 %v3571_v30, %v894_v15 }
 0x1b0   : > { %v1541_v40 = vmul.f32 %v3563_v9, %v926_v37  ;;  %v1872_v9 = vmul.f32 %v3610_v48, %v1744_v60  ;;  %v1759_v48 = vsel %vm1695_vm7, %v1663_v27, %v1727_v43  ;;  %v1555_v37 = vmul.f32 %v3571_v30, %v943_v29 }
 0x1b1   : > { %v1652_v10 = vadd.f32 %v3585_v36, %v1540_v57  ;;  %v1666_v26 = vadd.f32 %v3599_v33, %v1554_v51  ;;  %v1887_v43 = vmul.f32 %v1842_v19, %v1759_v48 }
 0x1b2   : > { %v1653_v56 = vadd.f32 %v3585_v36, %v1541_v40  ;;  %v1553_v36 = vmul.f32 %v3573_v54, %v3643_v11  ;;  %v1899_v47 = vadd.f32 %v1898_v31, %v1872_v9  ;;  %v1875_v54 = vmul.f32 %v3612_v39, %v1747_v3 }
 0x1b3   : > { %v1716_v24 = vmul.f32 0.2, %v1652_v10  ;;  %vm1684_vm0 = vcmp.ge.f32.partialorder %v1652_v10, 0.0  ;;  %v1730_v1 = vmul.f32 0.2, %v1666_v26  ;;  %vm1698_vm13 = vcmp.ge.f32.partialorder %v1666_v26, 0.0 }
 0x1b4   : > { %v1717_v42 = vmul.f32 0.2, %v1653_v56  ;;  %vm1685_vm8 = vcmp.ge.f32.partialorder %v1653_v56, 0.0  ;;  %v897_v6 = vpop.f32.mrf.mxu2  ;;  %v1665_v12 = vadd.f32 %v3595_v13, %v1553_v36  ;;  %v1921_v17 = vadd.f32 %v1920_v52, %v1875_v54  ;;  %v1847_v36 = vpop.permute.xlu1 %1846 }
 0x1b5   : > { %v946_v32 = vpop.f32.mrf.mxu3  ;;  %v1748_v61 = vsel %vm1684_vm0, %v1652_v10, %v1716_v24  ;;  %v1556_v27 = vmul.f32 %v3575_v35, %v897_v6  ;;  %v1886_v24 = vmul.f32 %v1842_v19, %v1758_v2  ;;  %v1888_v5 = vmul.f32 %v1847_v36, %v1760_v22 }
 0x1b6   : > { %v879_v62 = vpop.f32.mrf.mxu0  ;;  %v1749_v38 = vsel %vm1685_vm8, %v1653_v56, %v1717_v42  ;;  %v1876_v20 = vmul.f32 %v3623_v59, %v1748_v61  ;;  %v1667_v56 = vadd.f32 %v3599_v33, %v1555_v37  ;;  %v3788_v42 = vld [vmem:[#allocation5_spill] sm:$0xff]  ;;  %v1729_v6 = vmul.f32 0.2, %v1665_v12 }
 0x1b7   : > { %v1542_v23 = vmul.f32 %v3561_v4, %v879_v62  ;;  %v928_v7 = vpop.f32.mrf.mxu1  ;;  %v1877_v21 = vmul.f32 %v3623_v59, %v1749_v38  ;;  %v1668_v9 = vadd.f32 %v3788_v42, %v1556_v27  ;;  %vm1697_vm12 = vcmp.ge.f32.partialorder %v1665_v12, 0.0 }
 0x1b8   : > { %v1543_v0 = vmul.f32 %v3561_v4, %v928_v7  ;;  %v1900_v4 = vadd.f32 %v1899_v47, %v1874_v41  ;;  %vm1699_vm14 = vcmp.ge.f32.partialorder %v1667_v56, 0.0  ;;  %v1761_v61 = vsel %vm1697_vm12, %v1665_v12, %v1729_v6 }
 0x1b9   : > { %v1654_v11 = vadd.f32 %v3589_v8, %v1542_v23  ;;  %v1922_v10 = vadd.f32 %v1921_v17, %v1877_v21  ;;  %v1732_v18 = vmul.f32 0.2, %v1668_v9  ;;  %vm1700_vm15 = vcmp.ge.f32.partialorder %v1668_v9, 0.0 }
 0x1ba   : > { %v1655_v63 = vadd.f32 %v3589_v8, %v1543_v0  ;;  %v1901_v60 = vadd.f32 %v1900_v4, %v1876_v20  ;;  %v1557_v8 = vmul.f32 %v3575_v35, %v946_v32  ;;  %v1762_v7 = vsel %vm1698_vm13, %v1666_v26, %v1730_v1  ;;  %v1852_v0 = vpop.permute.xlu2 %1851  ;;  %v1857_v20 = vpop.permute.xlu0 %1856 }
 0x1bb   : > { %vm1686_vm10 = vcmp.ge.f32.partialorder %v1654_v11, 0.0  ;;  %v1718_v57 = vmul.f32 0.2, %v1654_v11  ;;  %v1889_v47 = vmul.f32 %v1847_v36, %v1761_v61  ;;  %v1764_v52 = vsel %vm1700_vm15, %v1668_v9, %v1732_v18 }
 0x1bc   : > { %vm1687_vm11 = vcmp.ge.f32.partialorder %v1655_v63, 0.0  ;;  %v1719_v39 = vmul.f32 0.2, %v1655_v63  ;;  %v899_v40 = vpop.f32.mrf.mxu2  ;;  %v1892_v21 = vmul.f32 %v1857_v20, %v1764_v52  ;;  %v1862_v37 = vpop.permute.xlu1 %1861 }
 0x1bd   : > { %v1750_v13 = vsel %vm1686_vm10, %v1654_v11, %v1718_v57  ;;  %v948_v59 = vpop.f32.mrf.mxu3  ;;  %v1558_v29 = vmul.f32 %v3577_v14, %v899_v40  ;;  %v1890_v11 = vmul.f32 %v1852_v0, %v1762_v7 }
 0x1be   : > { %v1878_v15 = vmul.f32 %v3630_v28, %v1750_v13  ;;  %v1751_v58 = vsel %vm1687_vm11, %v1655_v63, %v1719_v39  ;;  %v1559_v35 = vmul.f32 %v3577_v14, %v948_v59  ;;  %v1731_v14 = vmul.f32 0.2, %v1667_v56 }
 0x1bf   : > { %v1879_v30 = vmul.f32 %v3630_v28, %v1751_v58  ;;  %v1669_v28 = vadd.f32 %v3788_v42, %v1557_v8  ;;  %v1670_v3 = vadd.f32 %v3789_v55, %v1558_v29 }
 0x1c0   : > { %v1902_v46 = vadd.f32 %v1901_v60, %v1878_v15  ;;  %v1671_v62 = vadd.f32 %v3789_v55, %v1559_v35  ;;  %v1763_v41 = vsel %vm1699_vm14, %v1667_v56, %v1731_v14 }
 0x1c1   : > { %v1923_v50 = vadd.f32 %v1922_v10, %v1879_v30  ;;  %vm1701_vm1 = vcmp.ge.f32.partialorder %v1669_v28, 0.0  ;;  %v1734_v48 = vmul.f32 0.2, %v1670_v3  ;;  %vm1702_vm2 = vcmp.ge.f32.partialorder %v1670_v3, 0.0 }
 0x1c2   : > { %v1903_v31 = vadd.f32 %v1902_v46, %v3635_v25  ;;  %v1733_v25 = vmul.f32 0.2, %v1669_v28  ;;  %vm1703_vm3 = vcmp.ge.f32.partialorder %v1671_v62, 0.0  ;;  %v1891_v63 = vmul.f32 %v1852_v0, %v1763_v41 }
 0x1c3   : > { %v1924_v33 = vadd.f32 %v1923_v50, %v3640_v49  ;;  %v1766_v51 = vsel %vm1702_vm2, %v1670_v3, %v1734_v48  ;;  %v1944_v46 = vlaneseq }
 0x1c4   : > { %v1904_v32 = vadd.f32 %v1903_v31, %v3652_v44  ;;  %v1735_v44 = vmul.f32 0.2, %v1671_v62  ;;  %v1894_v17 = vmul.f32 %v1862_v37, %v1766_v51 }
 0x1c5   : > { %v1925_v2 = vadd.f32 %v1924_v33, %v3656_v45  ;;  %v1765_v45 = vsel %vm1701_vm1, %v1669_v28, %v1733_v25  ;;  %vm1946_vm5 = vcmp.lt.s32.totalorder %v1944_v46, 256 }
 0x1c6   : > { %v1905_v23 = vadd.f32 %v1904_v32, %v3669_v34  ;;  %v1767_v4 = vsel %vm1703_vm3, %v1671_v62, %v1735_v44  ;;  %v1893_v39 = vmul.f32 %v1857_v20, %v1765_v45 }
 0x1c7   : > { %v1926_v49 = vadd.f32 %v1925_v2, %v1885_v53  ;;  %v1895_v13 = vmul.f32 %v1862_v37, %v1767_v4 }
 0x1c8   : > { %v1906_v38 = vadd.f32 %v1905_v23, %v1886_v24 }
 0x1c9   : > { %v1927_v54 = vadd.f32 %v1926_v49, %v1887_v43 }
 0x1ca   : > { %v1907_v12 = vadd.f32 %v1906_v38, %v1888_v5 }
 0x1cb   : > { %v1928_v34 = vadd.f32 %v1927_v54, %v1889_v47 }
 0x1cc   : > { %v1908_v57 = vadd.f32 %v1907_v12, %v1890_v11 }
 0x1cd   : > { %v1929_v16 = vadd.f32 %v1928_v34, %v1891_v63 }
 0x1ce   : > { %v1909_v27 = vadd.f32 %v1908_v57, %v1892_v21 }
 0x1cf   : > { %v1930_v40 = vadd.f32 %v1929_v16, %v1893_v39 }
 0x1d0   : > { %v1910_v60 = vadd.f32 %v1909_v27, %v1894_v17 }
 0x1d1   : > { %v1931_v8 = vadd.f32 %v1930_v40, %v1895_v13 }
 0x1d2   : > { %v1911_v15 = vrot.slane %v1910_v60, 4 }
 0x1d3   : > { %v1932_v58 = vrot.slane %v1931_v8, 4 }
 0x1d4   : > { %v1912_v59 = vadd.f32 %v1911_v15, %v1910_v60 }
 0x1d5   : > { %v1933_v26 = vadd.f32 %v1932_v58, %v1931_v8 }
 0x1d6   : > { %v1913_v10 = vrot.slane %v1912_v59, 2 }
 0x1d7   : > { %v1934_v30 = vrot.slane %v1933_v26, 2 }
 0x1d8   : > { %v1914_v29 = vadd.f32 %v1913_v10, %v1912_v59 }
 0x1d9   : > { %v1935_v19 = vadd.f32 %v1934_v30, %v1933_v26 }
 0x1da   : > { %v1915_v53 = vrot.slane %v1914_v29, 1 }
 0x1db   : > { %v1936_v56 = vrot.slane %v1935_v19, 1 }
 0x1dc   : > { %v1916_v24 = vadd.f32 %v1915_v53, %v1914_v29 }
 0x1dd   : > { %v1937_v35 = vadd.f32 %v1936_v56, %v1935_v19 }
 0x1df   : > { %v1940_v43 = vrot.slane %v1937_v35, 7 }
 0x1e1   : > { %v1942_v42 = vsel %vm1941_vm4, %v1916_v24, %v1940_v43 }
 0x1e2   : > { %1948 = vst.msk [vmem:[%s368_s20] sm:$0x3] %vm1946_vm5, %v1942_v42 }
 0x1e3 PF: > { %s19_s11 = sadd.s32 1, %s2204_s11   ;;  %s3790_s30 = smov %s2200_s10 }
 0x1e4   : > { %p16_p5 = scmp.ge.s32.totalorder %s19_s11, 4   ;;  %s3791_s10 = smov %s3793_s12 }
 0x1e6   :  { %18 = sbr.rel (!%p16_p5) target bundleno = 2 (0x2), region = 86 }

// kernel: pixel_discriminator.2
= control target key start
LH: loop header
LB: loop body
LE: loop exit
PB: predicated region body
PF: predicated region fallthrough
CT: control target
= control target key end

     0   :  { %s1411_s18 = smov 0   ;;  %s1413_s19 = smov 0   ;;  %s1936_s0 = inlined_call_operand.vmem [shape: f32[2,4,256], index: 0, kind: input, shape index: {}]   ;;  %s1937_s1 = inlined_call_operand.vmem [shape: f32[64,4], index: 1, kind: input, shape index: {}]   ;;  %s1938_s2 = inlined_call_operand.vmem [shape: f32[64,1], index: 2, kind: input, shape index: {}]   ;;  %s1939_s3 = inlined_call_operand.vmem [shape: bf16[128,64], index: 3, kind: input, shape index: {}]   ;;  %s1940_s4 = inlined_call_operand.vmem [shape: f32[2,128,1], index: 4, kind: output, shape index: {0}]   ;;  %s1941_s5 = inlined_call_operand.vmem [shape: f32[2,128,1], index: 5, kind: output, shape index: {1}]  }
   0x1   :  { %s1415_s20 = smov 0  }
   0x2 LB: > { %s28_s21 = sadd.s32 1, %s1370_s19  ;;  %p1216_p0 = scmp.ge.s32.totalorder %s1374_s20, 1  ;;  %s1374_s20 = sphi %s1415_s20, %s16_s20   ;;  %s1370_s19 = sphi %s1413_s19, %s1943_s19   ;;  %s1366_s18 = sphi %s1411_s18, %s1942_s18  }
   0x3   : > { %p30_p1 = scmp.ge.s32.totalorder %s28_s21, 2  ;;  %p209_p2 = scmp.lt.s32.totalorder %s1374_s20, 3 }
   0x5   : > { %s1945_s21 = smov (%p30_p1, %s28_s21), 0  ;;  %p210_p3 = pnand %p1216_p0, %p209_p2 }
   0x6   : > { %p247_p4 = scmp.lt.s32.totalorder (!%p210_p3), %s1366_s18, 1 }
   0x7   : > { %213 = sbr.rel (%p210_p3) target bundleno = 599 (0x257), region = 36 }
   0xc   : > { %v319_v0 = vld [vmem:[%s1937_s1 + $0x30] sm:$0xff]  ;;  %v1437_v1 = vld [vmem:[%s1937_s1 + $0x20] sm:$0xff]  ;;  %v1376_v3 = vmov 2   ;;  %v1377_v4 = vmov 0   ;;  %v318_v5 = vld [vmem:[%s1937_s1 + $0x28] sm:$0xff]  ;;  %v1378_v11 = vmov 1  }
   0xd   : > { %v1442_v2 = vld [vmem:[%s1937_s1 + $0x10] sm:$0xff]  ;;  %1325 = vset.pattern.permute.xlu0 %v1376_v3  ;;  %1322 = vset.pattern.permute.xlu2 %v1377_v4  ;;  %v1455_v6 = vld [vmem:[%s1937_s1 + $0x18] sm:$0xff]  ;;  %v1460_v7 = vld [vmem:[%s1937_s1] sm:$0xff]  ;;  %v1379_v16 = vmov 3   ;;  %s1947_s18 = smov (!%p247_p4, %s1366_s18), 1 }
   0xe   : > { %1321 = vset.pattern.permute.xlu1 %v1377_v4  ;;  %535 = vperm.xlu0 %1325, %v319_v0   ;;  %v320_v8 = vld [vmem:[%s1937_s1 + $0x38] sm:$0xff]  ;;  %v311_v9 = vld [vmem:[%s1938_s2 + $0x30] sm:$0xff]  ;;  %v1474_v10 = vld [vmem:[%s1937_s1 + $0x8] sm:$0xff]  ;;  %s1273_s8 = sshll.u32 %s1947_s18, 3  ;;  %s1274_s7 = sshll.u32 %s1947_s18, 7 }
   0xf   : > { %343 = vperm.xlu2 %1322, %v1437_v1   ;;  %333 = vperm.xlu1 %1321, %v1442_v2   ;;  %v312_v12 = vld [vmem:[%s1938_s2 + $0x38] sm:$0xff]  ;;  %v309_v13 = vld [vmem:[%s1938_s2 + $0x20] sm:$0xff]  ;;  %v307_v14 = vld [vmem:[%s1938_s2 + $0x10] sm:$0xff]  ;;  %s254_s11 = scalar_lea.vmem %s1936_s0, %s1273_s8  ;;  %s1720_s10 = scalar_lea.vmem %s1940_s4, %s1274_s7 }
  0x10   : > { %v310_v15 = vld [vmem:[%s1938_s2 + $0x28] sm:$0xff]  ;;  %v308_v17 = vld [vmem:[%s1938_s2 + $0x18] sm:$0xff]  ;;  %v305_v19 = vld [vmem:[%s1938_s2] sm:$0xff]  ;;  %s1768_s13 = scalar_lea.vmem %s1941_s5, %s1274_s7 }
  0x11   : > { %v306_v20 = vld [vmem:[%s1938_s2 + $0x8] sm:$0xff]  ;;  %v304_v22 = vld [vmem:[%s254_s11] sm:$0xff] }
  0x12   : > { %v362_v23 = vperm.slane %v304_v22, 0  ;;  %v363_v24 = vperm.slane %v304_v22, 4  ;;  %v472_v50 = vperm.slane %v304_v22, 1  ;;  %v473_v51 = vperm.slane %v304_v22, 5 }
  0x13   : > { %v542_v52 = vperm.slane %v304_v22, 2  ;;  %v543_v53 = vperm.slane %v304_v22, 6  ;;  %v612_v56 = vperm.slane %v304_v22, 3  ;;  %v613_v57 = vperm.slane %v304_v22, 7 }
  0x14   : > { %v1538_v26 = vperm.slane %v362_v23, 0  ;;  %v1540_v27 = vperm.slane %v363_v24, 0  ;;  %v1577_v58 = vperm.slane %v472_v50, 1  ;;  %v1579_v59 = vperm.slane %v473_v51, 1 }
  0x15   : > { %v1581_v62 = vperm.slane %v542_v52, 2  ;;  %v1583_v63 = vperm.slane %v543_v53, 2 }
  0x16   : > { %1326 = vset.pattern.permute.xlu0 %v1377_v4 }
  0x17   : > { %348 = vperm.xlu2 %1322, %v318_v5   ;;  %338 = vperm.xlu1 %1321, %v1455_v6  }
  0x18   : > { %323 = vperm.xlu0 %1326, %v1460_v7  }
  0x1f   : > { %358 = vperm.xlu1 %1321, %v320_v8   ;;  %416 = vperm.xlu2 %1322, %v311_v9  }
  0x20   : > { %328 = vperm.xlu0 %1326, %v1474_v10  }
  0x27   : > { %1323 = vset.pattern.permute.xlu1 %v1378_v11  ;;  %1324 = vset.pattern.permute.xlu2 %v1378_v11 }
  0x28   : > { %465 = vperm.xlu1 %1323, %v319_v0   ;;  %353 = vperm.xlu0 %1326, %v319_v0  }
  0x29   : > { %469 = vperm.xlu2 %1324, %v320_v8  }
  0x30   : > { %1327 = vset.pattern.permute.xlu1 %v1376_v3  ;;  %421 = vperm.xlu0 %1326, %v312_v12  }
  0x31   : > { %1328 = vset.pattern.permute.xlu2 %v1377_v4  ;;  %539 = vperm.xlu1 %1327, %v320_v8  }
  0x32   : > { %406 = vperm.xlu2 %1328, %v309_v13  }
  0x38   : > { %396 = vperm.xlu0 %1326, %v307_v14  }
  0x39   : > { %1329 = vset.pattern.permute.xlu1 %v1377_v4 }
  0x3a   : > { %1330 = vset.pattern.permute.xlu2 %v1378_v11  ;;  %411 = vperm.xlu1 %1329, %v310_v15  }
  0x3b   : > { %457 = vperm.xlu2 %1330, %v1437_v1  }
  0x40   : > { %1339 = vset.pattern.permute.xlu0 %v1379_v16 }
  0x41   : > { %601 = vperm.xlu0 %1339, %v318_v5  }
  0x42   : > { %1331 = vset.pattern.permute.xlu1 %v1379_v16 }
  0x43   : > { %1332 = vset.pattern.permute.xlu2 %v1379_v16  ;;  %605 = vperm.xlu1 %1331, %v319_v0  }
  0x44   : > { %609 = vperm.xlu2 %1332, %v320_v8  }
  0x49   : > { %1340 = vset.pattern.permute.xlu0 %v1378_v11 }
  0x4a   : > { %461 = vperm.xlu0 %1340, %v318_v5  }
  0x4b   : > { %1333 = vset.pattern.permute.xlu1 %v1376_v3 }
  0x4c   : > { %1334 = vset.pattern.permute.xlu2 %v1376_v3  ;;  %527 = vperm.xlu1 %1333, %v1437_v1  }
  0x4d   : > { %531 = vperm.xlu2 %1334, %v318_v5   ;;  %v1589_v5 = vperm.slane %v612_v56, 3 }
  0x52   : > { %441 = vperm.xlu0 %1340, %v1460_v7  }
  0x54   : > { %1335 = vset.pattern.permute.xlu1 %v1377_v4 }
  0x55   : > { %1336 = vset.pattern.permute.xlu2 %v1378_v11  ;;  %401 = vperm.xlu1 %1335, %v308_v17  }
  0x56   : > { %449 = vperm.xlu2 %1336, %v1442_v2  }
  0x5a   : > { %1349 = vset.pattern.permute.xlu0 %v1376_v3 }
  0x5b   : > { %515 = vperm.xlu0 %1349, %v1474_v10  }
  0x5d   : > { %1337 = vset.pattern.permute.xlu1 %v1378_v11 }
  0x5e   : > { %1338 = vset.pattern.permute.xlu2 %v1379_v16  ;;  %453 = vperm.xlu1 %1337, %v1455_v6  }
  0x5f   : > { %597 = vperm.xlu2 %1338, %v1437_v1  }
  0x63   : > { %1351 = vset.pattern.permute.xlu0 %v1379_v16 }
  0x66   : > { %1341 = vset.pattern.permute.xlu1 %v1376_v3 }
  0x67   : > { %1342 = vset.pattern.permute.xlu2 %v1376_v3  ;;  %519 = vperm.xlu1 %1341, %v1442_v2  }
  0x68   : > { %523 = vperm.xlu2 %1342, %v1455_v6  }
  0x69   : > { %v1515_v18 = vpop.permute.xlu2 %343 }
  0x6a   : > { %v377_v50 = vmul.f32 %v1540_v27, %v1515_v18 }
  0x6f   : > { %1343 = vset.pattern.permute.xlu1 %v1377_v4 }
  0x70   : > { %1344 = vset.pattern.permute.xlu2 %v1377_v4  ;;  %386 = vperm.xlu1 %1343, %v305_v19  }
  0x71   : > { %391 = vperm.xlu2 %1344, %v306_v20   ;;  %v1530_v21 = vpop.permute.xlu2 %348 }
  0x72   : > { %v378_v51 = vmul.f32 %v1538_v26, %v1530_v21  ;;  %v379_v52 = vmul.f32 %v1540_v27, %v1530_v21 }
  0x78   : > { %1345 = vset.pattern.permute.xlu1 %v1378_v11 }
  0x79   : > { %445 = vperm.xlu1 %1345, %v1474_v10   ;;  %1346 = vset.pattern.permute.xlu2 %v1379_v16  ;;  %v417_v25 = vpop.permute.xlu2 %416 }
  0x7a   : > { %589 = vperm.xlu2 %1346, %v1442_v2  }
  0x80   : > { %v1542_v28 = vpop.permute.xlu0 %535 }
  0x81   : > { %v334_v29 = vpop.permute.xlu1 %333  ;;  %1347 = vset.pattern.permute.xlu1 %v1379_v16 }
  0x82   : > { %v372_v30 = vmul.f32 %v1538_v26, %v334_v29  ;;  %v373_v31 = vmul.f32 %v1540_v27, %v334_v29  ;;  %593 = vperm.xlu1 %1347, %v1455_v6   ;;  %1348 = vset.pattern.permute.xlu2 %v1376_v3  ;;  %v1591_v6 = vperm.slane %v613_v57, 3  ;;  %v560_v29 = vmul.f32 %v1581_v62, %v1542_v28 }
  0x83   : > { %511 = vperm.xlu2 %1348, %v1460_v7   ;;  %v470_v32 = vpop.permute.xlu2 %469 }
  0x84   : > { %v492_v0 = vmul.f32 %v1577_v58, %v470_v32  ;;  %v493_v1 = vmul.f32 %v1579_v59, %v470_v32 }
  0x89   : > { %v339_v33 = vpop.permute.xlu1 %338 }
  0x8a   : > { %v1551_v34 = vmul.f32 %v1538_v26, %v339_v33  ;;  %v1554_v35 = vmul.f32 %v1540_v27, %v339_v33  ;;  %v324_v36 = vpop.permute.xlu0 %323  ;;  %581 = vperm.xlu1 %1347, %v1460_v7  }
  0x8b   : > { %v1558_v37 = vmul.f32 %v1538_v26, %v324_v36  ;;  %v1561_v38 = vmul.f32 %v1540_v27, %v324_v36  ;;  %1350 = vset.pattern.permute.xlu2 %v1379_v16 }
  0x8c   : > { %585 = vperm.xlu2 %1350, %v1474_v10   ;;  %v1565_v39 = vpop.permute.xlu2 %406 }
  0x91   : > { %v359_v40 = vpop.permute.xlu1 %358 }
  0x92   : > { %v329_v41 = vpop.permute.xlu0 %328  ;;  %v382_v54 = vmul.f32 %v1538_v26, %v359_v40  ;;  %v383_v55 = vmul.f32 %v1540_v27, %v359_v40  ;;  %v376_v40 = vmul.f32 %v1538_v26, %v1515_v18 }
  0x93   : > { %v1568_v42 = vmul.f32 %v1538_v26, %v329_v41  ;;  %v1571_v43 = vmul.f32 %v1540_v27, %v329_v41 }
  0x94   : > { %v432_v53 = vadd.f32 %v1565_v39, %v376_v40 }
  0x95   : > { %v1573_v44 = vpop.permute.xlu2 %457 }
  0x96   : > { %v486_v41 = vmul.f32 %v1577_v58, %v1573_v44 }
  0x98   : > { %v502_v18 = vadd.f32 %v486_v41, %v432_v53 }
  0x9a   : > { %v466_v45 = vpop.permute.xlu1 %465  ;;  %v354_v46 = vpop.permute.xlu0 %353 }
  0x9b   : > { %v380_v2 = vmul.f32 %v1538_v26, %v354_v46  ;;  %v381_v3 = vmul.f32 %v1540_v27, %v354_v46  ;;  %v490_v17 = vmul.f32 %v1577_v58, %v466_v45  ;;  %v491_v19 = vmul.f32 %v1579_v59, %v466_v45 }
  0x9d   : > { %v436_v15 = vadd.f32 %v417_v25, %v380_v2  ;;  %v437_v16 = vadd.f32 %v417_v25, %v381_v3 }
  0x9e   : > { %v610_v47 = vpop.permute.xlu2 %609 }
  0x9f   : > { %v632_v20 = vmul.f32 %v1589_v5, %v610_v47  ;;  %v633_v22 = vmul.f32 %v1591_v6, %v610_v47  ;;  %v507_v32 = vadd.f32 %v491_v19, %v437_v16 }
  0xa2   : > { %v422_v48 = vpop.permute.xlu0 %421 }
  0xa3   : > { %v540_v49 = vpop.permute.xlu1 %539  ;;  %v438_v60 = vadd.f32 %v422_v48, %v382_v54  ;;  %v439_v61 = vadd.f32 %v422_v48, %v383_v55 }
  0xa4   : > { %v562_v12 = vmul.f32 %v1581_v62, %v540_v49  ;;  %v563_v13 = vmul.f32 %v1583_v63, %v540_v49 }
  0xa5   : > { %v508_v10 = vadd.f32 %v492_v0, %v438_v60  ;;  %v509_v11 = vadd.f32 %v493_v1, %v439_v61  ;;  %v433_v60 = vadd.f32 %v1565_v39, %v377_v50  ;;  %v487_v61 = vmul.f32 %v1579_v59, %v1573_v44 }
  0xa7   : > { %v532_v7 = vpop.permute.xlu2 %531  ;;  %v578_v23 = vadd.f32 %v562_v12, %v508_v10  ;;  %v579_v24 = vadd.f32 %v563_v13, %v509_v11  ;;  %v503_v16 = vadd.f32 %v487_v61, %v433_v60 }
  0xa8   : > { %v558_v0 = vmul.f32 %v1581_v62, %v532_v7  ;;  %v559_v21 = vmul.f32 %v1583_v63, %v532_v7 }
  0xa9   : > { %v648_v25 = vadd.f32 %v632_v20, %v578_v23  ;;  %v649_v36 = vadd.f32 %v633_v22, %v579_v24 }
  0xaa   : > { %v397_v4 = vpop.permute.xlu0 %396 }
  0xab   : > { %v1593_v8 = vadd.f32 %v397_v4, %v372_v30  ;;  %v1595_v9 = vadd.f32 %v397_v4, %v373_v31  ;;  %v561_v30 = vmul.f32 %v1583_v63, %v1542_v28  ;;  %v506_v31 = vadd.f32 %v490_v17, %v436_v15 }
  0xac   : > { %v412_v14 = vpop.permute.xlu1 %411  ;;  %v680_v56 = vmul.f32 0.2, %v648_v25  ;;  %v681_v57 = vmul.f32 0.2, %v649_v36  ;;  %vm664_vm0 = vcmp.ge.f32.partialorder %v648_v25, 0.0  ;;  %vm665_vm1 = vcmp.ge.f32.partialorder %v649_v36, 0.0 }
  0xad   : > { %v576_v47 = vadd.f32 %v560_v29, %v506_v31  ;;  %v577_v48 = vadd.f32 %v561_v30, %v507_v32  ;;  %v434_v27 = vadd.f32 %v412_v14, %v378_v51  ;;  %v435_v2 = vadd.f32 %v412_v14, %v379_v52 }
  0xae   : > { %v696_v10 = vsel %vm664_vm0, %v648_v25, %v680_v56  ;;  %v697_v39 = vsel %vm665_vm1, %v649_v36, %v681_v57  ;;  %vm762_vm0 = vcmask 523264   ;;  %vm271_vm1 = vcmask 7168  }
  0xb0   : > { %v1611_v45 = vpop.permute.xlu2 %449 }
  0xb3   : > { %v602_v33 = vpop.permute.xlu0 %601 }
  0xb4   : > { %v628_v29 = vmul.f32 %v1589_v5, %v602_v33  ;;  %v629_v30 = vmul.f32 %v1591_v6, %v602_v33 }
  0xb5   : > { %v606_v46 = vpop.permute.xlu1 %605 }
  0xb6   : > { %v630_v49 = vmul.f32 %v1589_v5, %v606_v46  ;;  %v631_v28 = vmul.f32 %v1591_v6, %v606_v46 }
  0xb8   : > { %v646_v54 = vadd.f32 %v630_v49, %v576_v47  ;;  %v647_v55 = vadd.f32 %v631_v28, %v577_v48 }
  0xb9   : > { %v598_v11 = vpop.permute.xlu2 %597 }
  0xba   : > { %vm662_vm2 = vcmp.ge.f32.partialorder %v646_v54, 0.0  ;;  %v678_v26 = vmul.f32 0.2, %v646_v54  ;;  %vm663_vm3 = vcmp.ge.f32.partialorder %v647_v55, 0.0  ;;  %v679_v1 = vmul.f32 0.2, %v647_v55 }
  0xbb   : > { %v626_v17 = vmul.f32 %v1589_v5, %v598_v11  ;;  %v627_v7 = vmul.f32 %v1591_v6, %v598_v11 }
  0xbc   : > { %v462_v3 = vpop.permute.xlu0 %461  ;;  %v694_v4 = vsel %vm662_vm2, %v646_v54, %v678_v26  ;;  %v695_v15 = vsel %vm663_vm3, %v647_v55, %v679_v1 }
  0xbd   : > { %v488_v44 = vmul.f32 %v1577_v58, %v462_v3  ;;  %v489_v12 = vmul.f32 %v1579_v59, %v462_v3  ;;  %v720_v13 = vpack.c.bf16 %v696_v10, %v694_v4  ;;  %v721_v20 = vpack.c.bf16 %v697_v39, %v695_v15 }
  0xbe   : > { %v528_v19 = vpop.permute.xlu1 %527 }
  0xbf   : > { %v504_v22 = vadd.f32 %v488_v44, %v434_v27  ;;  %v505_v14 = vadd.f32 %v489_v12, %v435_v2  ;;  %v556_v23 = vmul.f32 %v1581_v62, %v528_v19  ;;  %v557_v24 = vmul.f32 %v1583_v63, %v528_v19  ;;  %791 = vmatpush.bf16.msra.mxu0 %v720_v13 }
  0xc0   : > { %1284 = vmatpush.bf16.msra.mxu2 %v720_v13  ;;  %840 = vmatpush.bf16.msra.mxu1 %v721_v20  ;;  %v483_v27 = vmul.f32 %v1579_v59, %v1611_v45 }
  0xc1   : > { %v574_v31 = vadd.f32 %v558_v0, %v504_v22  ;;  %v575_v32 = vadd.f32 %v559_v21, %v505_v14  ;;  %v572_v25 = vadd.f32 %v556_v23, %v502_v18  ;;  %v573_v36 = vadd.f32 %v557_v24, %v503_v16  ;;  %1288 = vmatpush.bf16.msra.mxu3 %v721_v20 }
  0xc2   : > { %v524_v57 = vpop.permute.xlu2 %523  ;;  %v482_v21 = vmul.f32 %v1577_v58, %v1611_v45  ;;  %v499_v11 = vadd.f32 %v483_v27, %v1595_v9 }
  0xc3   : > { %v642_v40 = vadd.f32 %v626_v17, %v572_v25  ;;  %v643_v41 = vadd.f32 %v627_v7, %v573_v36  ;;  %v644_v46 = vadd.f32 %v628_v29, %v574_v31  ;;  %v645_v47 = vadd.f32 %v629_v30, %v575_v32 }
  0xc4   : > { %v442_v1 = vpop.permute.xlu0 %441  ;;  %v498_v4 = vadd.f32 %v482_v21, %v1593_v8  ;;  %v554_v9 = vmul.f32 %v1581_v62, %v524_v57  ;;  %v555_v20 = vmul.f32 %v1583_v63, %v524_v57 }
  0xc5   : > { %vm658_vm4 = vcmp.ge.f32.partialorder %v642_v40, 0.0  ;;  %v674_v48 = vmul.f32 0.2, %v642_v40  ;;  %vm659_vm5 = vcmp.ge.f32.partialorder %v643_v41, 0.0  ;;  %v675_v49 = vmul.f32 0.2, %v643_v41 }
  0xc6   : > { %vm660_vm6 = vcmp.ge.f32.partialorder %v644_v46, 0.0  ;;  %v676_v28 = vmul.f32 0.2, %v644_v46  ;;  %vm661_vm7 = vcmp.ge.f32.partialorder %v645_v47, 0.0  ;;  %v677_v50 = vmul.f32 0.2, %v645_v47 }
  0xc7   : > { %v402_v33 = vpop.permute.xlu1 %401  ;;  %v690_v51 = vsel %vm658_vm4, %v642_v40, %v674_v48  ;;  %v691_v52 = vsel %vm659_vm5, %v643_v41, %v675_v49  ;;  %v478_v30 = vmul.f32 %v1577_v58, %v442_v1  ;;  %v479_v31 = vmul.f32 %v1579_v59, %v442_v1 }
  0xc8   : > { %v692_v53 = vsel %vm660_vm6, %v644_v46, %v676_v28  ;;  %v693_v54 = vsel %vm661_vm7, %v645_v47, %v677_v50  ;;  %v430_v45 = vadd.f32 %v402_v33, %v1551_v34  ;;  %v431_v16 = vadd.f32 %v402_v33, %v1554_v35 }
  0xc9   : > { %v718_v55 = vpack.c.bf16 %v692_v53, %v690_v51  ;;  %v719_v56 = vpack.c.bf16 %v693_v54, %v691_v52 }
  0xcb   : > { %792 = vmatpush.bf16.msra.mxu0 %v718_v55  ;;  %1285 = vmatpush.bf16.msra.mxu2 %v718_v55  ;;  %v392_v61 = vpop.permute.xlu2 %391 }
  0xcc   : > { %841 = vmatpush.bf16.msra.mxu1 %v719_v56  ;;  %1289 = vmatpush.bf16.msra.mxu3 %v719_v56  ;;  %v426_v24 = vadd.f32 %v392_v61, %v1568_v42  ;;  %v427_v34 = vadd.f32 %v392_v61, %v1571_v43 }
  0xcd   : > { %v516_v23 = vpop.permute.xlu0 %515 }
  0xce   : > { %v550_v36 = vmul.f32 %v1581_v62, %v516_v23  ;;  %v551_v40 = vmul.f32 %v1583_v63, %v516_v23  ;;  %v1283_v23 = vld [vmem:[%s1939_s3 + $0x38] sm:$0xff] }
  0xd0   : > { %v454_v60 = vpop.permute.xlu1 %453 }
  0xd1   : > { %v484_v44 = vmul.f32 %v1577_v58, %v454_v60  ;;  %v485_v12 = vmul.f32 %v1579_v59, %v454_v60 }
  0xd3   : > { %v500_v22 = vadd.f32 %v484_v44, %v430_v45  ;;  %v501_v14 = vadd.f32 %v485_v12, %v431_v16 }
  0xd4   : > { %v590_v0 = vpop.permute.xlu2 %589 }
  0xd5   : > { %v622_v15 = vmul.f32 %v1589_v5, %v590_v0  ;;  %v623_v7 = vmul.f32 %v1591_v6, %v590_v0  ;;  %v570_v48 = vadd.f32 %v554_v9, %v500_v22  ;;  %v571_v43 = vadd.f32 %v555_v20, %v501_v14  ;;  %v1277_v9 = vld [vmem:[%s1939_s3 + $0x8] sm:$0xff]  ;;  %v1278_v22 = vld [vmem:[%s1939_s3 + $0x10] sm:$0xff] }
  0xd6   : > { %v1281_v20 = vld [vmem:[%s1939_s3 + $0x28] sm:$0xff]  ;;  %v1282_v14 = vld [vmem:[%s1939_s3 + $0x30] sm:$0xff] }
  0xd9   : > { %v520_v18 = vpop.permute.xlu1 %519 }
  0xda   : > { %v552_v2 = vmul.f32 %v1581_v62, %v520_v18  ;;  %v553_v3 = vmul.f32 %v1583_v63, %v520_v18 }
  0xdc   : > { %v568_v13 = vadd.f32 %v552_v2, %v498_v4  ;;  %v569_v17 = vadd.f32 %v553_v3, %v499_v11 }
  0xdd   : > { %v512_v10 = vpop.permute.xlu2 %511 }
  0xde   : > { %v638_v29 = vadd.f32 %v622_v15, %v568_v13  ;;  %v639_v35 = vadd.f32 %v623_v7, %v569_v17  ;;  %v548_v55 = vmul.f32 %v1581_v62, %v512_v10  ;;  %v549_v56 = vmul.f32 %v1583_v63, %v512_v10 }
  0xe0   : > { %vm654_vm8 = vcmp.ge.f32.partialorder %v638_v29, 0.0  ;;  %vm655_vm9 = vcmp.ge.f32.partialorder %v639_v35, 0.0  ;;  %v671_v33 = vmul.f32 0.2, %v639_v35 }
  0xe2   : > { %v387_v26 = vpop.permute.xlu1 %386  ;;  %v687_v18 = vsel %vm655_vm9, %v639_v35, %v671_v33 }
  0xe3   : > { %v424_v46 = vadd.f32 %v387_v26, %v1558_v37  ;;  %v425_v47 = vadd.f32 %v387_v26, %v1561_v38 }
  0xe5   : > { %v494_v38 = vadd.f32 %v478_v30, %v424_v46  ;;  %v495_v54 = vadd.f32 %v479_v31, %v425_v47 }
  0xe6   : > { %v586_v41 = vpop.permute.xlu2 %585 }
  0xe7   : > { %v620_v28 = vmul.f32 %v1589_v5, %v586_v41  ;;  %v621_v50 = vmul.f32 %v1591_v6, %v586_v41  ;;  %v564_v4 = vadd.f32 %v548_v55, %v494_v38 }
  0xeb   : > { %v446_v39 = vpop.permute.xlu1 %445 }
  0xec   : > { %v480_v8 = vmul.f32 %v1577_v58, %v446_v39  ;;  %v481_v19 = vmul.f32 %v1579_v59, %v446_v39  ;;  %v670_v59 = vmul.f32 0.2, %v638_v29  ;;  %v565_v39 = vadd.f32 %v549_v56, %v495_v54 }
  0xee   : > { %v496_v32 = vadd.f32 %v480_v8, %v426_v24  ;;  %v497_v25 = vadd.f32 %v481_v19, %v427_v34  ;;  %v686_v61 = vsel %vm654_vm8, %v638_v29, %v670_v59  ;;  %v1276_v8 = vld [vmem:[%s1939_s3] sm:$0xff]  ;;  %v1279_v24 = vld [vmem:[%s1939_s3 + $0x18] sm:$0xff] }
  0xef   : > { %v1280_v19 = vld [vmem:[%s1939_s3 + $0x20] sm:$0xff] }
  0xf0   : > { %v566_v51 = vadd.f32 %v550_v36, %v496_v32  ;;  %v567_v52 = vadd.f32 %v551_v40, %v497_v25 }
  0xf2   : > { %v636_v0 = vadd.f32 %v620_v28, %v566_v51  ;;  %v637_v26 = vadd.f32 %v621_v50, %v567_v52 }
  0xf4   : > { %v594_v42 = vpop.permute.xlu1 %593  ;;  %v668_v44 = vmul.f32 0.2, %v636_v0  ;;  %v669_v12 = vmul.f32 0.2, %v637_v26  ;;  %vm652_vm12 = vcmp.ge.f32.partialorder %v636_v0, 0.0  ;;  %vm653_vm13 = vcmp.ge.f32.partialorder %v637_v26, 0.0 }
  0xf5   : > { %v624_v49 = vmul.f32 %v1589_v5, %v594_v42  ;;  %v625_v58 = vmul.f32 %v1591_v6, %v594_v42 }
  0xf6   : > { %v684_v16 = vsel %vm652_vm12, %v636_v0, %v668_v44 }
  0xf7   : > { %v640_v37 = vadd.f32 %v624_v49, %v570_v48  ;;  %v641_v53 = vadd.f32 %v625_v58, %v571_v43 }
  0xf9   : > { %vm656_vm10 = vcmp.ge.f32.partialorder %v640_v37, 0.0  ;;  %v672_v57 = vmul.f32 0.2, %v640_v37  ;;  %vm657_vm11 = vcmp.ge.f32.partialorder %v641_v53, 0.0  ;;  %v673_v60 = vmul.f32 0.2, %v641_v53 }
  0xfb   : > { %v688_v21 = vsel %vm656_vm10, %v640_v37, %v672_v57  ;;  %v689_v27 = vsel %vm657_vm11, %v641_v53, %v673_v60 }
  0xfc   : > { %v582_v1 = vpop.permute.xlu1 %581  ;;  %v716_v2 = vpack.c.bf16 %v688_v21, %v686_v61  ;;  %v717_v3 = vpack.c.bf16 %v689_v27, %v687_v18 }
  0xfd   : > { %v618_v62 = vmul.f32 %v1589_v5, %v582_v1  ;;  %v619_v63 = vmul.f32 %v1591_v6, %v582_v1  ;;  %v685_v5 = vsel %vm653_vm13, %v637_v26, %v669_v12 }
  0xfe   : > { %793 = vmatpush.bf16.msra.mxu0 %v716_v2  ;;  %1286 = vmatpush.bf16.msra.mxu2 %v716_v2 }
  0xff   : > { %v634_v10 = vadd.f32 %v618_v62, %v564_v4  ;;  %v635_v11 = vadd.f32 %v619_v63, %v565_v39  ;;  %842 = vmatpush.bf16.msra.mxu1 %v717_v3  ;;  %1290 = vmatpush.bf16.msra.mxu3 %v717_v3 }
 0x101   : > { %vm650_vm14 = vcmp.ge.f32.partialorder %v634_v10, 0.0  ;;  %v666_v13 = vmul.f32 0.2, %v634_v10  ;;  %vm651_vm15 = vcmp.ge.f32.partialorder %v635_v11, 0.0  ;;  %v667_v15 = vmul.f32 0.2, %v635_v11 }
 0x103   : > { %v682_v45 = vsel %vm650_vm14, %v634_v10, %v666_v13  ;;  %v683_v17 = vsel %vm651_vm15, %v635_v11, %v667_v15 }
 0x104   : > { %v714_v7 = vpack.c.bf16 %v684_v16, %v682_v45  ;;  %v715_v6 = vpack.c.bf16 %v685_v5, %v683_v17 }
 0x106   : > { %794 = vmatpush.bf16.msra.mxu0 %v714_v7  ;;  %1287 = vmatpush.bf16.msra.mxu2 %v714_v7 }
 0x107   : > { %843 = vmatpush.bf16.msra.mxu1 %v715_v6  ;;  %1291 = vmatpush.bf16.msra.mxu3 %v715_v6 }
 0x109   : > { %1255 = vmatmul.msk.bf16.vlgmr.msra.gmra.mxu0 %vm762_vm0, %v1276_v8  ;;  %1259 = vmatmul.msk.bf16.vlgmr.msra.gmra.mxu2 %vm762_vm0, %v1280_v19 }
 0x10a   : > { %1263 = vmatmul.msk.bf16.vlgmr.msra.gmra.mxu1 %vm762_vm0, %v1276_v8  ;;  %1267 = vmatmul.msk.bf16.vlgmr.msra.gmra.mxu3 %vm762_vm0, %v1280_v19 }
 0x119   : > { %1256 = vmatmul.msk.bf16.gmra.mxu0 %vm762_vm0, %v1277_v9  ;;  %1260 = vmatmul.msk.bf16.gmra.mxu2 %vm762_vm0, %v1281_v20 }
 0x11a   : > { %1264 = vmatmul.msk.bf16.gmra.mxu1 %vm762_vm0, %v1277_v9  ;;  %1268 = vmatmul.msk.bf16.gmra.mxu3 %vm762_vm0, %v1281_v20 }
 0x129   : > { %1257 = vmatmul.msk.bf16.gmra.mxu0 %vm762_vm0, %v1278_v22  ;;  %1261 = vmatmul.msk.bf16.gmra.mxu2 %vm762_vm0, %v1282_v14 }
 0x12a   : > { %1265 = vmatmul.msk.bf16.gmra.mxu1 %vm762_vm0, %v1278_v22  ;;  %1269 = vmatmul.msk.bf16.gmra.mxu3 %vm762_vm0, %v1282_v14 }
 0x139   : > { %1262 = vmatmul.msk.bf16.gmra.mxu2 %vm762_vm0, %v1283_v23  ;;  %1258 = vmatmul.msk.bf16.gmra.mxu0 %vm762_vm0, %v1279_v24 }
 0x13a   : > { %1270 = vmatmul.msk.bf16.gmra.mxu3 %vm762_vm0, %v1283_v23  ;;  %1266 = vmatmul.msk.bf16.gmra.mxu1 %vm762_vm0, %v1279_v24 }
 0x186   : > { %v796_v34 = vpop.f32.mrf.mxu0 }
 0x187   : > { %v845_v29 = vpop.f32.mrf.mxu1  ;;  %v998_v30 = vmul.f32 %v796_v34, %v796_v34 }
 0x188   : > { %v901_v35 = vadd.f32 %v845_v29, %v796_v34  ;;  %v999_v31 = vmul.f32 %v845_v29, %v845_v29 }
 0x18a   : > { %902 = vadd.xlane.f32.xlu1 %v901_v35  ;;  %v1030_v47 = vadd.f32 %v999_v31, %v998_v30 }
 0x18c   : > { %v816_v32 = vpop.f32.mrf.mxu2 }
 0x18d   : > { %v1014_v25 = vmul.f32 %v816_v32, %v816_v32  ;;  %v865_v36 = vpop.f32.mrf.mxu3 }
 0x18e   : > { %v1015_v40 = vmul.f32 %v865_v36, %v865_v36  ;;  %v798_v41 = vpop.f32.mrf.mxu0  ;;  %v925_v46 = vadd.f32 %v865_v36, %v816_v32 }
 0x18f   : > { %v847_v42 = vpop.f32.mrf.mxu1  ;;  %v1000_v37 = vmul.f32 %v798_v41, %v798_v41 }
 0x190   : > { %926 = vadd.xlane.f32.xlu2 %v925_v46  ;;  %v1054_v48 = vadd.f32 %v1015_v40, %v1014_v25  ;;  %v904_v28 = vadd.f32 %v847_v42, %v798_v41  ;;  %v1001_v53 = vmul.f32 %v847_v42, %v847_v42  ;;  %v1380_v40 = vmov 0.0  }
 0x191   : > { %272 = vst.msk [vmem:[%s1720_s10] sm:$0xff] %vm271_vm1, %v1380_v40 }
 0x192   : > { %1055 = vadd.xlane.f32.xlu0 %v1054_v48  ;;  %1031 = vadd.xlane.f32.xlu1 %v1030_v47  ;;  %v1033_v55 = vadd.f32 %v1001_v53, %v1000_v37  ;;  %273 = vst.msk [vmem:[%s1720_s10 + $0x8] sm:$0xff] %vm271_vm1, %v1380_v40 }
 0x193   : > { %274 = vst.msk [vmem:[%s1720_s10 + $0x10] sm:$0xff] %vm271_vm1, %v1380_v40 }
 0x194   : > { %v818_v43 = vpop.f32.mrf.mxu2  ;;  %275 = vst.msk [vmem:[%s1720_s10 + $0x18] sm:$0xff] %vm271_vm1, %v1380_v40 }
 0x195   : > { %v1016_v49 = vmul.f32 %v818_v43, %v818_v43  ;;  %v867_v58 = vpop.f32.mrf.mxu3  ;;  %276 = vst.msk [vmem:[%s1720_s10 + $0x20] sm:$0xff] %vm271_vm1, %v1380_v40 }
 0x196   : > { %v1017_v59 = vmul.f32 %v867_v58, %v867_v58  ;;  %v801_v50 = vpop.f32.mrf.mxu0  ;;  %v928_v51 = vadd.f32 %v867_v58, %v818_v43  ;;  %277 = vst.msk [vmem:[%s1720_s10 + $0x28] sm:$0xff] %vm271_vm1, %v1380_v40 }
 0x197   : > { %v850_v33 = vpop.f32.mrf.mxu1  ;;  %v1002_v18 = vmul.f32 %v801_v50, %v801_v50  ;;  %278 = vst.msk [vmem:[%s1720_s10 + $0x30] sm:$0xff] %vm271_vm1, %v1380_v40 }
 0x198   : > { %905 = vadd.xlane.f32.xlu2 %v904_v28  ;;  %v1057_v52 = vadd.f32 %v1017_v59, %v1016_v49  ;;  %v907_v57 = vadd.f32 %v850_v33, %v801_v50  ;;  %v1003_v0 = vmul.f32 %v850_v33, %v850_v33  ;;  %279 = vst.msk [vmem:[%s1720_s10 + $0x38] sm:$0xff] %vm271_vm1, %v1380_v40 }
 0x199   : > { %280 = vst.msk [vmem:[%s1720_s10 + $0x40] sm:$0xff] %vm271_vm1, %v1380_v40 }
 0x19a   : > { %929 = vadd.xlane.f32.xlu0 %v928_v51  ;;  %1058 = vadd.xlane.f32.xlu1 %v1057_v52  ;;  %v1036_v1 = vadd.f32 %v1003_v0, %v1002_v18  ;;  %281 = vst.msk [vmem:[%s1720_s10 + $0x48] sm:$0xff] %vm271_vm1, %v1380_v40  ;;  %v885_v0 = vld [vmem:[%s1720_s10] sm:$0xff] }
 0x19b   : > { %282 = vst.msk [vmem:[%s1720_s10 + $0x50] sm:$0xff] %vm271_vm1, %v1380_v40 }
 0x19c   : > { %v821_v38 = vpop.f32.mrf.mxu2  ;;  %283 = vst.msk [vmem:[%s1720_s10 + $0x58] sm:$0xff] %vm271_vm1, %v1380_v40 }
 0x19d   : > { %v870_v54 = vpop.f32.mrf.mxu3  ;;  %v1018_v39 = vmul.f32 %v821_v38, %v821_v38  ;;  %284 = vst.msk [vmem:[%s1720_s10 + $0x60] sm:$0xff] %vm271_vm1, %v1380_v40 }
 0x19e   : > { %v931_v56 = vadd.f32 %v870_v54, %v821_v38  ;;  %v803_v60 = vpop.f32.mrf.mxu0  ;;  %v1019_v62 = vmul.f32 %v870_v54, %v870_v54  ;;  %285 = vst.msk [vmem:[%s1720_s10 + $0x68] sm:$0xff] %vm271_vm1, %v1380_v40 }
 0x19f   : > { %v852_v61 = vpop.f32.mrf.mxu1  ;;  %v1004_v26 = vmul.f32 %v803_v60, %v803_v60  ;;  %286 = vst.msk [vmem:[%s1720_s10 + $0x70] sm:$0xff] %vm271_vm1, %v1380_v40 }
 0x1a0   : > { %1034 = vadd.xlane.f32.xlu2 %v1033_v55  ;;  %v1005_v21 = vmul.f32 %v852_v61, %v852_v61  ;;  %v910_v27 = vadd.f32 %v852_v61, %v803_v60  ;;  %v1060_v12 = vadd.f32 %v1019_v62, %v1018_v39  ;;  %287 = vst.msk [vmem:[%s1720_s10 + $0x78] sm:$0xff] %vm271_vm1, %v1380_v40 }
 0x1a1   : > { %288 = vst.msk [vmem:[%s1768_s13] sm:$0xff] %vm271_vm1, %v1380_v40 }
 0x1a2   : > { %932 = vadd.xlane.f32.xlu1 %v931_v56  ;;  %908 = vadd.xlane.f32.xlu0 %v907_v57  ;;  %v1039_v2 = vadd.f32 %v1005_v21, %v1004_v26  ;;  %289 = vst.msk [vmem:[%s1768_s13 + $0x8] sm:$0xff] %vm271_vm1, %v1380_v40 }
 0x1a3   : > { %290 = vst.msk [vmem:[%s1768_s13 + $0x10] sm:$0xff] %vm271_vm1, %v1380_v40 }
 0x1a4   : > { %v823_v3 = vpop.f32.mrf.mxu2  ;;  %291 = vst.msk [vmem:[%s1768_s13 + $0x18] sm:$0xff] %vm271_vm1, %v1380_v40 }
 0x1a5   : > { %v872_v4 = vpop.f32.mrf.mxu3  ;;  %v1020_v63 = vmul.f32 %v823_v3, %v823_v3  ;;  %292 = vst.msk [vmem:[%s1768_s13 + $0x20] sm:$0xff] %vm271_vm1, %v1380_v40 }
 0x1a6   : > { %v1021_v10 = vmul.f32 %v872_v4, %v872_v4  ;;  %v806_v11 = vpop.f32.mrf.mxu0  ;;  %v934_v7 = vadd.f32 %v872_v4, %v823_v3  ;;  %293 = vst.msk [vmem:[%s1768_s13 + $0x28] sm:$0xff] %vm271_vm1, %v1380_v40 }
 0x1a7   : > { %v855_v44 = vpop.f32.mrf.mxu1  ;;  %v1006_v20 = vmul.f32 %v806_v11, %v806_v11  ;;  %294 = vst.msk [vmem:[%s1768_s13 + $0x30] sm:$0xff] %vm271_vm1, %v1380_v40 }
 0x1a8   : > { %911 = vadd.xlane.f32.xlu2 %v910_v27  ;;  %v913_v13 = vadd.f32 %v855_v44, %v806_v11  ;;  %v1063_v15 = vadd.f32 %v1021_v10, %v1020_v63  ;;  %v1007_v22 = vmul.f32 %v855_v44, %v855_v44  ;;  %295 = vst.msk [vmem:[%s1768_s13 + $0x38] sm:$0xff] %vm271_vm1, %v1380_v40  ;;  %v893_v27 = vld [vmem:[%s1720_s10 + $0x40] sm:$0xff]  ;;  %v886_v11 = vld [vmem:[%s1720_s10 + $0x8] sm:$0xff] }
 0x1a9   : > { %296 = vst.msk [vmem:[%s1768_s13 + $0x40] sm:$0xff] %vm271_vm1, %v1380_v40  ;;  %v982_v3 = vld [vmem:[%s1768_s13] sm:$0xff] }
 0x1aa   : > { %1037 = vadd.xlane.f32.xlu0 %v1036_v1  ;;  %1040 = vadd.xlane.f32.xlu1 %v1039_v2  ;;  %v1042_v29 = vadd.f32 %v1007_v22, %v1006_v20  ;;  %297 = vst.msk [vmem:[%s1768_s13 + $0x48] sm:$0xff] %vm271_vm1, %v1380_v40 }
 0x1ab   : > { %298 = vst.msk [vmem:[%s1768_s13 + $0x50] sm:$0xff] %vm271_vm1, %v1380_v40 }
 0x1ac   : > { %v826_v45 = vpop.f32.mrf.mxu2  ;;  %299 = vst.msk [vmem:[%s1768_s13 + $0x58] sm:$0xff] %vm271_vm1, %v1380_v40 }
 0x1ad   : > { %v875_v16 = vpop.f32.mrf.mxu3  ;;  %v1022_v17 = vmul.f32 %v826_v45, %v826_v45  ;;  %300 = vst.msk [vmem:[%s1768_s13 + $0x60] sm:$0xff] %vm271_vm1, %v1380_v40 }
 0x1ae   : > { %v1023_v5 = vmul.f32 %v875_v16, %v875_v16  ;;  %v937_v6 = vadd.f32 %v875_v16, %v826_v45  ;;  %v808_v19 = vpop.f32.mrf.mxu0  ;;  %301 = vst.msk [vmem:[%s1768_s13 + $0x68] sm:$0xff] %vm271_vm1, %v1380_v40 }
 0x1af   : > { %v857_v9 = vpop.f32.mrf.mxu1  ;;  %v1008_v24 = vmul.f32 %v808_v19, %v808_v19  ;;  %302 = vst.msk [vmem:[%s1768_s13 + $0x70] sm:$0xff] %vm271_vm1, %v1380_v40 }
 0x1b0   : > { %1061 = vadd.xlane.f32.xlu2 %v1060_v12  ;;  %v1066_v8 = vadd.f32 %v1023_v5, %v1022_v17  ;;  %v1009_v34 = vmul.f32 %v857_v9, %v857_v9  ;;  %v916_v47 = vadd.f32 %v857_v9, %v808_v19  ;;  %303 = vst.msk [vmem:[%s1768_s13 + $0x78] sm:$0xff] %vm271_vm1, %v1380_v40  ;;  %v990_v2 = vld [vmem:[%s1768_s13 + $0x40] sm:$0xff]  ;;  %v894_v12 = vld [vmem:[%s1720_s10 + $0x48] sm:$0xff]  ;;  %v887_v19 = vld [vmem:[%s1720_s10 + $0x10] sm:$0xff] }
 0x1b2   : > { %1064 = vadd.xlane.f32.xlu0 %v1063_v15  ;;  %914 = vadd.xlane.f32.xlu1 %v913_v13  ;;  %v1045_v30 = vadd.f32 %v1009_v34, %v1008_v24  ;;  %v991_v13 = vld [vmem:[%s1768_s13 + $0x48] sm:$0xff]  ;;  %v888_v24 = vld [vmem:[%s1720_s10 + $0x18] sm:$0xff]  ;;  %v992_v40 = vld [vmem:[%s1768_s13 + $0x50] sm:$0xff] }
 0x1b4   : > { %v1710_v14 = vpop.f32.mrf.mxu2 }
 0x1b5   : > { %v1712_v23 = vpop.f32.mrf.mxu3  ;;  %v1024_v60 = vmul.f32 %v1710_v14, %v1710_v14 }
 0x1b6   : > { %v940_v35 = vadd.f32 %v1712_v23, %v1710_v14  ;;  %v811_v31 = vpop.f32.mrf.mxu0  ;;  %v1025_v61 = vmul.f32 %v1712_v23, %v1712_v23 }
 0x1b7   : > { %v860_v32 = vpop.f32.mrf.mxu1  ;;  %v1010_v25 = vmul.f32 %v811_v31, %v811_v31 }
 0x1b8   : > { %935 = vadd.xlane.f32.xlu2 %v934_v7  ;;  %v1011_v36 = vmul.f32 %v860_v32, %v860_v32  ;;  %v919_v48 = vadd.f32 %v860_v32, %v811_v31  ;;  %v1069_v18 = vadd.f32 %v1025_v61, %v1024_v60  ;;  %v983_v7 = vld [vmem:[%s1768_s13 + $0x8] sm:$0xff] }
 0x1ba   : > { %938 = vadd.xlane.f32.xlu0 %v937_v6  ;;  %1067 = vadd.xlane.f32.xlu1 %v1066_v8  ;;  %v1048_v42 = vadd.f32 %v1011_v36, %v1010_v25  ;;  %v895_v8 = vld [vmem:[%s1720_s10 + $0x50] sm:$0xff] }
 0x1bc   : > { %v831_v41 = vpop.f32.mrf.mxu2 }
 0x1bd   : > { %v880_v46 = vpop.f32.mrf.mxu3  ;;  %v1026_v37 = vmul.f32 %v831_v41, %v831_v41 }
 0x1be   : > { %v813_v43 = vpop.f32.mrf.mxu0  ;;  %v943_v58 = vadd.f32 %v880_v46, %v831_v41  ;;  %v1027_v53 = vmul.f32 %v880_v46, %v880_v46  ;;  %v993_v46 = vld [vmem:[%s1768_s13 + $0x58] sm:$0xff] }
 0x1bf   : > { %v862_v49 = vpop.f32.mrf.mxu1  ;;  %v1012_v51 = vmul.f32 %v813_v43, %v813_v43 }
 0x1c0   : > { %1043 = vadd.xlane.f32.xlu2 %v1042_v29  ;;  %v922_v50 = vadd.f32 %v862_v49, %v813_v43  ;;  %v1013_v52 = vmul.f32 %v862_v49, %v862_v49  ;;  %v1072_v56 = vadd.f32 %v1027_v53, %v1026_v37  ;;  %v984_v29 = vld [vmem:[%s1768_s13 + $0x10] sm:$0xff] }
 0x1c2   : > { %941 = vadd.xlane.f32.xlu1 %v940_v35  ;;  %1046 = vadd.xlane.f32.xlu0 %v1045_v30  ;;  %v1051_v55 = vadd.f32 %v1013_v52, %v1012_v51  ;;  %v985_v35 = vld [vmem:[%s1768_s13 + $0x18] sm:$0xff] }
 0x1c4   : > { %v833_v59 = vpop.f32.mrf.mxu2 }
 0x1c5   : > { %v882_v28 = vpop.f32.mrf.mxu3  ;;  %v1028_v38 = vmul.f32 %v833_v59, %v833_v59 }
 0x1c6   : > { %v946_v33 = vadd.f32 %v882_v28, %v833_v59  ;;  %v1029_v54 = vmul.f32 %v882_v28, %v882_v28  ;;  %v896_v59 = vld [vmem:[%s1720_s10 + $0x58] sm:$0xff] }
 0x1c8   : > { %917 = vadd.xlane.f32.xlu2 %v916_v47  ;;  %v1075_v57 = vadd.f32 %v1029_v54, %v1028_v38  ;;  %v889_v47 = vld [vmem:[%s1720_s10 + $0x20] sm:$0xff] }
 0x1c9   : > { %v986_v54 = vld [vmem:[%s1768_s13 + $0x20] sm:$0xff] }
 0x1ca   : > { %1049 = vadd.xlane.f32.xlu1 %v1048_v42  ;;  %920 = vadd.xlane.f32.xlu0 %v919_v48 }
 0x1d0   : > { %944 = vadd.xlane.f32.xlu2 %v943_v58 }
 0x1d2   : > { %947 = vadd.xlane.f32.xlu0 %v946_v33  ;;  %923 = vadd.xlane.f32.xlu1 %v922_v50  ;;  %v897_v50 = vld [vmem:[%s1720_s10 + $0x60] sm:$0xff] }
 0x1d3   : > { %v994_v33 = vld [vmem:[%s1768_s13 + $0x60] sm:$0xff] }
 0x1d8   : > { %1052 = vadd.xlane.f32.xlu2 %v1051_v55 }
 0x1da   : > { %1073 = vadd.xlane.f32.xlu0 %v1072_v56  ;;  %1076 = vadd.xlane.f32.xlu1 %v1075_v57  ;;  %v898_v56 = vld [vmem:[%s1720_s10 + $0x68] sm:$0xff] }
 0x1db   : > { %v987_v57 = vld [vmem:[%s1768_s13 + $0x28] sm:$0xff] }
 0x1e0   : > { %1070 = vadd.xlane.f32.xlu2 %v1069_v18 }
 0x1fd   : > { %v903_v26 = vpop.xlane.xlu1 %902 }
 0x1fe   : > { %v949_v21 = vadd.f32 %v903_v26, %v885_v0 }
 0x200   : > { %966 = vst.msk [vmem:[%s1720_s10] sm:$0xff] %vm271_vm1, %v949_v21  ;;  %v890_v21 = vld [vmem:[%s1720_s10 + $0x28] sm:$0xff] }
 0x203   : > { %v927_v1 = vpop.xlane.xlu2 %926 }
 0x204   : > { %v957_v4 = vadd.f32 %v927_v1, %v893_v27  ;;  %v988_v1 = vld [vmem:[%s1768_s13 + $0x30] sm:$0xff] }
 0x205   : > { %v1056_v39 = vpop.xlane.xlu0 %1055  ;;  %v1032_v62 = vpop.xlane.xlu1 %1031 }
 0x206   : > { %974 = vst.msk [vmem:[%s1720_s10 + $0x40] sm:$0xff] %vm271_vm1, %v957_v4  ;;  %v1086_v63 = vadd.f32 %v1056_v39, %v990_v2  ;;  %v1078_v10 = vadd.f32 %v1032_v62, %v982_v3  ;;  %v891_v2 = vld [vmem:[%s1720_s10 + $0x30] sm:$0xff] }
 0x208   : > { %1102 = vst.msk [vmem:[%s1768_s13 + $0x40] sm:$0xff] %vm271_vm1, %v1086_v63 }
 0x209   : > { %1094 = vst.msk [vmem:[%s1768_s13] sm:$0xff] %vm271_vm1, %v1078_v10  ;;  %v899_v10 = vld [vmem:[%s1720_s10 + $0x70] sm:$0xff] }
 0x20b   : > { %v906_v44 = vpop.xlane.xlu2 %905 }
 0x20c   : > { %v950_v15 = vadd.f32 %v906_v44, %v886_v11  ;;  %v900_v44 = vld [vmem:[%s1720_s10 + $0x78] sm:$0xff] }
 0x20d   : > { %v930_v45 = vpop.xlane.xlu0 %929  ;;  %v1059_v16 = vpop.xlane.xlu1 %1058 }
 0x20e   : > { %967 = vst.msk [vmem:[%s1720_s10 + $0x8] sm:$0xff] %vm271_vm1, %v950_v15  ;;  %v958_v17 = vadd.f32 %v930_v45, %v894_v12  ;;  %v1087_v5 = vadd.f32 %v1059_v16, %v991_v13  ;;  %v892_v12 = vld [vmem:[%s1720_s10 + $0x38] sm:$0xff] }
 0x210   : > { %975 = vst.msk [vmem:[%s1720_s10 + $0x48] sm:$0xff] %vm271_vm1, %v958_v17 }
 0x211   : > { %1103 = vst.msk [vmem:[%s1768_s13 + $0x48] sm:$0xff] %vm271_vm1, %v1087_v5  ;;  %v989_v5 = vld [vmem:[%s1768_s13 + $0x38] sm:$0xff] }
 0x213   : > { %v1035_v6 = vpop.xlane.xlu2 %1034 }
 0x214   : > { %v1079_v9 = vadd.f32 %v1035_v6, %v983_v7  ;;  %v996_v6 = vld [vmem:[%s1768_s13 + $0x70] sm:$0xff] }
 0x215   : > { %v933_v20 = vpop.xlane.xlu1 %932  ;;  %v909_v22 = vpop.xlane.xlu0 %908 }
 0x216   : > { %1095 = vst.msk [vmem:[%s1768_s13 + $0x8] sm:$0xff] %vm271_vm1, %v1079_v9  ;;  %v959_v14 = vadd.f32 %v933_v20, %v895_v8  ;;  %v951_v23 = vadd.f32 %v909_v22, %v887_v19  ;;  %v997_v8 = vld [vmem:[%s1768_s13 + $0x78] sm:$0xff] }
 0x218   : > { %976 = vst.msk [vmem:[%s1720_s10 + $0x50] sm:$0xff] %vm271_vm1, %v959_v14 }
 0x219   : > { %968 = vst.msk [vmem:[%s1720_s10 + $0x10] sm:$0xff] %vm271_vm1, %v951_v23  ;;  %v995_v23 = vld [vmem:[%s1768_s13 + $0x68] sm:$0xff] }
 0x21b   : > { %v912_v34 = vpop.xlane.xlu2 %911 }
 0x21c   : > { %v952_v30 = vadd.f32 %v912_v34, %v888_v24 }
 0x21d   : > { %v1038_v31 = vpop.xlane.xlu0 %1037  ;;  %v1041_v32 = vpop.xlane.xlu1 %1040 }
 0x21e   : > { %969 = vst.msk [vmem:[%s1720_s10 + $0x18] sm:$0xff] %vm271_vm1, %v952_v30  ;;  %v1080_v25 = vadd.f32 %v1038_v31, %v984_v29  ;;  %v1081_v36 = vadd.f32 %v1041_v32, %v985_v35 }
 0x220   : > { %1096 = vst.msk [vmem:[%s1768_s13 + $0x10] sm:$0xff] %vm271_vm1, %v1080_v25 }
 0x221   : > { %1097 = vst.msk [vmem:[%s1768_s13 + $0x18] sm:$0xff] %vm271_vm1, %v1081_v36 }
 0x223   : > { %v1062_v41 = vpop.xlane.xlu2 %1061 }
 0x224   : > { %v1088_v42 = vadd.f32 %v1062_v41, %v992_v40 }
 0x225   : > { %v1065_v48 = vpop.xlane.xlu0 %1064  ;;  %v915_v43 = vpop.xlane.xlu1 %914 }
 0x226   : > { %1104 = vst.msk [vmem:[%s1768_s13 + $0x50] sm:$0xff] %vm271_vm1, %v1088_v42  ;;  %v1089_v49 = vadd.f32 %v1065_v48, %v993_v46  ;;  %v953_v58 = vadd.f32 %v915_v43, %v889_v47 }
 0x228   : > { %1105 = vst.msk [vmem:[%s1768_s13 + $0x58] sm:$0xff] %vm271_vm1, %v1089_v49 }
 0x229   : > { %970 = vst.msk [vmem:[%s1720_s10 + $0x20] sm:$0xff] %vm271_vm1, %v953_v58 }
 0x22b   : > { %v936_v28 = vpop.xlane.xlu2 %935 }
 0x22c   : > { %v960_v51 = vadd.f32 %v936_v28, %v896_v59 }
 0x22d   : > { %v939_v52 = vpop.xlane.xlu0 %938  ;;  %v1068_v37 = vpop.xlane.xlu1 %1067 }
 0x22e   : > { %977 = vst.msk [vmem:[%s1720_s10 + $0x58] sm:$0xff] %vm271_vm1, %v960_v51  ;;  %v961_v53 = vadd.f32 %v939_v52, %v897_v50  ;;  %v1090_v38 = vadd.f32 %v1068_v37, %v994_v33 }
 0x230   : > { %978 = vst.msk [vmem:[%s1720_s10 + $0x60] sm:$0xff] %vm271_vm1, %v961_v53 }
 0x231   : > { %1106 = vst.msk [vmem:[%s1768_s13 + $0x60] sm:$0xff] %vm271_vm1, %v1090_v38 }
 0x233   : > { %v1044_v55 = vpop.xlane.xlu2 %1043 }
 0x234   : > { %v1082_v60 = vadd.f32 %v1044_v55, %v986_v54 }
 0x235   : > { %v942_v61 = vpop.xlane.xlu1 %941  ;;  %v1047_v18 = vpop.xlane.xlu0 %1046 }
 0x236   : > { %1098 = vst.msk [vmem:[%s1768_s13 + $0x20] sm:$0xff] %vm271_vm1, %v1082_v60  ;;  %v962_v0 = vadd.f32 %v942_v61, %v898_v56  ;;  %v1083_v26 = vadd.f32 %v1047_v18, %v987_v57 }
 0x238   : > { %979 = vst.msk [vmem:[%s1720_s10 + $0x68] sm:$0xff] %vm271_vm1, %v962_v0 }
 0x239   : > { %1099 = vst.msk [vmem:[%s1768_s13 + $0x28] sm:$0xff] %vm271_vm1, %v1083_v26 }
 0x23b   : > { %v918_v27 = vpop.xlane.xlu2 %917 }
 0x23c   : > { %v954_v3 = vadd.f32 %v918_v27, %v890_v21 }
 0x23d   : > { %v1050_v4 = vpop.xlane.xlu1 %1049  ;;  %v921_v39 = vpop.xlane.xlu0 %920 }
 0x23e   : > { %971 = vst.msk [vmem:[%s1720_s10 + $0x28] sm:$0xff] %vm271_vm1, %v954_v3  ;;  %v1084_v62 = vadd.f32 %v1050_v4, %v988_v1  ;;  %v955_v63 = vadd.f32 %v921_v39, %v891_v2 }
 0x240   : > { %1100 = vst.msk [vmem:[%s1768_s13 + $0x30] sm:$0xff] %vm271_vm1, %v1084_v62 }
 0x241   : > { %972 = vst.msk [vmem:[%s1720_s10 + $0x30] sm:$0xff] %vm271_vm1, %v955_v63 }
 0x243   : > { %v945_v11 = vpop.xlane.xlu2 %944 }
 0x244   : > { %v963_v13 = vadd.f32 %v945_v11, %v899_v10 }
 0x245   : > { %v948_v15 = vpop.xlane.xlu0 %947  ;;  %v924_v45 = vpop.xlane.xlu1 %923 }
 0x246   : > { %980 = vst.msk [vmem:[%s1720_s10 + $0x70] sm:$0xff] %vm271_vm1, %v963_v13  ;;  %v964_v16 = vadd.f32 %v948_v15, %v900_v44  ;;  %v956_v17 = vadd.f32 %v924_v45, %v892_v12 }
 0x248   : > { %981 = vst.msk [vmem:[%s1720_s10 + $0x78] sm:$0xff] %vm271_vm1, %v964_v16 }
 0x249   : > { %973 = vst.msk [vmem:[%s1720_s10 + $0x38] sm:$0xff] %vm271_vm1, %v956_v17 }
 0x24b   : > { %v1053_v7 = vpop.xlane.xlu2 %1052 }
 0x24c   : > { %v1085_v19 = vadd.f32 %v1053_v7, %v989_v5 }
 0x24d   : > { %v1074_v9 = vpop.xlane.xlu0 %1073  ;;  %v1077_v20 = vpop.xlane.xlu1 %1076 }
 0x24e   : > { %1101 = vst.msk [vmem:[%s1768_s13 + $0x38] sm:$0xff] %vm271_vm1, %v1085_v19  ;;  %v1092_v22 = vadd.f32 %v1074_v9, %v996_v6  ;;  %v1093_v14 = vadd.f32 %v1077_v20, %v997_v8 }
 0x250   : > { %1108 = vst.msk [vmem:[%s1768_s13 + $0x70] sm:$0xff] %vm271_vm1, %v1092_v22 }
 0x251   : > { %1109 = vst.msk [vmem:[%s1768_s13 + $0x78] sm:$0xff] %vm271_vm1, %v1093_v14 }
 0x253   : > { %v1071_v24 = vpop.xlane.xlu2 %1070 }
 0x254   : > { %v1091_v34 = vadd.f32 %v1071_v24, %v995_v23 }
 0x256   : > { %1107 = vst.msk [vmem:[%s1768_s13 + $0x68] sm:$0xff] %vm271_vm1, %v1091_v34 }
 0x257 PF: > { %s16_s20 = sadd.s32 1, %s1374_s20   ;;  %s1942_s18 = smov %s1370_s19 }
 0x258   : > { %p13_p5 = scmp.ge.s32.totalorder %s16_s20, 4   ;;  %s1943_s19 = smov %s1945_s21 }
 0x25a   :  { %15 = sbr.rel (!%p13_p5) target bundleno = 2 (0x2), region = 82 }

</bundles_post_ra>
